<compile_context>
chip_gen: v7x
topology: tpu7x:2x2x1
jax: 0.10.0
libtpu: 0.0.40
codegen_flags: <defaults>
</compile_context>

<pallas_src>
import math
from functools import partial

import jax
import jax.numpy as jnp
from jax import lax
from jax.experimental import pallas as pl
from jax.experimental.pallas import tpu as pltpu  # noqa: F401  (TPU backend)

# ----------------------- hyper-params (small, synthetic) -------------------
D_MODEL = 32
N_HEAD = 4
MAX_LEN = 8
FFN_HID = 64
N_LAYERS = 2
NUM_BINS = 8            # embedding table has NUM_BINS**2 + 1 rows
NUM_CLS = 3             # TODO(synk): DecoderLoc source not given; assume 3 token classes
NUM_REG = 2
BATCH = 2
HEAD_PAD = 128          # lane-dense output width for the fused cls/reg head


# ============================ fused Pallas kernel ===========================

def _fused_forward_kernel(
        x_ref,            # (N, D)   bilinear location embedding (pre-combined)
        bias_ref,         # (N, N)   additive attention bias (pre-built)
        coords_ref,       # (T*B, 2) LSTM inputs, time-major
        lstm_ib_ref,      # (3, 4H)  rows 0-1: W_ih, row 2: bias
        whh_ref,          # (H, 4H)  bf16
        wqkv_ref,         # (L, D, 3D) bf16
        wo_ref,           # (L, D, D)  bf16
        wc_ref,           # (L, H, D)  bf16  pre-fused cross-attn V*O projection
        w1_ref,           # (L, D, F)  bf16
        w2_ref,           # (L, F, D)  bf16
        vec_ref,          # (L, 12, D) f32  [bq,bk,bv,bo_s,b_c,b2, ln_g(3), ln_b(3)]
        b1_ref,           # (L, 1, F)  f32
        whead_ref,        # (D, 128)   bf16 (zero padded)
        bhead_ref,        # (1, 128)   f32  (zero padded)
        head_out_ref,     # (N, 128)   f32
        ench_out_ref,     # (B, H)     f32
        *, n_head, n_layers, batch, seq_len, lstm_t, num_cls):
    B = batch
    L = seq_len
    N = B * L
    T = lstm_t
    D = x_ref.shape[1]
    H = D
    Dh = D // n_head
    scale = 1.0 / math.sqrt(Dh)
    bf16 = jnp.bfloat16

    # ---------------- LSTM encoder -------------------------------------------
    # TODO(synk): EncoderLSTM source not provided; assumed single-layer LSTM
    # (PyTorch gate order i,f,g,o) whose final hidden state is the encoding.
    coords = coords_ref[...]                                    # (T*B, 2)
    # K=2 input projection as two VPU rank-1 updates (no wasted MXU pass)
    xw = (coords[:, 0:1] * lstm_ib_ref[0:1, :]
          + coords[:, 1:2] * lstm_ib_ref[1:2, :]
          + lstm_ib_ref[2:3, :])                                # (T*B, 4H) f32
    whh = whh_ref[...]                                          # (H, 4H) bf16
    h = jnp.zeros((B, H), jnp.float32)
    c = jnp.zeros((B, H), jnp.float32)
    for t in range(T):                       # static unroll (T is compile-time)
        gates = xw[t * B:(t + 1) * B, :] + jnp.dot(
            h.astype(bf16), whh, preferred_element_type=jnp.float32)
        i_g = jax.nn.sigmoid(gates[:, 0:H])
        f_g = jax.nn.sigmoid(gates[:, H:2 * H])
        g_g = jnp.tanh(gates[:, 2 * H:3 * H])
        o_g = jax.nn.sigmoid(gates[:, 3 * H:4 * H])
        c = f_g * c + i_g * g_g
        h = o_g * jnp.tanh(c)
    ench_out_ref[...] = h                                       # (B, H)

    # broadcast encoder hidden to every token row (VPU only, hoisted out of layers)
    row = lax.broadcasted_iota(jnp.int32, (N, 1), 0)
    h_tok = jnp.zeros((N, D), jnp.float32)
    for b in range(B):
        mb = ((row >= b * L) & (row < (b + 1) * L)).astype(jnp.float32)
        h_tok = h_tok + mb * h[b:b + 1, :]
    h_tok16 = h_tok.astype(bf16)

    # hoisted attention constants (traced once, reused by every layer/head)
    attn_bias = bias_ref[...]                                   # (N, N) f32
    lane = lax.broadcasted_iota(jnp.int32, (1, D), 1)
    head_masks = [((lane >= hh * Dh) & (lane < (hh + 1) * Dh)).astype(jnp.float32)
                  for hh in range(n_head)]

    def layer_norm(v, g, b):
        mu = jnp.mean(v, axis=-1, keepdims=True)
        var = jnp.mean((v - mu) ** 2, axis=-1, keepdims=True)
        return (v - mu) * lax.rsqrt(var + 1e-5) * g + b

    # ---------------- transformer decoder layers -----------------------------
    # TODO(synk): DecoderLoc source not provided; assumed post-LN decoder layer
    # (masked self-attn -> cross-attn on 1-token memory -> FFN).
    x = x_ref[...]
    for li in range(n_layers):
        vec = vec_ref[li]                                       # (12, D)

        # --- masked multi-head self-attention (heads via lane masks) ---------
        qkv = jnp.dot(x.astype(bf16), wqkv_ref[li],
                      preferred_element_type=jnp.float32)
        q = (qkv[:, 0:D] + vec[0:1, :]) * scale                 # scale folded once
        k16 = (qkv[:, D:2 * D] + vec[1:2, :]).astype(bf16)
        v = qkv[:, 2 * D:3 * D] + vec[2:3, :]
        o = jnp.zeros((N, D), jnp.float32)
        for hh in range(n_head):
            mh = head_masks[hh]
            s = lax.dot_general((q * mh).astype(bf16), k16,
                                (((1,), (1,)), ((), ())),
                                preferred_element_type=jnp.float32) + attn_bias
            m = jnp.max(s, axis=-1, keepdims=True)
            p = jnp.exp(s - m)
            p = p * pl.reciprocal(jnp.sum(p, axis=-1, keepdims=True), approx=True)
            # each head's output lands in its own lane range -> sum == concat
            o = o + jnp.dot(p.astype(bf16), (v * mh).astype(bf16),
                            preferred_element_type=jnp.float32)
        sa = jnp.dot(o.astype(bf16), wo_ref[li],
                     preferred_element_type=jnp.float32) + vec[3:4, :]
        x = layer_norm(x + sa, vec[6:7, :], vec[9:10, :])

        # --- cross-attention over the single-token encoder memory ------------
        # softmax over one key == 1; V and O projections were fused host-side,
        # so one matmul on the per-token broadcast hidden state remains.
        ca = jnp.dot(h_tok16, wc_ref[li],
                     preferred_element_type=jnp.float32) + vec[4:5, :]
        x = layer_norm(x + ca, vec[7:8, :], vec[10:11, :])

        # --- position-wise FFN ------------------------------------------------
        h1 = jnp.maximum(
            jnp.dot(x.astype(bf16), w1_ref[li],
                    preferred_element_type=jnp.float32) + b1_ref[li], 0.0)
        ff = jnp.dot(h1.astype(bf16), w2_ref[li],
                     preferred_element_type=jnp.float32) + vec[5:6, :]
        x = layer_norm(x + ff, vec[8:9, :], vec[11:12, :])

    # ---------------- fused cls/reg head (lane-dense, 128 cols) --------------
    head = jnp.dot(x.astype(bf16), whead_ref[...],
                   preferred_element_type=jnp.float32) + bhead_ref[...]
    cidx = lax.broadcasted_iota(jnp.int32, head.shape, 1)
    head_out_ref[...] = jnp.where(cidx < num_cls, head, jax.nn.sigmoid(head))


def fused_forward(x, attn_bias, coords, lstm_ib, lstm_whh,
                  wqkv_s, wo_s, w_c, w1, w2, vec_p, b1, w_head, b_head,
                  *, n_head, n_layers, batch, seq_len, lstm_t, num_cls):
    N, D = x.shape
    head_pad = w_head.shape[1]
    # No grid, no BlockSpecs: every operand is a full-array VMEM-resident block
    # (whole working set is a few tens of KB).
    return pl.pallas_call(
        partial(_fused_forward_kernel, n_head=n_head, n_layers=n_layers,
                batch=batch, seq_len=seq_len, lstm_t=lstm_t, num_cls=num_cls),
        out_shape=(jax.ShapeDtypeStruct((N, head_pad), jnp.float32),
                   jax.ShapeDtypeStruct((batch, D), jnp.float32)),
    )(x, attn_bias, coords, lstm_ib, lstm_whh,
      wqkv_s, wo_s, w_c, w1, w2, vec_p, b1, w_head, b_head)


# ============================ parameters ===================================

def init_params(key):
    ks = iter(jax.random.split(key, 64))

    def nrm(shape, scale=0.05):
        return jax.random.normal(next(ks), shape, jnp.float32) * scale

    params = {
        'loc_embeds': nrm((NUM_BINS ** 2 + 1, D_MODEL), 0.02),
        'lstm_wih': nrm((2, 4 * D_MODEL), 0.1),
        'lstm_whh': nrm((D_MODEL, 4 * D_MODEL), 0.1),
        'lstm_b': nrm((1, 4 * D_MODEL), 0.1),
        'w_cls': nrm((D_MODEL, NUM_CLS)),
        'b_cls': jnp.zeros((1, NUM_CLS), jnp.float32),
        'w_reg': nrm((D_MODEL, NUM_REG)),
        'b_reg': jnp.zeros((1, NUM_REG), jnp.float32),
        # decoder-layer weights stacked along a leading N_LAYERS axis so the
        # fused kernel indexes them with a static layer index.
        'wqkv_s': nrm((N_LAYERS, D_MODEL, 3 * D_MODEL)),
        'bqkv_s': nrm((N_LAYERS, 1, 3 * D_MODEL)),
        'wo_s': nrm((N_LAYERS, D_MODEL, D_MODEL)),
        'bo_s': nrm((N_LAYERS, 1, D_MODEL)),
        'wqkv_c': nrm((N_LAYERS, D_MODEL, 3 * D_MODEL)),
        'bqkv_c': nrm((N_LAYERS, 1, 3 * D_MODEL)),
        'wo_c': nrm((N_LAYERS, D_MODEL, D_MODEL)),
        'bo_c': nrm((N_LAYERS, 1, D_MODEL)),
        'ln_g': jnp.ones((N_LAYERS, 3, D_MODEL), jnp.float32),
        'ln_b': jnp.zeros((N_LAYERS, 3, D_MODEL), jnp.float32),
        'w1': nrm((N_LAYERS, D_MODEL, FFN_HID)),
        'b1': nrm((N_LAYERS, 1, FFN_HID)),
        'w2': nrm((N_LAYERS, FFN_HID, D_MODEL)),
        'b2': nrm((N_LAYERS, 1, D_MODEL)),
    }
    return params


# ============================ forward ======================================

def transformer_lstm_forward(params, locations, mask_enc, mask_dec):
    del mask_enc  # src_mask computed but unused in the torch forward (passes None)
    D = D_MODEL

    # "-1" sentinel replacement (val[val == -1] = num_bins ** 2)
    def fix_q(a):
        return jnp.where(a == -1, NUM_BINS ** 2, a).astype(jnp.int32)

    def fix_d(a):
        return jnp.where(a == -1.0, float(NUM_BINS ** 2), a).astype(jnp.float32)

    q11 = fix_q(locations['quant_poly11'])
    q21 = fix_q(locations['quant_poly21'])
    q12 = fix_q(locations['quant_poly12'])
    q22 = fix_q(locations['quant_poly22'])

    B, L = q11.shape
    N = B * L

    emb = params['loc_embeds']
    # embedding gathers stay in plain JAX glue; rows flattened to (B*L, D)
    e11 = jnp.take(emb, q11.reshape(N), axis=0)
    e21 = jnp.take(emb, q21.reshape(N), axis=0)
    e12 = jnp.take(emb, q12.reshape(N), axis=0)
    e22 = jnp.take(emb, q22.reshape(N), axis=0)

    dx1 = fix_d(locations['delta_x1']).reshape(N, 1)
    dx2 = fix_d(locations['delta_x2']).reshape(N, 1)
    dy1 = fix_d(locations['delta_y1']).reshape(N, 1)
    dy2 = fix_d(locations['delta_y2']).reshape(N, 1)

    # bilinear combine in the glue -> single lane-dense (N, D) kernel operand
    x = (e11 * (dx2 * dy2) + e12 * (dx2 * dy1)
         + e21 * (dx1 * dy2) + e22 * (dx1 * dy1)).astype(jnp.float32)

    # additive attention bias built once in the glue (causal + query-pad within
    # batch; huge penalty across batches so rows normalize over their own keys).
    # TODO(synk): torch trg_mask applies the pad mask on the query axis only;
    # kept identical here.
    ridx = jnp.arange(N)
    same_batch = (ridx[:, None] // L) == (ridx[None, :] // L)
    causal = ridx[None, :] <= ridx[:, None]
    padq = mask_dec.astype(jnp.float32).reshape(N) > 0.0
    keep = causal & padq[:, None]
    attn_bias = jnp.where(same_batch,
                          jnp.where(keep, 0.0, -1.0e4),
                          -1.0e9).astype(jnp.float32)

    # encoder input: polygon coords, time-major and flattened to (T*B, 2)
    coords = locations['polygon'][:, :-1].astype(jnp.float32)           # (B, T, 2)
    T = coords.shape[1]
    coords_flat = jnp.transpose(coords, (1, 0, 2)).reshape(T * B, 2)

    # S==1 cross-attention: pre-fuse V and O projections (no nonlinearity between)
    wv_c = params['wqkv_c'][:, :, 2 * D:3 * D]
    bv_c = params['bqkv_c'][:, :, 2 * D:3 * D]
    w_c = jnp.einsum('lij,ljk->lik', wv_c, params['wo_c'])
    b_c = jnp.einsum('lij,ljk->lik', bv_c, params['wo_c']) + params['bo_c']

    # pack per-layer bias / LayerNorm vectors into one (L, 12, D) operand
    bqkv_rows = params['bqkv_s'].reshape(N_LAYERS, 3, D)     # rows: bq, bk, bv
    vec_p = jnp.concatenate([bqkv_rows, params['bo_s'], b_c, params['b2'],
                             params['ln_g'], params['ln_b']], axis=1)

    # pack LSTM input projection + bias
    lstm_ib = jnp.concatenate([params['lstm_wih'], params['lstm_b']], axis=0)

    # lane-dense fused cls/reg head (zero-padded to 128 output columns)
    CR = NUM_CLS + NUM_REG
    w_head = jnp.concatenate([params['w_cls'], params['w_reg']], axis=1)
    b_head = jnp.concatenate([params['b_cls'], params['b_reg']], axis=1)
    w_head_p = jnp.pad(w_head, ((0, 0), (0, HEAD_PAD - CR))).astype(jnp.bfloat16)
    b_head_p = jnp.pad(b_head, ((0, 0), (0, HEAD_PAD - CR)))

    bf = jnp.bfloat16
    head_out, enc_h = fused_forward(
        x, attn_bias, coords_flat, lstm_ib, params['lstm_whh'].astype(bf),
        params['wqkv_s'].astype(bf), params['wo_s'].astype(bf), w_c.astype(bf),
        params['w1'].astype(bf), params['w2'].astype(bf),
        vec_p, params['b1'], w_head_p, b_head_p,
        n_head=N_HEAD, n_layers=N_LAYERS, batch=B, seq_len=L, lstm_t=T,
        num_cls=NUM_CLS)

    cls_out = head_out[:, :NUM_CLS].reshape(B, L, NUM_CLS)
    reg_out = head_out[:, NUM_CLS:CR].reshape(B, L, NUM_REG)
    enc_src = enc_h[:, None, :]                                          # (B, 1, D)
    return {'output': (cls_out, reg_out), 'hidden_repr': enc_src}


# ============================ main =========================================

if __name__ == "__main__":
    key = jax.random.PRNGKey(0)
    kp, k1, k2, k3, k4, k5, k6, k7 = jax.random.split(key, 8)
    params = init_params(kp)

    B, L = BATCH, MAX_LEN
    locations = {
        'quant_poly11': jax.random.randint(k1, (B, L), 0, NUM_BINS ** 2, jnp.int32),
        'quant_poly21': jax.random.randint(k2, (B, L), 0, NUM_BINS ** 2, jnp.int32),
        'quant_poly12': jax.random.randint(k3, (B, L), 0, NUM_BINS ** 2, jnp.int32),
        'quant_poly22': jax.random.randint(k4, (B, L), 0, NUM_BINS ** 2, jnp.int32),
        'delta_x1': jax.random.uniform(k5, (B, L), jnp.float32),
        'delta_y1': jax.random.uniform(k6, (B, L), jnp.float32),
        'polygon': jax.random.uniform(k7, (B, L + 1, 2), jnp.float32),
    }
    locations['delta_x2'] = 1.0 - locations['delta_x1']
    locations['delta_y2'] = 1.0 - locations['delta_y1']

    mask_enc = jnp.ones((B, L), jnp.float32)
    mask_dec = (jnp.arange(L)[None, :] < jnp.array([[L], [L - 2]])).astype(jnp.float32)

    fwd = jax.jit(transformer_lstm_forward)
    out = fwd(params, locations, mask_enc, mask_dec)
    out = jax.block_until_ready(out)

    cls_out, reg_out = out['output']
    assert cls_out.shape == (B, L, NUM_CLS)
    assert reg_out.shape == (B, L, NUM_REG)
    assert out['hidden_repr'].shape == (B, 1, D_MODEL)
    assert bool(jnp.all(jnp.isfinite(cls_out))) and bool(jnp.all(jnp.isfinite(reg_out)))
    print("KERNEL_OK")
</pallas_src>

<mosaic_0001>
module attributes {stable_mosaic.version = 11 : i64} {
  func.func @_fused_forward_kernel(%arg0: memref<16x32xf32, #tpu.memory_space<vmem>>, %arg1: memref<16x16xf32, #tpu.memory_space<vmem>>, %arg2: memref<16x2xf32, #tpu.memory_space<vmem>>, %arg3: memref<3x128xf32, #tpu.memory_space<vmem>>, %arg4: memref<32x128xbf16, #tpu.memory_space<vmem>>, %arg5: memref<2x32x96xbf16, #tpu.memory_space<vmem>>, %arg6: memref<2x32x32xbf16, #tpu.memory_space<vmem>>, %arg7: memref<2x32x32xbf16, #tpu.memory_space<vmem>>, %arg8: memref<2x32x64xbf16, #tpu.memory_space<vmem>>, %arg9: memref<2x64x32xbf16, #tpu.memory_space<vmem>>, %arg10: memref<2x12x32xf32, #tpu.memory_space<vmem>>, %arg11: memref<2x1x64xf32, #tpu.memory_space<vmem>>, %arg12: memref<32x128xbf16, #tpu.memory_space<vmem>>, %arg13: memref<1x128xf32, #tpu.memory_space<vmem>>, %arg14: memref<16x128xf32, #tpu.memory_space<vmem>>, %arg15: memref<2x32xf32, #tpu.memory_space<vmem>>) attributes {dimension_semantics = [], scalar_prefetch = 0 : i64, scratch_operands = 0 : i64, tpu.core_type = #tpu.core_type<tc>} {
    %c0 = arith.constant 0 : index
    %c0_0 = arith.constant 0 : index
    %0 = vector.load %arg2[%c0, %c0_0] : memref<16x2xf32, #tpu.memory_space<vmem>>, vector<16x2xf32>
    %1 = vector.extract_strided_slice %0 {offsets = [0, 0], sizes = [16, 1], strides = [1, 1]} : vector<16x2xf32> to vector<16x1xf32>
    %c0_1 = arith.constant 0 : index
    %c0_2 = arith.constant 0 : index
    %2 = vector.load %arg3[%c0_1, %c0_2] : memref<3x128xf32, #tpu.memory_space<vmem>>, vector<1x128xf32>
    %3 = vector.broadcast %1 : vector<16x1xf32> to vector<16x128xf32>
    %4 = vector.broadcast %2 : vector<1x128xf32> to vector<16x128xf32>
    %5 = arith.mulf %3, %4 : vector<16x128xf32>
    %6 = vector.extract_strided_slice %0 {offsets = [0, 1], sizes = [16, 1], strides = [1, 1]} : vector<16x2xf32> to vector<16x1xf32>
    %c1 = arith.constant 1 : index
    %c0_3 = arith.constant 0 : index
    %7 = vector.load %arg3[%c1, %c0_3] : memref<3x128xf32, #tpu.memory_space<vmem>>, vector<1x128xf32>
    %8 = vector.broadcast %6 : vector<16x1xf32> to vector<16x128xf32>
    %9 = vector.broadcast %7 : vector<1x128xf32> to vector<16x128xf32>
    %10 = arith.mulf %8, %9 : vector<16x128xf32>
    %11 = arith.addf %5, %10 : vector<16x128xf32>
    %c2 = arith.constant 2 : index
    %c0_4 = arith.constant 0 : index
    %12 = vector.load %arg3[%c2, %c0_4] : memref<3x128xf32, #tpu.memory_space<vmem>>, vector<1x128xf32>
    %13 = vector.broadcast %12 : vector<1x128xf32> to vector<16x128xf32>
    %14 = arith.addf %11, %13 : vector<16x128xf32>
    %c0_5 = arith.constant 0 : index
    %c0_6 = arith.constant 0 : index
    %15 = vector.load %arg4[%c0_5, %c0_6] : memref<32x128xbf16, #tpu.memory_space<vmem>>, vector<32x128xbf16>
    %cst = arith.constant 0.000000e+00 : f32
    %16 = vector.broadcast %cst : f32 to vector<2x32xf32>
    %cst_7 = arith.constant 0.000000e+00 : f32
    %17 = vector.broadcast %cst_7 : f32 to vector<2x32xf32>
    %18 = vector.extract_strided_slice %14 {offsets = [0, 0], sizes = [2, 128], strides = [1, 1]} : vector<16x128xf32> to vector<2x128xf32>
    %19 = arith.truncf %16 : vector<2x32xf32> to vector<2x32xbf16>
    %cst_8 = arith.constant dense<0.000000e+00> : vector<2x128xf32>
    %20 = tpu.matmul %19, %15, %cst_8 {dimension_numbers = #tpu.dot_dimension_numbers<[1], [0], [0], [1], [0, 0, 1, 1], [], []>} : vector<2x32xbf16>, vector<32x128xbf16>, vector<2x128xf32> -> vector<2x128xf32>
    %21 = arith.addf %18, %20 : vector<2x128xf32>
    %22 = vector.extract_strided_slice %21 {offsets = [0, 0], sizes = [2, 32], strides = [1, 1]} : vector<2x128xf32> to vector<2x32xf32>
    %23 = arith.negf %22 : vector<2x32xf32>
    %24 = math.exp %23 : vector<2x32xf32>
    %cst_9 = arith.constant 1.000000e+00 : f32
    %25 = vector.broadcast %cst_9 : f32 to vector<2x32xf32>
    %26 = arith.addf %25, %24 : vector<2x32xf32>
    %27 = arith.divf %25, %26 : vector<2x32xf32>
    %28 = vector.extract_strided_slice %21 {offsets = [0, 32], sizes = [2, 32], strides = [1, 1]} : vector<2x128xf32> to vector<2x32xf32>
    %29 = arith.negf %28 : vector<2x32xf32>
    %30 = math.exp %29 : vector<2x32xf32>
    %cst_10 = arith.constant 1.000000e+00 : f32
    %31 = vector.broadcast %cst_10 : f32 to vector<2x32xf32>
    %32 = arith.addf %31, %30 : vector<2x32xf32>
    %33 = arith.divf %31, %32 : vector<2x32xf32>
    %34 = vector.extract_strided_slice %21 {offsets = [0, 64], sizes = [2, 32], strides = [1, 1]} : vector<2x128xf32> to vector<2x32xf32>
    %35 = math.tanh %34 : vector<2x32xf32>
    %36 = vector.extract_strided_slice %21 {offsets = [0, 96], sizes = [2, 32], strides = [1, 1]} : vector<2x128xf32> to vector<2x32xf32>
    %37 = arith.negf %36 : vector<2x32xf32>
    %38 = math.exp %37 : vector<2x32xf32>
    %cst_11 = arith.constant 1.000000e+00 : f32
    %39 = vector.broadcast %cst_11 : f32 to vector<2x32xf32>
    %40 = arith.addf %39, %38 : vector<2x32xf32>
    %41 = arith.divf %39, %40 : vector<2x32xf32>
    %42 = arith.mulf %33, %17 : vector<2x32xf32>
    %43 = arith.mulf %27, %35 : vector<2x32xf32>
    %44 = arith.addf %42, %43 : vector<2x32xf32>
    %45 = math.tanh %44 : vector<2x32xf32>
    %46 = arith.mulf %41, %45 : vector<2x32xf32>
    %47 = vector.extract_strided_slice %14 {offsets = [2, 0], sizes = [2, 128], strides = [1, 1]} : vector<16x128xf32> to vector<2x128xf32>
    %48 = arith.truncf %46 : vector<2x32xf32> to vector<2x32xbf16>
    %cst_12 = arith.constant dense<0.000000e+00> : vector<2x128xf32>
    %49 = tpu.matmul %48, %15, %cst_12 {dimension_numbers = #tpu.dot_dimension_numbers<[1], [0], [0], [1], [0, 0, 1, 1], [], []>} : vector<2x32xbf16>, vector<32x128xbf16>, vector<2x128xf32> -> vector<2x128xf32>
    %50 = arith.addf %47, %49 : vector<2x128xf32>
    %51 = vector.extract_strided_slice %50 {offsets = [0, 0], sizes = [2, 32], strides = [1, 1]} : vector<2x128xf32> to vector<2x32xf32>
    %52 = arith.negf %51 : vector<2x32xf32>
    %53 = math.exp %52 : vector<2x32xf32>
    %cst_13 = arith.constant 1.000000e+00 : f32
    %54 = vector.broadcast %cst_13 : f32 to vector<2x32xf32>
    %55 = arith.addf %54, %53 : vector<2x32xf32>
    %56 = arith.divf %54, %55 : vector<2x32xf32>
    %57 = vector.extract_strided_slice %50 {offsets = [0, 32], sizes = [2, 32], strides = [1, 1]} : vector<2x128xf32> to vector<2x32xf32>
    %58 = arith.negf %57 : vector<2x32xf32>
    %59 = math.exp %58 : vector<2x32xf32>
    %cst_14 = arith.constant 1.000000e+00 : f32
    %60 = vector.broadcast %cst_14 : f32 to vector<2x32xf32>
    %61 = arith.addf %60, %59 : vector<2x32xf32>
    %62 = arith.divf %60, %61 : vector<2x32xf32>
    %63 = vector.extract_strided_slice %50 {offsets = [0, 64], sizes = [2, 32], strides = [1, 1]} : vector<2x128xf32> to vector<2x32xf32>
    %64 = math.tanh %63 : vector<2x32xf32>
    %65 = vector.extract_strided_slice %50 {offsets = [0, 96], sizes = [2, 32], strides = [1, 1]} : vector<2x128xf32> to vector<2x32xf32>
    %66 = arith.negf %65 : vector<2x32xf32>
    %67 = math.exp %66 : vector<2x32xf32>
    %cst_15 = arith.constant 1.000000e+00 : f32
    %68 = vector.broadcast %cst_15 : f32 to vector<2x32xf32>
    %69 = arith.addf %68, %67 : vector<2x32xf32>
    %70 = arith.divf %68, %69 : vector<2x32xf32>
    %71 = arith.mulf %62, %44 : vector<2x32xf32>
    %72 = arith.mulf %56, %64 : vector<2x32xf32>
    %73 = arith.addf %71, %72 : vector<2x32xf32>
    %74 = math.tanh %73 : vector<2x32xf32>
    %75 = arith.mulf %70, %74 : vector<2x32xf32>
    %76 = vector.extract_strided_slice %14 {offsets = [4, 0], sizes = [2, 128], strides = [1, 1]} : vector<16x128xf32> to vector<2x128xf32>
    %77 = arith.truncf %75 : vector<2x32xf32> to vector<2x32xbf16>
    %cst_16 = arith.constant dense<0.000000e+00> : vector<2x128xf32>
    %78 = tpu.matmul %77, %15, %cst_16 {dimension_numbers = #tpu.dot_dimension_numbers<[1], [0], [0], [1], [0, 0, 1, 1], [], []>} : vector<2x32xbf16>, vector<32x128xbf16>, vector<2x128xf32> -> vector<2x128xf32>
    %79 = arith.addf %76, %78 : vector<2x128xf32>
    %80 = vector.extract_strided_slice %79 {offsets = [0, 0], sizes = [2, 32], strides = [1, 1]} : vector<2x128xf32> to vector<2x32xf32>
    %81 = arith.negf %80 : vector<2x32xf32>
    %82 = math.exp %81 : vector<2x32xf32>
    %cst_17 = arith.constant 1.000000e+00 : f32
    %83 = vector.broadcast %cst_17 : f32 to vector<2x32xf32>
    %84 = arith.addf %83, %82 : vector<2x32xf32>
    %85 = arith.divf %83, %84 : vector<2x32xf32>
    %86 = vector.extract_strided_slice %79 {offsets = [0, 32], sizes = [2, 32], strides = [1, 1]} : vector<2x128xf32> to vector<2x32xf32>
    %87 = arith.negf %86 : vector<2x32xf32>
    %88 = math.exp %87 : vector<2x32xf32>
    %cst_18 = arith.constant 1.000000e+00 : f32
    %89 = vector.broadcast %cst_18 : f32 to vector<2x32xf32>
    %90 = arith.addf %89, %88 : vector<2x32xf32>
    %91 = arith.divf %89, %90 : vector<2x32xf32>
    %92 = vector.extract_strided_slice %79 {offsets = [0, 64], sizes = [2, 32], strides = [1, 1]} : vector<2x128xf32> to vector<2x32xf32>
    %93 = math.tanh %92 : vector<2x32xf32>
    %94 = vector.extract_strided_slice %79 {offsets = [0, 96], sizes = [2, 32], strides = [1, 1]} : vector<2x128xf32> to vector<2x32xf32>
    %95 = arith.negf %94 : vector<2x32xf32>
    %96 = math.exp %95 : vector<2x32xf32>
    %cst_19 = arith.constant 1.000000e+00 : f32
    %97 = vector.broadcast %cst_19 : f32 to vector<2x32xf32>
    %98 = arith.addf %97, %96 : vector<2x32xf32>
    %99 = arith.divf %97, %98 : vector<2x32xf32>
    %100 = arith.mulf %91, %73 : vector<2x32xf32>
    %101 = arith.mulf %85, %93 : vector<2x32xf32>
    %102 = arith.addf %100, %101 : vector<2x32xf32>
    %103 = math.tanh %102 : vector<2x32xf32>
    %104 = arith.mulf %99, %103 : vector<2x32xf32>
    %105 = vector.extract_strided_slice %14 {offsets = [6, 0], sizes = [2, 128], strides = [1, 1]} : vector<16x128xf32> to vector<2x128xf32>
    %106 = arith.truncf %104 : vector<2x32xf32> to vector<2x32xbf16>
    %cst_20 = arith.constant dense<0.000000e+00> : vector<2x128xf32>
    %107 = tpu.matmul %106, %15, %cst_20 {dimension_numbers = #tpu.dot_dimension_numbers<[1], [0], [0], [1], [0, 0, 1, 1], [], []>} : vector<2x32xbf16>, vector<32x128xbf16>, vector<2x128xf32> -> vector<2x128xf32>
    %108 = arith.addf %105, %107 : vector<2x128xf32>
    %109 = vector.extract_strided_slice %108 {offsets = [0, 0], sizes = [2, 32], strides = [1, 1]} : vector<2x128xf32> to vector<2x32xf32>
    %110 = arith.negf %109 : vector<2x32xf32>
    %111 = math.exp %110 : vector<2x32xf32>
    %cst_21 = arith.constant 1.000000e+00 : f32
    %112 = vector.broadcast %cst_21 : f32 to vector<2x32xf32>
    %113 = arith.addf %112, %111 : vector<2x32xf32>
    %114 = arith.divf %112, %113 : vector<2x32xf32>
    %115 = vector.extract_strided_slice %108 {offsets = [0, 32], sizes = [2, 32], strides = [1, 1]} : vector<2x128xf32> to vector<2x32xf32>
    %116 = arith.negf %115 : vector<2x32xf32>
    %117 = math.exp %116 : vector<2x32xf32>
    %cst_22 = arith.constant 1.000000e+00 : f32
    %118 = vector.broadcast %cst_22 : f32 to vector<2x32xf32>
    %119 = arith.addf %118, %117 : vector<2x32xf32>
    %120 = arith.divf %118, %119 : vector<2x32xf32>
    %121 = vector.extract_strided_slice %108 {offsets = [0, 64], sizes = [2, 32], strides = [1, 1]} : vector<2x128xf32> to vector<2x32xf32>
    %122 = math.tanh %121 : vector<2x32xf32>
    %123 = vector.extract_strided_slice %108 {offsets = [0, 96], sizes = [2, 32], strides = [1, 1]} : vector<2x128xf32> to vector<2x32xf32>
    %124 = arith.negf %123 : vector<2x32xf32>
    %125 = math.exp %124 : vector<2x32xf32>
    %cst_23 = arith.constant 1.000000e+00 : f32
    %126 = vector.broadcast %cst_23 : f32 to vector<2x32xf32>
    %127 = arith.addf %126, %125 : vector<2x32xf32>
    %128 = arith.divf %126, %127 : vector<2x32xf32>
    %129 = arith.mulf %120, %102 : vector<2x32xf32>
    %130 = arith.mulf %114, %122 : vector<2x32xf32>
    %131 = arith.addf %129, %130 : vector<2x32xf32>
    %132 = math.tanh %131 : vector<2x32xf32>
    %133 = arith.mulf %128, %132 : vector<2x32xf32>
    %134 = vector.extract_strided_slice %14 {offsets = [8, 0], sizes = [2, 128], strides = [1, 1]} : vector<16x128xf32> to vector<2x128xf32>
    %135 = arith.truncf %133 : vector<2x32xf32> to vector<2x32xbf16>
    %cst_24 = arith.constant dense<0.000000e+00> : vector<2x128xf32>
    %136 = tpu.matmul %135, %15, %cst_24 {dimension_numbers = #tpu.dot_dimension_numbers<[1], [0], [0], [1], [0, 0, 1, 1], [], []>} : vector<2x32xbf16>, vector<32x128xbf16>, vector<2x128xf32> -> vector<2x128xf32>
    %137 = arith.addf %134, %136 : vector<2x128xf32>
    %138 = vector.extract_strided_slice %137 {offsets = [0, 0], sizes = [2, 32], strides = [1, 1]} : vector<2x128xf32> to vector<2x32xf32>
    %139 = arith.negf %138 : vector<2x32xf32>
    %140 = math.exp %139 : vector<2x32xf32>
    %cst_25 = arith.constant 1.000000e+00 : f32
    %141 = vector.broadcast %cst_25 : f32 to vector<2x32xf32>
    %142 = arith.addf %141, %140 : vector<2x32xf32>
    %143 = arith.divf %141, %142 : vector<2x32xf32>
    %144 = vector.extract_strided_slice %137 {offsets = [0, 32], sizes = [2, 32], strides = [1, 1]} : vector<2x128xf32> to vector<2x32xf32>
    %145 = arith.negf %144 : vector<2x32xf32>
    %146 = math.exp %145 : vector<2x32xf32>
    %cst_26 = arith.constant 1.000000e+00 : f32
    %147 = vector.broadcast %cst_26 : f32 to vector<2x32xf32>
    %148 = arith.addf %147, %146 : vector<2x32xf32>
    %149 = arith.divf %147, %148 : vector<2x32xf32>
    %150 = vector.extract_strided_slice %137 {offsets = [0, 64], sizes = [2, 32], strides = [1, 1]} : vector<2x128xf32> to vector<2x32xf32>
    %151 = math.tanh %150 : vector<2x32xf32>
    %152 = vector.extract_strided_slice %137 {offsets = [0, 96], sizes = [2, 32], strides = [1, 1]} : vector<2x128xf32> to vector<2x32xf32>
    %153 = arith.negf %152 : vector<2x32xf32>
    %154 = math.exp %153 : vector<2x32xf32>
    %cst_27 = arith.constant 1.000000e+00 : f32
    %155 = vector.broadcast %cst_27 : f32 to vector<2x32xf32>
    %156 = arith.addf %155, %154 : vector<2x32xf32>
    %157 = arith.divf %155, %156 : vector<2x32xf32>
    %158 = arith.mulf %149, %131 : vector<2x32xf32>
    %159 = arith.mulf %143, %151 : vector<2x32xf32>
    %160 = arith.addf %158, %159 : vector<2x32xf32>
    %161 = math.tanh %160 : vector<2x32xf32>
    %162 = arith.mulf %157, %161 : vector<2x32xf32>
    %163 = vector.extract_strided_slice %14 {offsets = [10, 0], sizes = [2, 128], strides = [1, 1]} : vector<16x128xf32> to vector<2x128xf32>
    %164 = arith.truncf %162 : vector<2x32xf32> to vector<2x32xbf16>
    %cst_28 = arith.constant dense<0.000000e+00> : vector<2x128xf32>
    %165 = tpu.matmul %164, %15, %cst_28 {dimension_numbers = #tpu.dot_dimension_numbers<[1], [0], [0], [1], [0, 0, 1, 1], [], []>} : vector<2x32xbf16>, vector<32x128xbf16>, vector<2x128xf32> -> vector<2x128xf32>
    %166 = arith.addf %163, %165 : vector<2x128xf32>
    %167 = vector.extract_strided_slice %166 {offsets = [0, 0], sizes = [2, 32], strides = [1, 1]} : vector<2x128xf32> to vector<2x32xf32>
    %168 = arith.negf %167 : vector<2x32xf32>
    %169 = math.exp %168 : vector<2x32xf32>
    %cst_29 = arith.constant 1.000000e+00 : f32
    %170 = vector.broadcast %cst_29 : f32 to vector<2x32xf32>
    %171 = arith.addf %170, %169 : vector<2x32xf32>
    %172 = arith.divf %170, %171 : vector<2x32xf32>
    %173 = vector.extract_strided_slice %166 {offsets = [0, 32], sizes = [2, 32], strides = [1, 1]} : vector<2x128xf32> to vector<2x32xf32>
    %174 = arith.negf %173 : vector<2x32xf32>
    %175 = math.exp %174 : vector<2x32xf32>
    %cst_30 = arith.constant 1.000000e+00 : f32
    %176 = vector.broadcast %cst_30 : f32 to vector<2x32xf32>
    %177 = arith.addf %176, %175 : vector<2x32xf32>
    %178 = arith.divf %176, %177 : vector<2x32xf32>
    %179 = vector.extract_strided_slice %166 {offsets = [0, 64], sizes = [2, 32], strides = [1, 1]} : vector<2x128xf32> to vector<2x32xf32>
    %180 = math.tanh %179 : vector<2x32xf32>
    %181 = vector.extract_strided_slice %166 {offsets = [0, 96], sizes = [2, 32], strides = [1, 1]} : vector<2x128xf32> to vector<2x32xf32>
    %182 = arith.negf %181 : vector<2x32xf32>
    %183 = math.exp %182 : vector<2x32xf32>
    %cst_31 = arith.constant 1.000000e+00 : f32
    %184 = vector.broadcast %cst_31 : f32 to vector<2x32xf32>
    %185 = arith.addf %184, %183 : vector<2x32xf32>
    %186 = arith.divf %184, %185 : vector<2x32xf32>
    %187 = arith.mulf %178, %160 : vector<2x32xf32>
    %188 = arith.mulf %172, %180 : vector<2x32xf32>
    %189 = arith.addf %187, %188 : vector<2x32xf32>
    %190 = math.tanh %189 : vector<2x32xf32>
    %191 = arith.mulf %186, %190 : vector<2x32xf32>
    %192 = vector.extract_strided_slice %14 {offsets = [12, 0], sizes = [2, 128], strides = [1, 1]} : vector<16x128xf32> to vector<2x128xf32>
    %193 = arith.truncf %191 : vector<2x32xf32> to vector<2x32xbf16>
    %cst_32 = arith.constant dense<0.000000e+00> : vector<2x128xf32>
    %194 = tpu.matmul %193, %15, %cst_32 {dimension_numbers = #tpu.dot_dimension_numbers<[1], [0], [0], [1], [0, 0, 1, 1], [], []>} : vector<2x32xbf16>, vector<32x128xbf16>, vector<2x128xf32> -> vector<2x128xf32>
    %195 = arith.addf %192, %194 : vector<2x128xf32>
    %196 = vector.extract_strided_slice %195 {offsets = [0, 0], sizes = [2, 32], strides = [1, 1]} : vector<2x128xf32> to vector<2x32xf32>
    %197 = arith.negf %196 : vector<2x32xf32>
    %198 = math.exp %197 : vector<2x32xf32>
    %cst_33 = arith.constant 1.000000e+00 : f32
    %199 = vector.broadcast %cst_33 : f32 to vector<2x32xf32>
    %200 = arith.addf %199, %198 : vector<2x32xf32>
    %201 = arith.divf %199, %200 : vector<2x32xf32>
    %202 = vector.extract_strided_slice %195 {offsets = [0, 32], sizes = [2, 32], strides = [1, 1]} : vector<2x128xf32> to vector<2x32xf32>
    %203 = arith.negf %202 : vector<2x32xf32>
    %204 = math.exp %203 : vector<2x32xf32>
    %cst_34 = arith.constant 1.000000e+00 : f32
    %205 = vector.broadcast %cst_34 : f32 to vector<2x32xf32>
    %206 = arith.addf %205, %204 : vector<2x32xf32>
    %207 = arith.divf %205, %206 : vector<2x32xf32>
    %208 = vector.extract_strided_slice %195 {offsets = [0, 64], sizes = [2, 32], strides = [1, 1]} : vector<2x128xf32> to vector<2x32xf32>
    %209 = math.tanh %208 : vector<2x32xf32>
    %210 = vector.extract_strided_slice %195 {offsets = [0, 96], sizes = [2, 32], strides = [1, 1]} : vector<2x128xf32> to vector<2x32xf32>
    %211 = arith.negf %210 : vector<2x32xf32>
    %212 = math.exp %211 : vector<2x32xf32>
    %cst_35 = arith.constant 1.000000e+00 : f32
    %213 = vector.broadcast %cst_35 : f32 to vector<2x32xf32>
    %214 = arith.addf %213, %212 : vector<2x32xf32>
    %215 = arith.divf %213, %214 : vector<2x32xf32>
    %216 = arith.mulf %207, %189 : vector<2x32xf32>
    %217 = arith.mulf %201, %209 : vector<2x32xf32>
    %218 = arith.addf %216, %217 : vector<2x32xf32>
    %219 = math.tanh %218 : vector<2x32xf32>
    %220 = arith.mulf %215, %219 : vector<2x32xf32>
    %221 = vector.extract_strided_slice %14 {offsets = [14, 0], sizes = [2, 128], strides = [1, 1]} : vector<16x128xf32> to vector<2x128xf32>
    %222 = arith.truncf %220 : vector<2x32xf32> to vector<2x32xbf16>
    %cst_36 = arith.constant dense<0.000000e+00> : vector<2x128xf32>
    %223 = tpu.matmul %222, %15, %cst_36 {dimension_numbers = #tpu.dot_dimension_numbers<[1], [0], [0], [1], [0, 0, 1, 1], [], []>} : vector<2x32xbf16>, vector<32x128xbf16>, vector<2x128xf32> -> vector<2x128xf32>
    %224 = arith.addf %221, %223 : vector<2x128xf32>
    %225 = vector.extract_strided_slice %224 {offsets = [0, 0], sizes = [2, 32], strides = [1, 1]} : vector<2x128xf32> to vector<2x32xf32>
    %226 = arith.negf %225 : vector<2x32xf32>
    %227 = math.exp %226 : vector<2x32xf32>
    %cst_37 = arith.constant 1.000000e+00 : f32
    %228 = vector.broadcast %cst_37 : f32 to vector<2x32xf32>
    %229 = arith.addf %228, %227 : vector<2x32xf32>
    %230 = arith.divf %228, %229 : vector<2x32xf32>
    %231 = vector.extract_strided_slice %224 {offsets = [0, 32], sizes = [2, 32], strides = [1, 1]} : vector<2x128xf32> to vector<2x32xf32>
    %232 = arith.negf %231 : vector<2x32xf32>
    %233 = math.exp %232 : vector<2x32xf32>
    %cst_38 = arith.constant 1.000000e+00 : f32
    %234 = vector.broadcast %cst_38 : f32 to vector<2x32xf32>
    %235 = arith.addf %234, %233 : vector<2x32xf32>
    %236 = arith.divf %234, %235 : vector<2x32xf32>
    %237 = vector.extract_strided_slice %224 {offsets = [0, 64], sizes = [2, 32], strides = [1, 1]} : vector<2x128xf32> to vector<2x32xf32>
    %238 = math.tanh %237 : vector<2x32xf32>
    %239 = vector.extract_strided_slice %224 {offsets = [0, 96], sizes = [2, 32], strides = [1, 1]} : vector<2x128xf32> to vector<2x32xf32>
    %240 = arith.negf %239 : vector<2x32xf32>
    %241 = math.exp %240 : vector<2x32xf32>
    %cst_39 = arith.constant 1.000000e+00 : f32
    %242 = vector.broadcast %cst_39 : f32 to vector<2x32xf32>
    %243 = arith.addf %242, %241 : vector<2x32xf32>
    %244 = arith.divf %242, %243 : vector<2x32xf32>
    %245 = arith.mulf %236, %218 : vector<2x32xf32>
    %246 = arith.mulf %230, %238 : vector<2x32xf32>
    %247 = arith.addf %245, %246 : vector<2x32xf32>
    %248 = math.tanh %247 : vector<2x32xf32>
    %249 = arith.mulf %244, %248 : vector<2x32xf32>
    %c0_40 = arith.constant 0 : index
    %c0_41 = arith.constant 0 : index
    %250 = vector.load %arg15[%c0_40, %c0_41] : memref<2x32xf32, #tpu.memory_space<vmem>>, vector<2x32xf32>
    tpu.vector_store %arg15[%c0_40, %c0_41], %249 {strides = array<i32>} : memref<2x32xf32, #tpu.memory_space<vmem>>, vector<2x32xf32>,
    %251 = tpu.iota {dimensions = array<i32: 0>} : vector<16x1xi32>
    %cst_42 = arith.constant 0.000000e+00 : f32
    %252 = vector.broadcast %cst_42 : f32 to vector<16x32xf32>
    %c0_i32 = arith.constant 0 : i32
    %253 = vector.broadcast %c0_i32 : i32 to vector<16x1xi32>
    %254 = arith.cmpi sge, %251, %253 : vector<16x1xi32>
    %c8_i32 = arith.constant 8 : i32
    %255 = vector.broadcast %c8_i32 : i32 to vector<16x1xi32>
    %256 = arith.cmpi slt, %251, %255 : vector<16x1xi32>
    %257 = arith.andi %254, %256 : vector<16x1xi1>
    %258 = arith.extui %257 : vector<16x1xi1> to vector<16x1xi32>
    %259 = arith.sitofp %258 : vector<16x1xi32> to vector<16x1xf32>
    %260 = vector.extract_strided_slice %249 {offsets = [0, 0], sizes = [1, 32], strides = [1, 1]} : vector<2x32xf32> to vector<1x32xf32>
    %261 = vector.broadcast %259 : vector<16x1xf32> to vector<16x32xf32>
    %262 = vector.broadcast %260 : vector<1x32xf32> to vector<16x32xf32>
    %263 = arith.mulf %261, %262 : vector<16x32xf32>
    %264 = arith.addf %252, %263 : vector<16x32xf32>
    %c8_i32_43 = arith.constant 8 : i32
    %265 = vector.broadcast %c8_i32_43 : i32 to vector<16x1xi32>
    %266 = arith.cmpi sge, %251, %265 : vector<16x1xi32>
    %c16_i32 = arith.constant 16 : i32
    %267 = vector.broadcast %c16_i32 : i32 to vector<16x1xi32>
    %268 = arith.cmpi slt, %251, %267 : vector<16x1xi32>
    %269 = arith.andi %266, %268 : vector<16x1xi1>
    %270 = arith.extui %269 : vector<16x1xi1> to vector<16x1xi32>
    %271 = arith.sitofp %270 : vector<16x1xi32> to vector<16x1xf32>
    %272 = vector.extract_strided_slice %249 {offsets = [1, 0], sizes = [1, 32], strides = [1, 1]} : vector<2x32xf32> to vector<1x32xf32>
    %273 = vector.broadcast %271 : vector<16x1xf32> to vector<16x32xf32>
    %274 = vector.broadcast %272 : vector<1x32xf32> to vector<16x32xf32>
    %275 = arith.mulf %273, %274 : vector<16x32xf32>
    %276 = arith.addf %264, %275 : vector<16x32xf32>
    %277 = arith.truncf %276 : vector<16x32xf32> to vector<16x32xbf16>
    %c0_44 = arith.constant 0 : index
    %c0_45 = arith.constant 0 : index
    %278 = vector.load %arg1[%c0_44, %c0_45] : memref<16x16xf32, #tpu.memory_space<vmem>>, vector<16x16xf32>
    %279 = tpu.iota {dimensions = array<i32: 1>} : vector<1x32xi32>
    %c0_i32_46 = arith.constant 0 : i32
    %280 = vector.broadcast %c0_i32_46 : i32 to vector<1x32xi32>
    %281 = arith.cmpi sge, %279, %280 : vector<1x32xi32>
    %c8_i32_47 = arith.constant 8 : i32
    %282 = vector.broadcast %c8_i32_47 : i32 to vector<1x32xi32>
    %283 = arith.cmpi slt, %279, %282 : vector<1x32xi32>
    %284 = arith.andi %281, %283 : vector<1x32xi1>
    %285 = arith.extui %284 : vector<1x32xi1> to vector<1x32xi32>
    %286 = arith.sitofp %285 : vector<1x32xi32> to vector<1x32xf32>
    %c8_i32_48 = arith.constant 8 : i32
    %287 = vector.broadcast %c8_i32_48 : i32 to vector<1x32xi32>
    %288 = arith.cmpi sge, %279, %287 : vector<1x32xi32>
    %c16_i32_49 = arith.constant 16 : i32
    %289 = vector.broadcast %c16_i32_49 : i32 to vector<1x32xi32>
    %290 = arith.cmpi slt, %279, %289 : vector<1x32xi32>
    %291 = arith.andi %288, %290 : vector<1x32xi1>
    %292 = arith.extui %291 : vector<1x32xi1> to vector<1x32xi32>
    %293 = arith.sitofp %292 : vector<1x32xi32> to vector<1x32xf32>
    %c16_i32_50 = arith.constant 16 : i32
    %294 = vector.broadcast %c16_i32_50 : i32 to vector<1x32xi32>
    %295 = arith.cmpi sge, %279, %294 : vector<1x32xi32>
    %c24_i32 = arith.constant 24 : i32
    %296 = vector.broadcast %c24_i32 : i32 to vector<1x32xi32>
    %297 = arith.cmpi slt, %279, %296 : vector<1x32xi32>
    %298 = arith.andi %295, %297 : vector<1x32xi1>
    %299 = arith.extui %298 : vector<1x32xi1> to vector<1x32xi32>
    %300 = arith.sitofp %299 : vector<1x32xi32> to vector<1x32xf32>
    %c24_i32_51 = arith.constant 24 : i32
    %301 = vector.broadcast %c24_i32_51 : i32 to vector<1x32xi32>
    %302 = arith.cmpi sge, %279, %301 : vector<1x32xi32>
    %c32_i32 = arith.constant 32 : i32
    %303 = vector.broadcast %c32_i32 : i32 to vector<1x32xi32>
    %304 = arith.cmpi slt, %279, %303 : vector<1x32xi32>
    %305 = arith.andi %302, %304 : vector<1x32xi1>
    %306 = arith.extui %305 : vector<1x32xi1> to vector<1x32xi32>
    %307 = arith.sitofp %306 : vector<1x32xi32> to vector<1x32xf32>
    %c0_52 = arith.constant 0 : index
    %c0_53 = arith.constant 0 : index
    %308 = vector.load %arg0[%c0_52, %c0_53] : memref<16x32xf32, #tpu.memory_space<vmem>>, vector<16x32xf32>
    %c0_54 = arith.constant 0 : index
    %c0_55 = arith.constant 0 : index
    %c0_56 = arith.constant 0 : index
    %309 = vector.load %arg10[%c0_54, %c0_55, %c0_56] : memref<2x12x32xf32, #tpu.memory_space<vmem>>, vector<1x12x32xf32>
    %310 = vector.shape_cast %309 : vector<1x12x32xf32> to vector<12x32xf32>
    %311 = arith.truncf %308 : vector<16x32xf32> to vector<16x32xbf16>
    %c0_57 = arith.constant 0 : index
    %c0_58 = arith.constant 0 : index
    %c0_59 = arith.constant 0 : index
    %312 = vector.load %arg5[%c0_57, %c0_58, %c0_59] : memref<2x32x96xbf16, #tpu.memory_space<vmem>>, vector<1x32x96xbf16>
    %313 = vector.shape_cast %312 : vector<1x32x96xbf16> to vector<32x96xbf16>
    %cst_60 = arith.constant dense<0.000000e+00> : vector<16x96xf32>
    %314 = tpu.matmul %311, %313, %cst_60 {dimension_numbers = #tpu.dot_dimension_numbers<[1], [0], [0], [1], [0, 0, 1, 1], [], []>} : vector<16x32xbf16>, vector<32x96xbf16>, vector<16x96xf32> -> vector<16x96xf32>
    %315 = vector.extract_strided_slice %314 {offsets = [0, 0], sizes = [16, 32], strides = [1, 1]} : vector<16x96xf32> to vector<16x32xf32>
    %316 = vector.extract_strided_slice %310 {offsets = [0, 0], sizes = [1, 32], strides = [1, 1]} : vector<12x32xf32> to vector<1x32xf32>
    %317 = vector.broadcast %316 : vector<1x32xf32> to vector<16x32xf32>
    %318 = arith.addf %315, %317 : vector<16x32xf32>
    %cst_61 = arith.constant 0.353553385 : f32
    %319 = vector.broadcast %cst_61 : f32 to vector<16x32xf32>
    %320 = arith.mulf %318, %319 : vector<16x32xf32>
    %321 = vector.extract_strided_slice %314 {offsets = [0, 32], sizes = [16, 32], strides = [1, 1]} : vector<16x96xf32> to vector<16x32xf32>
    %322 = vector.extract_strided_slice %310 {offsets = [1, 0], sizes = [1, 32], strides = [1, 1]} : vector<12x32xf32> to vector<1x32xf32>
    %323 = vector.broadcast %322 : vector<1x32xf32> to vector<16x32xf32>
    %324 = arith.addf %321, %323 : vector<16x32xf32>
    %325 = arith.truncf %324 : vector<16x32xf32> to vector<16x32xbf16>
    %326 = vector.extract_strided_slice %314 {offsets = [0, 64], sizes = [16, 32], strides = [1, 1]} : vector<16x96xf32> to vector<16x32xf32>
    %327 = vector.extract_strided_slice %310 {offsets = [2, 0], sizes = [1, 32], strides = [1, 1]} : vector<12x32xf32> to vector<1x32xf32>
    %328 = vector.broadcast %327 : vector<1x32xf32> to vector<16x32xf32>
    %329 = arith.addf %326, %328 : vector<16x32xf32>
    %cst_62 = arith.constant 0.000000e+00 : f32
    %330 = vector.broadcast %cst_62 : f32 to vector<16x32xf32>
    %331 = vector.broadcast %286 : vector<1x32xf32> to vector<16x32xf32>
    %332 = arith.mulf %320, %331 : vector<16x32xf32>
    %333 = arith.truncf %332 : vector<16x32xf32> to vector<16x32xbf16>
    %cst_63 = arith.constant dense<0.000000e+00> : vector<16x16xf32>
    %334 = tpu.matmul %333, %325, %cst_63 {dimension_numbers = #tpu.dot_dimension_numbers<[1], [1], [0], [0], [0, 0, 1, 0], [], []>} : vector<16x32xbf16>, vector<16x32xbf16>, vector<16x16xf32> -> vector<16x16xf32>
    %335 = arith.addf %334, %278 : vector<16x16xf32>
    %cst_64 = arith.constant dense<0xFF800000> : vector<16xf32>
    %336 = vector.multi_reduction <maximumf>, %335, %cst_64 [1] : vector<16x16xf32> to vector<16xf32>
    %337 = vector.shape_cast %336 : vector<16xf32> to vector<16x1xf32>
    %338 = vector.broadcast %337 : vector<16x1xf32> to vector<16x16xf32>
    %339 = arith.subf %335, %338 : vector<16x16xf32>
    %340 = math.exp %339 : vector<16x16xf32>
    %cst_65 = arith.constant dense<0.000000e+00> : vector<16xf32>
    %341 = vector.multi_reduction <add>, %340, %cst_65 [1] : vector<16x16xf32> to vector<16xf32>
    %342 = vector.shape_cast %341 : vector<16xf32> to vector<16x1xf32>
    %343 = tpu.reciprocal %342 {approx = true} : vector<16x1xf32> -> vector<16x1xf32>
    %344 = vector.broadcast %343 : vector<16x1xf32> to vector<16x16xf32>
    %345 = arith.mulf %340, %344 : vector<16x16xf32>
    %346 = arith.truncf %345 : vector<16x16xf32> to vector<16x16xbf16>
    %347 = vector.broadcast %286 : vector<1x32xf32> to vector<16x32xf32>
    %348 = arith.mulf %329, %347 : vector<16x32xf32>
    %349 = arith.truncf %348 : vector<16x32xf32> to vector<16x32xbf16>
    %cst_66 = arith.constant dense<0.000000e+00> : vector<16x32xf32>
    %350 = tpu.matmul %346, %349, %cst_66 {dimension_numbers = #tpu.dot_dimension_numbers<[1], [0], [0], [1], [0, 0, 1, 1], [], []>} : vector<16x16xbf16>, vector<16x32xbf16>, vector<16x32xf32> -> vector<16x32xf32>
    %351 = arith.addf %330, %350 : vector<16x32xf32>
    %352 = vector.broadcast %293 : vector<1x32xf32> to vector<16x32xf32>
    %353 = arith.mulf %320, %352 : vector<16x32xf32>
    %354 = arith.truncf %353 : vector<16x32xf32> to vector<16x32xbf16>
    %cst_67 = arith.constant dense<0.000000e+00> : vector<16x16xf32>
    %355 = tpu.matmul %354, %325, %cst_67 {dimension_numbers = #tpu.dot_dimension_numbers<[1], [1], [0], [0], [0, 0, 1, 0], [], []>} : vector<16x32xbf16>, vector<16x32xbf16>, vector<16x16xf32> -> vector<16x16xf32>
    %356 = arith.addf %355, %278 : vector<16x16xf32>
    %cst_68 = arith.constant dense<0xFF800000> : vector<16xf32>
    %357 = vector.multi_reduction <maximumf>, %356, %cst_68 [1] : vector<16x16xf32> to vector<16xf32>
    %358 = vector.shape_cast %357 : vector<16xf32> to vector<16x1xf32>
    %359 = vector.broadcast %358 : vector<16x1xf32> to vector<16x16xf32>
    %360 = arith.subf %356, %359 : vector<16x16xf32>
    %361 = math.exp %360 : vector<16x16xf32>
    %cst_69 = arith.constant dense<0.000000e+00> : vector<16xf32>
    %362 = vector.multi_reduction <add>, %361, %cst_69 [1] : vector<16x16xf32> to vector<16xf32>
    %363 = vector.shape_cast %362 : vector<16xf32> to vector<16x1xf32>
    %364 = tpu.reciprocal %363 {approx = true} : vector<16x1xf32> -> vector<16x1xf32>
    %365 = vector.broadcast %364 : vector<16x1xf32> to vector<16x16xf32>
    %366 = arith.mulf %361, %365 : vector<16x16xf32>
    %367 = arith.truncf %366 : vector<16x16xf32> to vector<16x16xbf16>
    %368 = vector.broadcast %293 : vector<1x32xf32> to vector<16x32xf32>
    %369 = arith.mulf %329, %368 : vector<16x32xf32>
    %370 = arith.truncf %369 : vector<16x32xf32> to vector<16x32xbf16>
    %cst_70 = arith.constant dense<0.000000e+00> : vector<16x32xf32>
    %371 = tpu.matmul %367, %370, %cst_70 {dimension_numbers = #tpu.dot_dimension_numbers<[1], [0], [0], [1], [0, 0, 1, 1], [], []>} : vector<16x16xbf16>, vector<16x32xbf16>, vector<16x32xf32> -> vector<16x32xf32>
    %372 = arith.addf %351, %371 : vector<16x32xf32>
    %373 = vector.broadcast %300 : vector<1x32xf32> to vector<16x32xf32>
    %374 = arith.mulf %320, %373 : vector<16x32xf32>
    %375 = arith.truncf %374 : vector<16x32xf32> to vector<16x32xbf16>
    %cst_71 = arith.constant dense<0.000000e+00> : vector<16x16xf32>
    %376 = tpu.matmul %375, %325, %cst_71 {dimension_numbers = #tpu.dot_dimension_numbers<[1], [1], [0], [0], [0, 0, 1, 0], [], []>} : vector<16x32xbf16>, vector<16x32xbf16>, vector<16x16xf32> -> vector<16x16xf32>
    %377 = arith.addf %376, %278 : vector<16x16xf32>
    %cst_72 = arith.constant dense<0xFF800000> : vector<16xf32>
    %378 = vector.multi_reduction <maximumf>, %377, %cst_72 [1] : vector<16x16xf32> to vector<16xf32>
    %379 = vector.shape_cast %378 : vector<16xf32> to vector<16x1xf32>
    %380 = vector.broadcast %379 : vector<16x1xf32> to vector<16x16xf32>
    %381 = arith.subf %377, %380 : vector<16x16xf32>
    %382 = math.exp %381 : vector<16x16xf32>
    %cst_73 = arith.constant dense<0.000000e+00> : vector<16xf32>
    %383 = vector.multi_reduction <add>, %382, %cst_73 [1] : vector<16x16xf32> to vector<16xf32>
    %384 = vector.shape_cast %383 : vector<16xf32> to vector<16x1xf32>
    %385 = tpu.reciprocal %384 {approx = true} : vector<16x1xf32> -> vector<16x1xf32>
    %386 = vector.broadcast %385 : vector<16x1xf32> to vector<16x16xf32>
    %387 = arith.mulf %382, %386 : vector<16x16xf32>
    %388 = arith.truncf %387 : vector<16x16xf32> to vector<16x16xbf16>
    %389 = vector.broadcast %300 : vector<1x32xf32> to vector<16x32xf32>
    %390 = arith.mulf %329, %389 : vector<16x32xf32>
    %391 = arith.truncf %390 : vector<16x32xf32> to vector<16x32xbf16>
    %cst_74 = arith.constant dense<0.000000e+00> : vector<16x32xf32>
    %392 = tpu.matmul %388, %391, %cst_74 {dimension_numbers = #tpu.dot_dimension_numbers<[1], [0], [0], [1], [0, 0, 1, 1], [], []>} : vector<16x16xbf16>, vector<16x32xbf16>, vector<16x32xf32> -> vector<16x32xf32>
    %393 = arith.addf %372, %392 : vector<16x32xf32>
    %394 = vector.broadcast %307 : vector<1x32xf32> to vector<16x32xf32>
    %395 = arith.mulf %320, %394 : vector<16x32xf32>
    %396 = arith.truncf %395 : vector<16x32xf32> to vector<16x32xbf16>
    %cst_75 = arith.constant dense<0.000000e+00> : vector<16x16xf32>
    %397 = tpu.matmul %396, %325, %cst_75 {dimension_numbers = #tpu.dot_dimension_numbers<[1], [1], [0], [0], [0, 0, 1, 0], [], []>} : vector<16x32xbf16>, vector<16x32xbf16>, vector<16x16xf32> -> vector<16x16xf32>
    %398 = arith.addf %397, %278 : vector<16x16xf32>
    %cst_76 = arith.constant dense<0xFF800000> : vector<16xf32>
    %399 = vector.multi_reduction <maximumf>, %398, %cst_76 [1] : vector<16x16xf32> to vector<16xf32>
    %400 = vector.shape_cast %399 : vector<16xf32> to vector<16x1xf32>
    %401 = vector.broadcast %400 : vector<16x1xf32> to vector<16x16xf32>
    %402 = arith.subf %398, %401 : vector<16x16xf32>
    %403 = math.exp %402 : vector<16x16xf32>
    %cst_77 = arith.constant dense<0.000000e+00> : vector<16xf32>
    %404 = vector.multi_reduction <add>, %403, %cst_77 [1] : vector<16x16xf32> to vector<16xf32>
    %405 = vector.shape_cast %404 : vector<16xf32> to vector<16x1xf32>
    %406 = tpu.reciprocal %405 {approx = true} : vector<16x1xf32> -> vector<16x1xf32>
    %407 = vector.broadcast %406 : vector<16x1xf32> to vector<16x16xf32>
    %408 = arith.mulf %403, %407 : vector<16x16xf32>
    %409 = arith.truncf %408 : vector<16x16xf32> to vector<16x16xbf16>
    %410 = vector.broadcast %307 : vector<1x32xf32> to vector<16x32xf32>
    %411 = arith.mulf %329, %410 : vector<16x32xf32>
    %412 = arith.truncf %411 : vector<16x32xf32> to vector<16x32xbf16>
    %cst_78 = arith.constant dense<0.000000e+00> : vector<16x32xf32>
    %413 = tpu.matmul %409, %412, %cst_78 {dimension_numbers = #tpu.dot_dimension_numbers<[1], [0], [0], [1], [0, 0, 1, 1], [], []>} : vector<16x16xbf16>, vector<16x32xbf16>, vector<16x32xf32> -> vector<16x32xf32>
    %414 = arith.addf %393, %413 : vector<16x32xf32>
    %415 = arith.truncf %414 : vector<16x32xf32> to vector<16x32xbf16>
    %c0_79 = arith.constant 0 : index
    %c0_80 = arith.constant 0 : index
    %c0_81 = arith.constant 0 : index
    %416 = vector.load %arg6[%c0_79, %c0_80, %c0_81] : memref<2x32x32xbf16, #tpu.memory_space<vmem>>, vector<1x32x32xbf16>
    %417 = vector.shape_cast %416 : vector<1x32x32xbf16> to vector<32x32xbf16>
    %cst_82 = arith.constant dense<0.000000e+00> : vector<16x32xf32>
    %418 = tpu.matmul %415, %417, %cst_82 {dimension_numbers = #tpu.dot_dimension_numbers<[1], [0], [0], [1], [0, 0, 1, 1], [], []>} : vector<16x32xbf16>, vector<32x32xbf16>, vector<16x32xf32> -> vector<16x32xf32>
    %419 = vector.extract_strided_slice %310 {offsets = [3, 0], sizes = [1, 32], strides = [1, 1]} : vector<12x32xf32> to vector<1x32xf32>
    %420 = vector.broadcast %419 : vector<1x32xf32> to vector<16x32xf32>
    %421 = arith.addf %418, %420 : vector<16x32xf32>
    %422 = arith.addf %308, %421 : vector<16x32xf32>
    %423 = vector.extract_strided_slice %310 {offsets = [6, 0], sizes = [1, 32], strides = [1, 1]} : vector<12x32xf32> to vector<1x32xf32>
    %424 = vector.extract_strided_slice %310 {offsets = [9, 0], sizes = [1, 32], strides = [1, 1]} : vector<12x32xf32> to vector<1x32xf32>
    %cst_83 = arith.constant dense<0.000000e+00> : vector<16xf32>
    %425 = vector.multi_reduction <add>, %422, %cst_83 [1] : vector<16x32xf32> to vector<16xf32>
    %426 = vector.shape_cast %425 : vector<16xf32> to vector<16x1xf32>
    %cst_84 = arith.constant 3.200000e+01 : f32
    %427 = vector.broadcast %cst_84 : f32 to vector<16x1xf32>
    %428 = arith.divf %426, %427 : vector<16x1xf32>
    %429 = vector.broadcast %428 : vector<16x1xf32> to vector<16x32xf32>
    %430 = arith.subf %422, %429 : vector<16x32xf32>
    %431 = arith.mulf %430, %430 : vector<16x32xf32>
    %cst_85 = arith.constant dense<0.000000e+00> : vector<16xf32>
    %432 = vector.multi_reduction <add>, %431, %cst_85 [1] : vector<16x32xf32> to vector<16xf32>
    %433 = vector.shape_cast %432 : vector<16xf32> to vector<16x1xf32>
    %cst_86 = arith.constant 3.200000e+01 : f32
    %434 = vector.broadcast %cst_86 : f32 to vector<16x1xf32>
    %435 = arith.divf %433, %434 : vector<16x1xf32>
    %436 = vector.broadcast %428 : vector<16x1xf32> to vector<16x32xf32>
    %437 = arith.subf %422, %436 : vector<16x32xf32>
    %cst_87 = arith.constant 9.99999974E-6 : f32
    %438 = vector.broadcast %cst_87 : f32 to vector<16x1xf32>
    %439 = arith.addf %435, %438 : vector<16x1xf32>
    %440 = math.rsqrt %439 : vector<16x1xf32>
    %441 = vector.broadcast %440 : vector<16x1xf32> to vector<16x32xf32>
    %442 = arith.mulf %437, %441 : vector<16x32xf32>
    %443 = vector.broadcast %423 : vector<1x32xf32> to vector<16x32xf32>
    %444 = arith.mulf %442, %443 : vector<16x32xf32>
    %445 = vector.broadcast %424 : vector<1x32xf32> to vector<16x32xf32>
    %446 = arith.addf %444, %445 : vector<16x32xf32>
    %c0_88 = arith.constant 0 : index
    %c0_89 = arith.constant 0 : index
    %c0_90 = arith.constant 0 : index
    %447 = vector.load %arg7[%c0_88, %c0_89, %c0_90] : memref<2x32x32xbf16, #tpu.memory_space<vmem>>, vector<1x32x32xbf16>
    %448 = vector.shape_cast %447 : vector<1x32x32xbf16> to vector<32x32xbf16>
    %cst_91 = arith.constant dense<0.000000e+00> : vector<16x32xf32>
    %449 = tpu.matmul %277, %448, %cst_91 {dimension_numbers = #tpu.dot_dimension_numbers<[1], [0], [0], [1], [0, 0, 1, 1], [], []>} : vector<16x32xbf16>, vector<32x32xbf16>, vector<16x32xf32> -> vector<16x32xf32>
    %450 = vector.extract_strided_slice %310 {offsets = [4, 0], sizes = [1, 32], strides = [1, 1]} : vector<12x32xf32> to vector<1x32xf32>
    %451 = vector.broadcast %450 : vector<1x32xf32> to vector<16x32xf32>
    %452 = arith.addf %449, %451 : vector<16x32xf32>
    %453 = arith.addf %446, %452 : vector<16x32xf32>
    %454 = vector.extract_strided_slice %310 {offsets = [7, 0], sizes = [1, 32], strides = [1, 1]} : vector<12x32xf32> to vector<1x32xf32>
    %455 = vector.extract_strided_slice %310 {offsets = [10, 0], sizes = [1, 32], strides = [1, 1]} : vector<12x32xf32> to vector<1x32xf32>
    %cst_92 = arith.constant dense<0.000000e+00> : vector<16xf32>
    %456 = vector.multi_reduction <add>, %453, %cst_92 [1] : vector<16x32xf32> to vector<16xf32>
    %457 = vector.shape_cast %456 : vector<16xf32> to vector<16x1xf32>
    %cst_93 = arith.constant 3.200000e+01 : f32
    %458 = vector.broadcast %cst_93 : f32 to vector<16x1xf32>
    %459 = arith.divf %457, %458 : vector<16x1xf32>
    %460 = vector.broadcast %459 : vector<16x1xf32> to vector<16x32xf32>
    %461 = arith.subf %453, %460 : vector<16x32xf32>
    %462 = arith.mulf %461, %461 : vector<16x32xf32>
    %cst_94 = arith.constant dense<0.000000e+00> : vector<16xf32>
    %463 = vector.multi_reduction <add>, %462, %cst_94 [1] : vector<16x32xf32> to vector<16xf32>
    %464 = vector.shape_cast %463 : vector<16xf32> to vector<16x1xf32>
    %cst_95 = arith.constant 3.200000e+01 : f32
    %465 = vector.broadcast %cst_95 : f32 to vector<16x1xf32>
    %466 = arith.divf %464, %465 : vector<16x1xf32>
    %467 = vector.broadcast %459 : vector<16x1xf32> to vector<16x32xf32>
    %468 = arith.subf %453, %467 : vector<16x32xf32>
    %cst_96 = arith.constant 9.99999974E-6 : f32
    %469 = vector.broadcast %cst_96 : f32 to vector<16x1xf32>
    %470 = arith.addf %466, %469 : vector<16x1xf32>
    %471 = math.rsqrt %470 : vector<16x1xf32>
    %472 = vector.broadcast %471 : vector<16x1xf32> to vector<16x32xf32>
    %473 = arith.mulf %468, %472 : vector<16x32xf32>
    %474 = vector.broadcast %454 : vector<1x32xf32> to vector<16x32xf32>
    %475 = arith.mulf %473, %474 : vector<16x32xf32>
    %476 = vector.broadcast %455 : vector<1x32xf32> to vector<16x32xf32>
    %477 = arith.addf %475, %476 : vector<16x32xf32>
    %478 = arith.truncf %477 : vector<16x32xf32> to vector<16x32xbf16>
    %c0_97 = arith.constant 0 : index
    %c0_98 = arith.constant 0 : index
    %c0_99 = arith.constant 0 : index
    %479 = vector.load %arg8[%c0_97, %c0_98, %c0_99] : memref<2x32x64xbf16, #tpu.memory_space<vmem>>, vector<1x32x64xbf16>
    %480 = vector.shape_cast %479 : vector<1x32x64xbf16> to vector<32x64xbf16>
    %cst_100 = arith.constant dense<0.000000e+00> : vector<16x64xf32>
    %481 = tpu.matmul %478, %480, %cst_100 {dimension_numbers = #tpu.dot_dimension_numbers<[1], [0], [0], [1], [0, 0, 1, 1], [], []>} : vector<16x32xbf16>, vector<32x64xbf16>, vector<16x64xf32> -> vector<16x64xf32>
    %c0_101 = arith.constant 0 : index
    %c0_102 = arith.constant 0 : index
    %c0_103 = arith.constant 0 : index
    %482 = vector.load %arg11[%c0_101, %c0_102, %c0_103] : memref<2x1x64xf32, #tpu.memory_space<vmem>>, vector<1x1x64xf32>
    %483 = vector.shape_cast %482 : vector<1x1x64xf32> to vector<1x64xf32>
    %484 = vector.broadcast %483 : vector<1x64xf32> to vector<16x64xf32>
    %485 = arith.addf %481, %484 : vector<16x64xf32>
    %cst_104 = arith.constant 0.000000e+00 : f32
    %486 = vector.broadcast %cst_104 : f32 to vector<16x64xf32>
    %487 = arith.maximumf %485, %486 : vector<16x64xf32>
    %488 = arith.truncf %487 : vector<16x64xf32> to vector<16x64xbf16>
    %c0_105 = arith.constant 0 : index
    %c0_106 = arith.constant 0 : index
    %c0_107 = arith.constant 0 : index
    %489 = vector.load %arg9[%c0_105, %c0_106, %c0_107] : memref<2x64x32xbf16, #tpu.memory_space<vmem>>, vector<1x64x32xbf16>
    %490 = vector.shape_cast %489 : vector<1x64x32xbf16> to vector<64x32xbf16>
    %cst_108 = arith.constant dense<0.000000e+00> : vector<16x32xf32>
    %491 = tpu.matmul %488, %490, %cst_108 {dimension_numbers = #tpu.dot_dimension_numbers<[1], [0], [0], [1], [0, 0, 1, 1], [], []>} : vector<16x64xbf16>, vector<64x32xbf16>, vector<16x32xf32> -> vector<16x32xf32>
    %492 = vector.extract_strided_slice %310 {offsets = [5, 0], sizes = [1, 32], strides = [1, 1]} : vector<12x32xf32> to vector<1x32xf32>
    %493 = vector.broadcast %492 : vector<1x32xf32> to vector<16x32xf32>
    %494 = arith.addf %491, %493 : vector<16x32xf32>
    %495 = arith.addf %477, %494 : vector<16x32xf32>
    %496 = vector.extract_strided_slice %310 {offsets = [8, 0], sizes = [1, 32], strides = [1, 1]} : vector<12x32xf32> to vector<1x32xf32>
    %497 = vector.extract_strided_slice %310 {offsets = [11, 0], sizes = [1, 32], strides = [1, 1]} : vector<12x32xf32> to vector<1x32xf32>
    %cst_109 = arith.constant dense<0.000000e+00> : vector<16xf32>
    %498 = vector.multi_reduction <add>, %495, %cst_109 [1] : vector<16x32xf32> to vector<16xf32>
    %499 = vector.shape_cast %498 : vector<16xf32> to vector<16x1xf32>
    %cst_110 = arith.constant 3.200000e+01 : f32
    %500 = vector.broadcast %cst_110 : f32 to vector<16x1xf32>
    %501 = arith.divf %499, %500 : vector<16x1xf32>
    %502 = vector.broadcast %501 : vector<16x1xf32> to vector<16x32xf32>
    %503 = arith.subf %495, %502 : vector<16x32xf32>
    %504 = arith.mulf %503, %503 : vector<16x32xf32>
    %cst_111 = arith.constant dense<0.000000e+00> : vector<16xf32>
    %505 = vector.multi_reduction <add>, %504, %cst_111 [1] : vector<16x32xf32> to vector<16xf32>
    %506 = vector.shape_cast %505 : vector<16xf32> to vector<16x1xf32>
    %cst_112 = arith.constant 3.200000e+01 : f32
    %507 = vector.broadcast %cst_112 : f32 to vector<16x1xf32>
    %508 = arith.divf %506, %507 : vector<16x1xf32>
    %509 = vector.broadcast %501 : vector<16x1xf32> to vector<16x32xf32>
    %510 = arith.subf %495, %509 : vector<16x32xf32>
    %cst_113 = arith.constant 9.99999974E-6 : f32
    %511 = vector.broadcast %cst_113 : f32 to vector<16x1xf32>
    %512 = arith.addf %508, %511 : vector<16x1xf32>
    %513 = math.rsqrt %512 : vector<16x1xf32>
    %514 = vector.broadcast %513 : vector<16x1xf32> to vector<16x32xf32>
    %515 = arith.mulf %510, %514 : vector<16x32xf32>
    %516 = vector.broadcast %496 : vector<1x32xf32> to vector<16x32xf32>
    %517 = arith.mulf %515, %516 : vector<16x32xf32>
    %518 = vector.broadcast %497 : vector<1x32xf32> to vector<16x32xf32>
    %519 = arith.addf %517, %518 : vector<16x32xf32>
    %c1_114 = arith.constant 1 : index
    %c0_115 = arith.constant 0 : index
    %c0_116 = arith.constant 0 : index
    %520 = vector.load %arg10[%c1_114, %c0_115, %c0_116] : memref<2x12x32xf32, #tpu.memory_space<vmem>>, vector<1x12x32xf32>
    %521 = vector.shape_cast %520 : vector<1x12x32xf32> to vector<12x32xf32>
    %522 = arith.truncf %519 : vector<16x32xf32> to vector<16x32xbf16>
    %c1_117 = arith.constant 1 : index
    %c0_118 = arith.constant 0 : index
    %c0_119 = arith.constant 0 : index
    %523 = vector.load %arg5[%c1_117, %c0_118, %c0_119] : memref<2x32x96xbf16, #tpu.memory_space<vmem>>, vector<1x32x96xbf16>
    %524 = vector.shape_cast %523 : vector<1x32x96xbf16> to vector<32x96xbf16>
    %cst_120 = arith.constant dense<0.000000e+00> : vector<16x96xf32>
    %525 = tpu.matmul %522, %524, %cst_120 {dimension_numbers = #tpu.dot_dimension_numbers<[1], [0], [0], [1], [0, 0, 1, 1], [], []>} : vector<16x32xbf16>, vector<32x96xbf16>, vector<16x96xf32> -> vector<16x96xf32>
    %526 = vector.extract_strided_slice %525 {offsets = [0, 0], sizes = [16, 32], strides = [1, 1]} : vector<16x96xf32> to vector<16x32xf32>
    %527 = vector.extract_strided_slice %521 {offsets = [0, 0], sizes = [1, 32], strides = [1, 1]} : vector<12x32xf32> to vector<1x32xf32>
    %528 = vector.broadcast %527 : vector<1x32xf32> to vector<16x32xf32>
    %529 = arith.addf %526, %528 : vector<16x32xf32>
    %cst_121 = arith.constant 0.353553385 : f32
    %530 = vector.broadcast %cst_121 : f32 to vector<16x32xf32>
    %531 = arith.mulf %529, %530 : vector<16x32xf32>
    %532 = vector.extract_strided_slice %525 {offsets = [0, 32], sizes = [16, 32], strides = [1, 1]} : vector<16x96xf32> to vector<16x32xf32>
    %533 = vector.extract_strided_slice %521 {offsets = [1, 0], sizes = [1, 32], strides = [1, 1]} : vector<12x32xf32> to vector<1x32xf32>
    %534 = vector.broadcast %533 : vector<1x32xf32> to vector<16x32xf32>
    %535 = arith.addf %532, %534 : vector<16x32xf32>
    %536 = arith.truncf %535 : vector<16x32xf32> to vector<16x32xbf16>
    %537 = vector.extract_strided_slice %525 {offsets = [0, 64], sizes = [16, 32], strides = [1, 1]} : vector<16x96xf32> to vector<16x32xf32>
    %538 = vector.extract_strided_slice %521 {offsets = [2, 0], sizes = [1, 32], strides = [1, 1]} : vector<12x32xf32> to vector<1x32xf32>
    %539 = vector.broadcast %538 : vector<1x32xf32> to vector<16x32xf32>
    %540 = arith.addf %537, %539 : vector<16x32xf32>
    %cst_122 = arith.constant 0.000000e+00 : f32
    %541 = vector.broadcast %cst_122 : f32 to vector<16x32xf32>
    %542 = vector.broadcast %286 : vector<1x32xf32> to vector<16x32xf32>
    %543 = arith.mulf %531, %542 : vector<16x32xf32>
    %544 = arith.truncf %543 : vector<16x32xf32> to vector<16x32xbf16>
    %cst_123 = arith.constant dense<0.000000e+00> : vector<16x16xf32>
    %545 = tpu.matmul %544, %536, %cst_123 {dimension_numbers = #tpu.dot_dimension_numbers<[1], [1], [0], [0], [0, 0, 1, 0], [], []>} : vector<16x32xbf16>, vector<16x32xbf16>, vector<16x16xf32> -> vector<16x16xf32>
    %546 = arith.addf %545, %278 : vector<16x16xf32>
    %cst_124 = arith.constant dense<0xFF800000> : vector<16xf32>
    %547 = vector.multi_reduction <maximumf>, %546, %cst_124 [1] : vector<16x16xf32> to vector<16xf32>
    %548 = vector.shape_cast %547 : vector<16xf32> to vector<16x1xf32>
    %549 = vector.broadcast %548 : vector<16x1xf32> to vector<16x16xf32>
    %550 = arith.subf %546, %549 : vector<16x16xf32>
    %551 = math.exp %550 : vector<16x16xf32>
    %cst_125 = arith.constant dense<0.000000e+00> : vector<16xf32>
    %552 = vector.multi_reduction <add>, %551, %cst_125 [1] : vector<16x16xf32> to vector<16xf32>
    %553 = vector.shape_cast %552 : vector<16xf32> to vector<16x1xf32>
    %554 = tpu.reciprocal %553 {approx = true} : vector<16x1xf32> -> vector<16x1xf32>
    %555 = vector.broadcast %554 : vector<16x1xf32> to vector<16x16xf32>
    %556 = arith.mulf %551, %555 : vector<16x16xf32>
    %557 = arith.truncf %556 : vector<16x16xf32> to vector<16x16xbf16>
    %558 = vector.broadcast %286 : vector<1x32xf32> to vector<16x32xf32>
    %559 = arith.mulf %540, %558 : vector<16x32xf32>
    %560 = arith.truncf %559 : vector<16x32xf32> to vector<16x32xbf16>
    %cst_126 = arith.constant dense<0.000000e+00> : vector<16x32xf32>
    %561 = tpu.matmul %557, %560, %cst_126 {dimension_numbers = #tpu.dot_dimension_numbers<[1], [0], [0], [1], [0, 0, 1, 1], [], []>} : vector<16x16xbf16>, vector<16x32xbf16>, vector<16x32xf32> -> vector<16x32xf32>
    %562 = arith.addf %541, %561 : vector<16x32xf32>
    %563 = vector.broadcast %293 : vector<1x32xf32> to vector<16x32xf32>
    %564 = arith.mulf %531, %563 : vector<16x32xf32>
    %565 = arith.truncf %564 : vector<16x32xf32> to vector<16x32xbf16>
    %cst_127 = arith.constant dense<0.000000e+00> : vector<16x16xf32>
    %566 = tpu.matmul %565, %536, %cst_127 {dimension_numbers = #tpu.dot_dimension_numbers<[1], [1], [0], [0], [0, 0, 1, 0], [], []>} : vector<16x32xbf16>, vector<16x32xbf16>, vector<16x16xf32> -> vector<16x16xf32>
    %567 = arith.addf %566, %278 : vector<16x16xf32>
    %cst_128 = arith.constant dense<0xFF800000> : vector<16xf32>
    %568 = vector.multi_reduction <maximumf>, %567, %cst_128 [1] : vector<16x16xf32> to vector<16xf32>
    %569 = vector.shape_cast %568 : vector<16xf32> to vector<16x1xf32>
    %570 = vector.broadcast %569 : vector<16x1xf32> to vector<16x16xf32>
    %571 = arith.subf %567, %570 : vector<16x16xf32>
    %572 = math.exp %571 : vector<16x16xf32>
    %cst_129 = arith.constant dense<0.000000e+00> : vector<16xf32>
    %573 = vector.multi_reduction <add>, %572, %cst_129 [1] : vector<16x16xf32> to vector<16xf32>
    %574 = vector.shape_cast %573 : vector<16xf32> to vector<16x1xf32>
    %575 = tpu.reciprocal %574 {approx = true} : vector<16x1xf32> -> vector<16x1xf32>
    %576 = vector.broadcast %575 : vector<16x1xf32> to vector<16x16xf32>
    %577 = arith.mulf %572, %576 : vector<16x16xf32>
    %578 = arith.truncf %577 : vector<16x16xf32> to vector<16x16xbf16>
    %579 = vector.broadcast %293 : vector<1x32xf32> to vector<16x32xf32>
    %580 = arith.mulf %540, %579 : vector<16x32xf32>
    %581 = arith.truncf %580 : vector<16x32xf32> to vector<16x32xbf16>
    %cst_130 = arith.constant dense<0.000000e+00> : vector<16x32xf32>
    %582 = tpu.matmul %578, %581, %cst_130 {dimension_numbers = #tpu.dot_dimension_numbers<[1], [0], [0], [1], [0, 0, 1, 1], [], []>} : vector<16x16xbf16>, vector<16x32xbf16>, vector<16x32xf32> -> vector<16x32xf32>
    %583 = arith.addf %562, %582 : vector<16x32xf32>
    %584 = vector.broadcast %300 : vector<1x32xf32> to vector<16x32xf32>
    %585 = arith.mulf %531, %584 : vector<16x32xf32>
    %586 = arith.truncf %585 : vector<16x32xf32> to vector<16x32xbf16>
    %cst_131 = arith.constant dense<0.000000e+00> : vector<16x16xf32>
    %587 = tpu.matmul %586, %536, %cst_131 {dimension_numbers = #tpu.dot_dimension_numbers<[1], [1], [0], [0], [0, 0, 1, 0], [], []>} : vector<16x32xbf16>, vector<16x32xbf16>, vector<16x16xf32> -> vector<16x16xf32>
    %588 = arith.addf %587, %278 : vector<16x16xf32>
    %cst_132 = arith.constant dense<0xFF800000> : vector<16xf32>
    %589 = vector.multi_reduction <maximumf>, %588, %cst_132 [1] : vector<16x16xf32> to vector<16xf32>
    %590 = vector.shape_cast %589 : vector<16xf32> to vector<16x1xf32>
    %591 = vector.broadcast %590 : vector<16x1xf32> to vector<16x16xf32>
    %592 = arith.subf %588, %591 : vector<16x16xf32>
    %593 = math.exp %592 : vector<16x16xf32>
    %cst_133 = arith.constant dense<0.000000e+00> : vector<16xf32>
    %594 = vector.multi_reduction <add>, %593, %cst_133 [1] : vector<16x16xf32> to vector<16xf32>
    %595 = vector.shape_cast %594 : vector<16xf32> to vector<16x1xf32>
    %596 = tpu.reciprocal %595 {approx = true} : vector<16x1xf32> -> vector<16x1xf32>
    %597 = vector.broadcast %596 : vector<16x1xf32> to vector<16x16xf32>
    %598 = arith.mulf %593, %597 : vector<16x16xf32>
    %599 = arith.truncf %598 : vector<16x16xf32> to vector<16x16xbf16>
    %600 = vector.broadcast %300 : vector<1x32xf32> to vector<16x32xf32>
    %601 = arith.mulf %540, %600 : vector<16x32xf32>
    %602 = arith.truncf %601 : vector<16x32xf32> to vector<16x32xbf16>
    %cst_134 = arith.constant dense<0.000000e+00> : vector<16x32xf32>
    %603 = tpu.matmul %599, %602, %cst_134 {dimension_numbers = #tpu.dot_dimension_numbers<[1], [0], [0], [1], [0, 0, 1, 1], [], []>} : vector<16x16xbf16>, vector<16x32xbf16>, vector<16x32xf32> -> vector<16x32xf32>
    %604 = arith.addf %583, %603 : vector<16x32xf32>
    %605 = vector.broadcast %307 : vector<1x32xf32> to vector<16x32xf32>
    %606 = arith.mulf %531, %605 : vector<16x32xf32>
    %607 = arith.truncf %606 : vector<16x32xf32> to vector<16x32xbf16>
    %cst_135 = arith.constant dense<0.000000e+00> : vector<16x16xf32>
    %608 = tpu.matmul %607, %536, %cst_135 {dimension_numbers = #tpu.dot_dimension_numbers<[1], [1], [0], [0], [0, 0, 1, 0], [], []>} : vector<16x32xbf16>, vector<16x32xbf16>, vector<16x16xf32> -> vector<16x16xf32>
    %609 = arith.addf %608, %278 : vector<16x16xf32>
    %cst_136 = arith.constant dense<0xFF800000> : vector<16xf32>
    %610 = vector.multi_reduction <maximumf>, %609, %cst_136 [1] : vector<16x16xf32> to vector<16xf32>
    %611 = vector.shape_cast %610 : vector<16xf32> to vector<16x1xf32>
    %612 = vector.broadcast %611 : vector<16x1xf32> to vector<16x16xf32>
    %613 = arith.subf %609, %612 : vector<16x16xf32>
    %614 = math.exp %613 : vector<16x16xf32>
    %cst_137 = arith.constant dense<0.000000e+00> : vector<16xf32>
    %615 = vector.multi_reduction <add>, %614, %cst_137 [1] : vector<16x16xf32> to vector<16xf32>
    %616 = vector.shape_cast %615 : vector<16xf32> to vector<16x1xf32>
    %617 = tpu.reciprocal %616 {approx = true} : vector<16x1xf32> -> vector<16x1xf32>
    %618 = vector.broadcast %617 : vector<16x1xf32> to vector<16x16xf32>
    %619 = arith.mulf %614, %618 : vector<16x16xf32>
    %620 = arith.truncf %619 : vector<16x16xf32> to vector<16x16xbf16>
    %621 = vector.broadcast %307 : vector<1x32xf32> to vector<16x32xf32>
    %622 = arith.mulf %540, %621 : vector<16x32xf32>
    %623 = arith.truncf %622 : vector<16x32xf32> to vector<16x32xbf16>
    %cst_138 = arith.constant dense<0.000000e+00> : vector<16x32xf32>
    %624 = tpu.matmul %620, %623, %cst_138 {dimension_numbers = #tpu.dot_dimension_numbers<[1], [0], [0], [1], [0, 0, 1, 1], [], []>} : vector<16x16xbf16>, vector<16x32xbf16>, vector<16x32xf32> -> vector<16x32xf32>
    %625 = arith.addf %604, %624 : vector<16x32xf32>
    %626 = arith.truncf %625 : vector<16x32xf32> to vector<16x32xbf16>
    %c1_139 = arith.constant 1 : index
    %c0_140 = arith.constant 0 : index
    %c0_141 = arith.constant 0 : index
    %627 = vector.load %arg6[%c1_139, %c0_140, %c0_141] : memref<2x32x32xbf16, #tpu.memory_space<vmem>>, vector<1x32x32xbf16>
    %628 = vector.shape_cast %627 : vector<1x32x32xbf16> to vector<32x32xbf16>
    %cst_142 = arith.constant dense<0.000000e+00> : vector<16x32xf32>
    %629 = tpu.matmul %626, %628, %cst_142 {dimension_numbers = #tpu.dot_dimension_numbers<[1], [0], [0], [1], [0, 0, 1, 1], [], []>} : vector<16x32xbf16>, vector<32x32xbf16>, vector<16x32xf32> -> vector<16x32xf32>
    %630 = vector.extract_strided_slice %521 {offsets = [3, 0], sizes = [1, 32], strides = [1, 1]} : vector<12x32xf32> to vector<1x32xf32>
    %631 = vector.broadcast %630 : vector<1x32xf32> to vector<16x32xf32>
    %632 = arith.addf %629, %631 : vector<16x32xf32>
    %633 = arith.addf %519, %632 : vector<16x32xf32>
    %634 = vector.extract_strided_slice %521 {offsets = [6, 0], sizes = [1, 32], strides = [1, 1]} : vector<12x32xf32> to vector<1x32xf32>
    %635 = vector.extract_strided_slice %521 {offsets = [9, 0], sizes = [1, 32], strides = [1, 1]} : vector<12x32xf32> to vector<1x32xf32>
    %cst_143 = arith.constant dense<0.000000e+00> : vector<16xf32>
    %636 = vector.multi_reduction <add>, %633, %cst_143 [1] : vector<16x32xf32> to vector<16xf32>
    %637 = vector.shape_cast %636 : vector<16xf32> to vector<16x1xf32>
    %cst_144 = arith.constant 3.200000e+01 : f32
    %638 = vector.broadcast %cst_144 : f32 to vector<16x1xf32>
    %639 = arith.divf %637, %638 : vector<16x1xf32>
    %640 = vector.broadcast %639 : vector<16x1xf32> to vector<16x32xf32>
    %641 = arith.subf %633, %640 : vector<16x32xf32>
    %642 = arith.mulf %641, %641 : vector<16x32xf32>
    %cst_145 = arith.constant dense<0.000000e+00> : vector<16xf32>
    %643 = vector.multi_reduction <add>, %642, %cst_145 [1] : vector<16x32xf32> to vector<16xf32>
    %644 = vector.shape_cast %643 : vector<16xf32> to vector<16x1xf32>
    %cst_146 = arith.constant 3.200000e+01 : f32
    %645 = vector.broadcast %cst_146 : f32 to vector<16x1xf32>
    %646 = arith.divf %644, %645 : vector<16x1xf32>
    %647 = vector.broadcast %639 : vector<16x1xf32> to vector<16x32xf32>
    %648 = arith.subf %633, %647 : vector<16x32xf32>
    %cst_147 = arith.constant 9.99999974E-6 : f32
    %649 = vector.broadcast %cst_147 : f32 to vector<16x1xf32>
    %650 = arith.addf %646, %649 : vector<16x1xf32>
    %651 = math.rsqrt %650 : vector<16x1xf32>
    %652 = vector.broadcast %651 : vector<16x1xf32> to vector<16x32xf32>
    %653 = arith.mulf %648, %652 : vector<16x32xf32>
    %654 = vector.broadcast %634 : vector<1x32xf32> to vector<16x32xf32>
    %655 = arith.mulf %653, %654 : vector<16x32xf32>
    %656 = vector.broadcast %635 : vector<1x32xf32> to vector<16x32xf32>
    %657 = arith.addf %655, %656 : vector<16x32xf32>
    %c1_148 = arith.constant 1 : index
    %c0_149 = arith.constant 0 : index
    %c0_150 = arith.constant 0 : index
    %658 = vector.load %arg7[%c1_148, %c0_149, %c0_150] : memref<2x32x32xbf16, #tpu.memory_space<vmem>>, vector<1x32x32xbf16>
    %659 = vector.shape_cast %658 : vector<1x32x32xbf16> to vector<32x32xbf16>
    %cst_151 = arith.constant dense<0.000000e+00> : vector<16x32xf32>
    %660 = tpu.matmul %277, %659, %cst_151 {dimension_numbers = #tpu.dot_dimension_numbers<[1], [0], [0], [1], [0, 0, 1, 1], [], []>} : vector<16x32xbf16>, vector<32x32xbf16>, vector<16x32xf32> -> vector<16x32xf32>
    %661 = vector.extract_strided_slice %521 {offsets = [4, 0], sizes = [1, 32], strides = [1, 1]} : vector<12x32xf32> to vector<1x32xf32>
    %662 = vector.broadcast %661 : vector<1x32xf32> to vector<16x32xf32>
    %663 = arith.addf %660, %662 : vector<16x32xf32>
    %664 = arith.addf %657, %663 : vector<16x32xf32>
    %665 = vector.extract_strided_slice %521 {offsets = [7, 0], sizes = [1, 32], strides = [1, 1]} : vector<12x32xf32> to vector<1x32xf32>
    %666 = vector.extract_strided_slice %521 {offsets = [10, 0], sizes = [1, 32], strides = [1, 1]} : vector<12x32xf32> to vector<1x32xf32>
    %cst_152 = arith.constant dense<0.000000e+00> : vector<16xf32>
    %667 = vector.multi_reduction <add>, %664, %cst_152 [1] : vector<16x32xf32> to vector<16xf32>
    %668 = vector.shape_cast %667 : vector<16xf32> to vector<16x1xf32>
    %cst_153 = arith.constant 3.200000e+01 : f32
    %669 = vector.broadcast %cst_153 : f32 to vector<16x1xf32>
    %670 = arith.divf %668, %669 : vector<16x1xf32>
    %671 = vector.broadcast %670 : vector<16x1xf32> to vector<16x32xf32>
    %672 = arith.subf %664, %671 : vector<16x32xf32>
    %673 = arith.mulf %672, %672 : vector<16x32xf32>
    %cst_154 = arith.constant dense<0.000000e+00> : vector<16xf32>
    %674 = vector.multi_reduction <add>, %673, %cst_154 [1] : vector<16x32xf32> to vector<16xf32>
    %675 = vector.shape_cast %674 : vector<16xf32> to vector<16x1xf32>
    %cst_155 = arith.constant 3.200000e+01 : f32
    %676 = vector.broadcast %cst_155 : f32 to vector<16x1xf32>
    %677 = arith.divf %675, %676 : vector<16x1xf32>
    %678 = vector.broadcast %670 : vector<16x1xf32> to vector<16x32xf32>
    %679 = arith.subf %664, %678 : vector<16x32xf32>
    %cst_156 = arith.constant 9.99999974E-6 : f32
    %680 = vector.broadcast %cst_156 : f32 to vector<16x1xf32>
    %681 = arith.addf %677, %680 : vector<16x1xf32>
    %682 = math.rsqrt %681 : vector<16x1xf32>
    %683 = vector.broadcast %682 : vector<16x1xf32> to vector<16x32xf32>
    %684 = arith.mulf %679, %683 : vector<16x32xf32>
    %685 = vector.broadcast %665 : vector<1x32xf32> to vector<16x32xf32>
    %686 = arith.mulf %684, %685 : vector<16x32xf32>
    %687 = vector.broadcast %666 : vector<1x32xf32> to vector<16x32xf32>
    %688 = arith.addf %686, %687 : vector<16x32xf32>
    %689 = arith.truncf %688 : vector<16x32xf32> to vector<16x32xbf16>
    %c1_157 = arith.constant 1 : index
    %c0_158 = arith.constant 0 : index
    %c0_159 = arith.constant 0 : index
    %690 = vector.load %arg8[%c1_157, %c0_158, %c0_159] : memref<2x32x64xbf16, #tpu.memory_space<vmem>>, vector<1x32x64xbf16>
    %691 = vector.shape_cast %690 : vector<1x32x64xbf16> to vector<32x64xbf16>
    %cst_160 = arith.constant dense<0.000000e+00> : vector<16x64xf32>
    %692 = tpu.matmul %689, %691, %cst_160 {dimension_numbers = #tpu.dot_dimension_numbers<[1], [0], [0], [1], [0, 0, 1, 1], [], []>} : vector<16x32xbf16>, vector<32x64xbf16>, vector<16x64xf32> -> vector<16x64xf32>
    %c1_161 = arith.constant 1 : index
    %c0_162 = arith.constant 0 : index
    %c0_163 = arith.constant 0 : index
    %693 = vector.load %arg11[%c1_161, %c0_162, %c0_163] : memref<2x1x64xf32, #tpu.memory_space<vmem>>, vector<1x1x64xf32>
    %694 = vector.shape_cast %693 : vector<1x1x64xf32> to vector<1x64xf32>
    %695 = vector.broadcast %694 : vector<1x64xf32> to vector<16x64xf32>
    %696 = arith.addf %692, %695 : vector<16x64xf32>
    %cst_164 = arith.constant 0.000000e+00 : f32
    %697 = vector.broadcast %cst_164 : f32 to vector<16x64xf32>
    %698 = arith.maximumf %696, %697 : vector<16x64xf32>
    %699 = arith.truncf %698 : vector<16x64xf32> to vector<16x64xbf16>
    %c1_165 = arith.constant 1 : index
    %c0_166 = arith.constant 0 : index
    %c0_167 = arith.constant 0 : index
    %700 = vector.load %arg9[%c1_165, %c0_166, %c0_167] : memref<2x64x32xbf16, #tpu.memory_space<vmem>>, vector<1x64x32xbf16>
    %701 = vector.shape_cast %700 : vector<1x64x32xbf16> to vector<64x32xbf16>
    %cst_168 = arith.constant dense<0.000000e+00> : vector<16x32xf32>
    %702 = tpu.matmul %699, %701, %cst_168 {dimension_numbers = #tpu.dot_dimension_numbers<[1], [0], [0], [1], [0, 0, 1, 1], [], []>} : vector<16x64xbf16>, vector<64x32xbf16>, vector<16x32xf32> -> vector<16x32xf32>
    %703 = vector.extract_strided_slice %521 {offsets = [5, 0], sizes = [1, 32], strides = [1, 1]} : vector<12x32xf32> to vector<1x32xf32>
    %704 = vector.broadcast %703 : vector<1x32xf32> to vector<16x32xf32>
    %705 = arith.addf %702, %704 : vector<16x32xf32>
    %706 = arith.addf %688, %705 : vector<16x32xf32>
    %707 = vector.extract_strided_slice %521 {offsets = [8, 0], sizes = [1, 32], strides = [1, 1]} : vector<12x32xf32> to vector<1x32xf32>
    %708 = vector.extract_strided_slice %521 {offsets = [11, 0], sizes = [1, 32], strides = [1, 1]} : vector<12x32xf32> to vector<1x32xf32>
    %cst_169 = arith.constant dense<0.000000e+00> : vector<16xf32>
    %709 = vector.multi_reduction <add>, %706, %cst_169 [1] : vector<16x32xf32> to vector<16xf32>
    %710 = vector.shape_cast %709 : vector<16xf32> to vector<16x1xf32>
    %cst_170 = arith.constant 3.200000e+01 : f32
    %711 = vector.broadcast %cst_170 : f32 to vector<16x1xf32>
    %712 = arith.divf %710, %711 : vector<16x1xf32>
    %713 = vector.broadcast %712 : vector<16x1xf32> to vector<16x32xf32>
    %714 = arith.subf %706, %713 : vector<16x32xf32>
    %715 = arith.mulf %714, %714 : vector<16x32xf32>
    %cst_171 = arith.constant dense<0.000000e+00> : vector<16xf32>
    %716 = vector.multi_reduction <add>, %715, %cst_171 [1] : vector<16x32xf32> to vector<16xf32>
    %717 = vector.shape_cast %716 : vector<16xf32> to vector<16x1xf32>
    %cst_172 = arith.constant 3.200000e+01 : f32
    %718 = vector.broadcast %cst_172 : f32 to vector<16x1xf32>
    %719 = arith.divf %717, %718 : vector<16x1xf32>
    %720 = vector.broadcast %712 : vector<16x1xf32> to vector<16x32xf32>
    %721 = arith.subf %706, %720 : vector<16x32xf32>
    %cst_173 = arith.constant 9.99999974E-6 : f32
    %722 = vector.broadcast %cst_173 : f32 to vector<16x1xf32>
    %723 = arith.addf %719, %722 : vector<16x1xf32>
    %724 = math.rsqrt %723 : vector<16x1xf32>
    %725 = vector.broadcast %724 : vector<16x1xf32> to vector<16x32xf32>
    %726 = arith.mulf %721, %725 : vector<16x32xf32>
    %727 = vector.broadcast %707 : vector<1x32xf32> to vector<16x32xf32>
    %728 = arith.mulf %726, %727 : vector<16x32xf32>
    %729 = vector.broadcast %708 : vector<1x32xf32> to vector<16x32xf32>
    %730 = arith.addf %728, %729 : vector<16x32xf32>
    %731 = arith.truncf %730 : vector<16x32xf32> to vector<16x32xbf16>
    %c0_174 = arith.constant 0 : index
    %c0_175 = arith.constant 0 : index
    %732 = vector.load %arg12[%c0_174, %c0_175] : memref<32x128xbf16, #tpu.memory_space<vmem>>, vector<32x128xbf16>
    %cst_176 = arith.constant dense<0.000000e+00> : vector<16x128xf32>
    %733 = tpu.matmul %731, %732, %cst_176 {dimension_numbers = #tpu.dot_dimension_numbers<[1], [0], [0], [1], [0, 0, 1, 1], [], []>} : vector<16x32xbf16>, vector<32x128xbf16>, vector<16x128xf32> -> vector<16x128xf32>
    %c0_177 = arith.constant 0 : index
    %c0_178 = arith.constant 0 : index
    %734 = vector.load %arg13[%c0_177, %c0_178] : memref<1x128xf32, #tpu.memory_space<vmem>>, vector<1x128xf32>
    %735 = vector.broadcast %734 : vector<1x128xf32> to vector<16x128xf32>
    %736 = arith.addf %733, %735 : vector<16x128xf32>
    %737 = tpu.iota {dimensions = array<i32: 1>} : vector<16x128xi32>
    %c3_i32 = arith.constant 3 : i32
    %738 = vector.broadcast %c3_i32 : i32 to vector<16x128xi32>
    %739 = arith.cmpi slt, %737, %738 : vector<16x128xi32>
    %740 = arith.negf %736 : vector<16x128xf32>
    %741 = math.exp %740 : vector<16x128xf32>
    %cst_179 = arith.constant 1.000000e+00 : f32
    %742 = vector.broadcast %cst_179 : f32 to vector<16x128xf32>
    %743 = arith.addf %742, %741 : vector<16x128xf32>
    %744 = arith.divf %742, %743 : vector<16x128xf32>
    %745 = arith.select %739, %736, %744 : vector<16x128xi1>, vector<16x128xf32>
    %c0_180 = arith.constant 0 : index
    %c0_181 = arith.constant 0 : index
    %746 = vector.load %arg14[%c0_180, %c0_181] : memref<16x128xf32, #tpu.memory_space<vmem>>, vector<16x128xf32>
    tpu.vector_store %arg14[%c0_180, %c0_181], %745 {strides = array<i32>} : memref<16x128xf32, #tpu.memory_space<vmem>>, vector<16x128xf32>,
    return
  }
}

</mosaic_0001>

<bundles_post_ra>
// kernel: transformer_lstm_forward.1
= control target key start
LH: loop header
LB: loop body
LE: loop exit
PB: predicated region body
PF: predicated region fallthrough
CT: control target
= control target key end

     0   :  { %v3615_v1 = vmov 0.0   ;;  %vm3616_vm0 = vmmov 0   ;;  %v3617_v4 = vmov 0   ;;  %v3618_v5 = vmov 1   ;;  %s4448_s0 = inlined_call_operand.vmem [shape: f32[16,32], index: 0, kind: input, shape index: {}]   ;;  %s4449_s1 = inlined_call_operand.vmem [shape: f32[16,16], index: 1, kind: input, shape index: {}]   ;;  %s4450_s2 = inlined_call_operand.vmem [shape: f32[16,2], index: 2, kind: input, shape index: {}]   ;;  %s4451_s3 = inlined_call_operand.vmem [shape: f32[3,128], index: 3, kind: input, shape index: {}]   ;;  %s4452_s4 = inlined_call_operand.vmem [shape: bf16[32,128], index: 4, kind: input, shape index: {}]   ;;  %s4453_s5 = inlined_call_operand.vmem [shape: bf16[2,32,96], index: 5, kind: input, shape index: {}]   ;;  %s4454_s6 = inlined_call_operand.vmem [shape: bf16[2,32,32], index: 6, kind: input, shape index: {}]   ;;  %s4455_s7 = inlined_call_operand.vmem [shape: bf16[2,32,32], index: 7, kind: input, shape index: {}]   ;;  %s4456_s8 = inlined_call_operand.vmem [shape: bf16[2,32,64], index: 8, kind: input, shape index: {}]   ;;  %s4457_s9 = inlined_call_operand.vmem [shape: bf16[2,64,32], index: 9, kind: input, shape index: {}]   ;;  %s4458_s10 = inlined_call_operand.vmem [shape: f32[2,12,32], index: 10, kind: input, shape index: {}]   ;;  %s4459_s11 = inlined_call_operand.vmem [shape: f32[2,1,64], index: 11, kind: input, shape index: {}]   ;;  %s4460_s12 = inlined_call_operand.vmem [shape: bf16[32,128], index: 12, kind: input, shape index: {}]   ;;  %s4461_s13 = inlined_call_operand.vmem [shape: f32[1,128], index: 13, kind: input, shape index: {}]   ;;  %s4462_s14 = inlined_call_operand.vmem [shape: f32[16,128], index: 14, kind: output, shape index: {0}]   ;;  %s4463_s15 = inlined_call_operand.hbm [shape: f32[2,32], index: 15, kind: output, shape index: {1}]  }
   0x1   :  { %v3706_v0 = vld [vmem:[%s4452_s4] sm:$0xff]   ;;  %3102 = vmatprep.subr.bf16.mxu0 %v3615_v1  ;;  %3110 = vmatprep.subr.bf16.mxu1 %v3615_v1  ;;  %v3714_v2 = vld [vmem:[%s4452_s4 + $0x8] sm:$0xff]  }
   0x2   :  { %3103 = vmatpush3.bf16.msra.mxu0 %v3706_v0  ;;  %3106 = vmatprep.mubr.msk.bf16.mxu0 %vm3616_vm0, %v3615_v1  ;;  %v51_v3 = vld [vmem:[%s4450_s2] sm:$0xff] }
   0x3   :  { %3104 = vmatprep.subr.bf16.mxu0 %v3615_v1  ;;  %3390 = vset.pattern.permute.xlu0 %v3617_v4 }
   0x4   :  { %56 = vperm.xlu0 %3390, %v51_v3   ;;  %3111 = vmatpush3.bf16.msra.mxu1 %v3706_v0 }
   0x5   :  { %3112 = vmatprep.subr.bf16.mxu1 %v3615_v1  ;;  %3114 = vmatprep.mubr.msk.bf16.mxu1 %vm3616_vm0, %v3615_v1 }
   0x6   :  { %3105 = vmatpush3.bf16.msra.mxu0 %v3714_v2  ;;  %3392 = vset.pattern.permute.xlu1 %v3617_v4 }
   0x7   :  { %3118 = vmatprep.subr.bf16.mxu0 %v3615_v1 }
   0x8   :  { %3391 = vset.pattern.permute.xlu0 %v3618_v5  ;;  %3113 = vmatpush3.bf16.msra.mxu1 %v3714_v2 }
   0x9   :  { %3107 = vmatmul.mubr.bf16.vlgmr.msra.gmra.mrb[0].mxu0 %v3617_v4  ;;  %72 = vperm.xlu0 %3391, %v51_v3  }
   0xa   :  { %3119 = vmatpush3.bf16.msra.mxu0 %v3706_v0  ;;  %3122 = vmatprep.mubr.msk.bf16.mxu0 %vm3616_vm0, %v3615_v1 }
   0xb   :  { %3120 = vmatprep.subr.bf16.mxu0 %v3615_v1  ;;  %3126 = vmatprep.subr.bf16.mxu1 %v3615_v1 }
   0xe   :  { %3121 = vmatpush3.bf16.msra.mxu0 %v3714_v2 }
   0xf   :  { %3134 = vmatprep.subr.bf16.mxu0 %v3615_v1 }
  0x10   :  { %21 = vsyncpa [#allocation3], 0  ;;  %v3739_v7 = vld [vmem:[%s4451_s3] ss:$0 sm:$0xff]  ;;  %v3744_v8 = vld [vmem:[%s4451_s3 + $0x1] ss:$0 sm:$0xff] }
  0x11   :  { %v3751_v13 = vld [vmem:[%s4451_s3 + $0x2] ss:$0 sm:$0xff]  ;;  %s3619_s29 = smov 64   ;;  %s3620_s3 = smov 32   ;;  %vm110_vm1 = vcmask 261120   ;;  %vm944_vm12 = vcmask 130048  }
  0x12   :  { %s3621_s24 = smov 96   ;;  %vm1722_vm13 = vcmask 523264   ;;  %vm731_vm14 = vcmask 261126  }
  0x83   :  { %v57_v6 = vpop.permute.xlu0 %56 }
  0x84   :  { %v68_v10 = vmul.f32 %v3739_v7, %v57_v6 }
  0x88   :  { %v73_v9 = vpop.permute.xlu0 %72 }
  0x89   :  { %v83_v11 = vmul.f32 %v3744_v8, %v73_v9 }
  0x8b   :  { %v85_v12 = vadd.f32 %v83_v11, %v68_v10 }
  0x8d   :  { %v3754_v14 = vadd.f32 %v3751_v13, %v85_v12 }
  0xdc   :  { %v148_v15 = vpop.f32.mrb[0].mxu0 }
  0xdd   :  { %v154_v16 = vadd.f32 %v148_v15, %v3754_v14  ;;  %v3108_v17 = vpop.f32.mrb[1].mxu0 }
  0xde   :  { %v151_v18 = vpop.f32.mrb[2].mxu0 }
  0xdf   :  { %3431 = vtanh.f32 %v154_v16  ;;  %v3109_v19 = vpop.f32.mrb[3].mxu0  ;;  %v2905_v21 = vmul.f32 -1.442695, %v154_v16 }
  0xe1   :  { %3433 = vpow2.f32 %v2905_v21 }
  0xe9   :  { %v3432_v20 = vpop.eup %3431 }
  0xea   :  { %164 = vrot.lane.b32.xlu1 %v3432_v20, %s3619_s29 }
  0xeb   :  { %v3434_v22 = vpop.eup %3433 }
  0xec   :  { %v158_v23 = vadd.f32 1.0, %v3434_v22 }
  0xee   :  { %3435 = vrcp.f32 %v158_v23 }
  0xf8   :  { %v3436_v24 = vpop.eup %3435 }
  0xf9   :  { %v162_v27 = vmul.f32 0.0, %v3436_v24 }
 0x15c   :  { %v165_v25 = vpop.permute.xlu1 %164 }
 0x15d   :  { %v167_v26 = vmul.f32 %v3436_v24, %v165_v25 }
 0x15f   :  { %169 = vrot.lane.b32.xlu1 %v167_v26, %s3620_s3 }
 0x1d1   :  { %v170_v28 = vpop.permute.xlu1 %169 }
 0x1d2   :  { %v172_v29 = vadd.f32 %v170_v28, %v162_v27 }
 0x1d4   :  { %3437 = vtanh.f32 %v172_v29  ;;  %v238_v48 = vrot.slane %v172_v29, 6 }
 0x1de   :  { %v3438_v30 = vpop.eup %3437 }
 0x1df   :  { %175 = vrot.lane.b32.xlu1 %v3438_v30, %s3619_s29 }
 0x251   :  { %v176_v31 = vpop.permute.xlu1 %175 }
 0x252   :  { %v178_v32 = vmul.f32 %v3436_v24, %v176_v31 }
 0x254   :  { %v179_v33 = vpack.c.bf16 %v178_v32, %v178_v32 }
 0x256   :  { %181 = vrot.lane.b32.xlu0 %v179_v33, %s3620_s3 }
 0x2c8   :  { %v182_v34 = vpop.permute.xlu0 %181 }
 0x2c9   :  { %3115 = vmatmul.mubr.msk.bf16.vlgmr.msra.gmra.mrb[0].mxu1 %vm110_vm1, %v182_v34 }
 0x2ca   :  { %3127 = vmatpush3.bf16.msra.mxu1 %v3706_v0  ;;  %3130 = vmatprep.mubr.msk.bf16.mxu1 %vm3616_vm0, %v3615_v1 }
 0x2cb   :  { %3128 = vmatprep.subr.bf16.mxu1 %v3615_v1 }
 0x2ce   :  { %3129 = vmatpush3.bf16.msra.mxu1 %v3714_v2 }
 0x2cf   :  { %3142 = vmatprep.subr.bf16.mxu1 %v3615_v1 }
 0x39c   :  { %v220_v35 = vpop.f32.mrb[0].mxu1 }
 0x39d   :  { %v227_v36 = vrot.slane %v220_v35, 6  ;;  %v3116_v37 = vpop.f32.mrb[1].mxu1 }
 0x39e   :  { %v223_v38 = vpop.f32.mrb[2].mxu1 }
 0x39f   :  { %v229_v39 = vadd.f32 %v227_v36, %v3754_v14  ;;  %v3117_v40 = vpop.f32.mrb[3].mxu1 }
 0x3a1   :  { %3439 = vtanh.f32 %v229_v39  ;;  %v2907_v42 = vmul.f32 -1.442695, %v229_v39 }
 0x3a3   :  { %3441 = vpow2.f32 %v2907_v42 }
 0x3ab   :  { %v3440_v41 = vpop.eup %3439 }
 0x3ac   :  { %242 = vrot.lane.b32.xlu1 %v3440_v41, %s3619_s29  ;;  %v52_v41 = vld [vmem:[%s4450_s2 + $0x8] sm:$0xff] }
 0x3ad   :  { %v3442_v43 = vpop.eup %3441 }
 0x3ae   :  { %v233_v44 = vadd.f32 1.0, %v3442_v43 }
 0x3b0   :  { %3443 = vrcp.f32 %v233_v44 }
 0x3ba   :  { %v3444_v45 = vpop.eup %3443 }
 0x3bb   :  { %v240_v49 = vmul.f32 %v3444_v45, %v238_v48 }
 0x41e   :  { %v243_v46 = vpop.permute.xlu1 %242 }
 0x41f   :  { %v245_v47 = vmul.f32 %v3444_v45, %v243_v46 }
 0x421   :  { %247 = vrot.lane.b32.xlu0 %v245_v47, %s3620_s3 }
 0x493   :  { %v248_v50 = vpop.permute.xlu0 %247 }
 0x494   :  { %v250_v51 = vadd.f32 %v248_v50, %v240_v49 }
 0x496   :  { %3445 = vtanh.f32 %v250_v51  ;;  %v317_v12 = vrot.slane %v250_v51, 6 }
 0x4a0   :  { %v3446_v52 = vpop.eup %3445 }
 0x4a1   :  { %253 = vrot.lane.b32.xlu1 %v3446_v52, %s3619_s29 }
 0x513   :  { %v254_v53 = vpop.permute.xlu1 %253 }
 0x514   :  { %v256_v54 = vmul.f32 %v3444_v45, %v254_v53 }
 0x516   :  { %v257_v55 = vpack.c.bf16 %v256_v54, %v256_v54 }
 0x518   :  { %v259_v56 = vrot.slane %v257_v55, 1 }
 0x51a   :  { %260 = vrot.lane.b32.xlu0 %v259_v56, %s3620_s3 }
 0x58c   :  { %v261_v57 = vpop.permute.xlu0 %260 }
 0x58d   :  { %3123 = vmatmul.mubr.msk.bf16.vlgmr.msra.gmra.mrb[4].mxu0 %vm110_vm1, %v261_v57 }
 0x58e   :  { %3135 = vmatpush3.bf16.msra.mxu0 %v3706_v0  ;;  %3138 = vmatprep.mubr.msk.bf16.mxu0 %vm3616_vm0, %v3615_v1 }
 0x58f   :  { %3136 = vmatprep.subr.bf16.mxu0 %v3615_v1 }
 0x592   :  { %3137 = vmatpush3.bf16.msra.mxu0 %v3714_v2 }
 0x593   :  { %3150 = vmatprep.subr.bf16.mxu0 %v3615_v1 }
 0x660   :  { %v299_v58 = vpop.f32.mrb[4].mxu0 }
 0x661   :  { %v306_v59 = vrot.slane %v299_v58, 4  ;;  %v3124_v60 = vpop.f32.mrb[5].mxu0 }
 0x662   :  { %v302_v61 = vpop.f32.mrb[6].mxu0 }
 0x663   :  { %v308_v62 = vadd.f32 %v306_v59, %v3754_v14  ;;  %v3125_v63 = vpop.f32.mrb[7].mxu0 }
 0x665   :  { %3447 = vtanh.f32 %v308_v62  ;;  %v2909_v4 = vmul.f32 -1.442695, %v308_v62 }
 0x667   :  { %3449 = vpow2.f32 %v2909_v4 }
 0x66f   :  { %v3448_v3 = vpop.eup %3447 }
 0x670   :  { %321 = vrot.lane.b32.xlu1 %v3448_v3, %s3619_s29 }
 0x671   :  { %v3450_v5 = vpop.eup %3449 }
 0x672   :  { %v312_v6 = vadd.f32 1.0, %v3450_v5 }
 0x674   :  { %3451 = vrcp.f32 %v312_v6 }
 0x67e   :  { %v3452_v9 = vpop.eup %3451 }
 0x67f   :  { %v319_v15 = vmul.f32 %v3452_v9, %v317_v12 }
 0x6e2   :  { %v322_v10 = vpop.permute.xlu1 %321 }
 0x6e3   :  { %v324_v11 = vmul.f32 %v3452_v9, %v322_v10 }
 0x6e5   :  { %326 = vrot.lane.b32.xlu0 %v324_v11, %s3620_s3 }
 0x757   :  { %v327_v16 = vpop.permute.xlu0 %326 }
 0x758   :  { %v329_v17 = vadd.f32 %v327_v16, %v319_v15 }
 0x75a   :  { %3453 = vtanh.f32 %v329_v17  ;;  %v396_v37 = vrot.slane %v329_v17, 6 }
 0x764   :  { %v3454_v18 = vpop.eup %3453 }
 0x765   :  { %332 = vrot.lane.b32.xlu1 %v3454_v18, %s3619_s29 }
 0x7d7   :  { %v333_v19 = vpop.permute.xlu1 %332 }
 0x7d8   :  { %v335_v20 = vmul.f32 %v3452_v9, %v333_v19 }
 0x7da   :  { %v336_v21 = vpack.c.bf16 %v335_v20, %v335_v20 }
 0x7dc   :  { %v338_v22 = vrot.slane %v336_v21, 2 }
 0x7de   :  { %339 = vrot.lane.b32.xlu0 %v338_v22, %s3620_s3 }
 0x850   :  { %v340_v23 = vpop.permute.xlu0 %339 }
 0x851   :  { %3131 = vmatmul.mubr.msk.bf16.vlgmr.msra.gmra.mrb[4].mxu1 %vm110_vm1, %v340_v23 }
 0x852   :  { %3143 = vmatpush3.bf16.msra.mxu1 %v3706_v0  ;;  %3146 = vmatprep.mubr.msk.bf16.mxu1 %vm3616_vm0, %v3615_v1 }
 0x853   :  { %3144 = vmatprep.subr.bf16.mxu1 %v3615_v1 }
 0x856   :  { %3145 = vmatpush3.bf16.msra.mxu1 %v3714_v2 }
 0x857   :  { %3158 = vmatprep.subr.bf16.mxu1 %v3615_v1 }
 0x924   :  { %v378_v24 = vpop.f32.mrb[4].mxu1 }
 0x925   :  { %v385_v25 = vrot.slane %v378_v24, 2  ;;  %v3132_v26 = vpop.f32.mrb[5].mxu1 }
 0x926   :  { %v381_v27 = vpop.f32.mrb[6].mxu1 }
 0x927   :  { %v387_v28 = vadd.f32 %v385_v25, %v3754_v14  ;;  %v3133_v29 = vpop.f32.mrb[7].mxu1 }
 0x929   :  { %3455 = vtanh.f32 %v387_v28  ;;  %v2911_v31 = vmul.f32 -1.442695, %v387_v28 }
 0x92b   :  { %3457 = vpow2.f32 %v2911_v31 }
 0x933   :  { %v3456_v30 = vpop.eup %3455 }
 0x934   :  { %400 = vrot.lane.b32.xlu1 %v3456_v30, %s3619_s29 }
 0x935   :  { %v3458_v32 = vpop.eup %3457 }
 0x936   :  { %v391_v33 = vadd.f32 1.0, %v3458_v32 }
 0x938   :  { %3459 = vrcp.f32 %v391_v33 }
 0x942   :  { %v3460_v34 = vpop.eup %3459 }
 0x943   :  { %v398_v38 = vmul.f32 %v3460_v34, %v396_v37  ;;  %v3844_v37 = vld [vmem:[%s4448_s0] sm:$0xff] }
 0x9a6   :  { %v401_v35 = vpop.permute.xlu1 %400 }
 0x9a7   :  { %v403_v36 = vmul.f32 %v3460_v34, %v401_v35 }
 0x9a9   :  { %405 = vrot.lane.b32.xlu0 %v403_v36, %s3620_s3  ;;  %v3406_v36 = vld [vmem:[%s4453_s5 + $0x8] sm:$0xff]  }
 0xa1b   :  { %v406_v39 = vpop.permute.xlu0 %405 }
 0xa1c   :  { %v408_v40 = vadd.f32 %v406_v39, %v398_v38  ;;  %v3849_v38 = vld [vmem:[%s4448_s0 + $0x8] sm:$0xff] }
 0xa1d   :  { %v801_v39 = vpack.c.bf16 %v3849_v38, %v3844_v37 }
 0xa1e   :  { %3461 = vtanh.f32 %v408_v40 }
 0xa28   :  { %v3462_v14 = vpop.eup %3461 }
 0xa29   :  { %411 = vrot.lane.b32.xlu1 %v3462_v14, %s3619_s29 }
 0xa2d   :  { %61 = vperm.xlu1 %3392, %v52_v41  }
 0xa9b   :  { %v412_v42 = vpop.permute.xlu1 %411 }
 0xa9c   :  { %v414_v43 = vmul.f32 %v3460_v34, %v412_v42  ;;  %v3405_v34 = vld [vmem:[%s4453_s5] sm:$0xff]  }
 0xa9e   :  { %v415_v44 = vpack.c.bf16 %v414_v43, %v414_v43 }
 0xaa0   :  { %v417_v45 = vrot.slane %v415_v44, 3 }
 0xaa2   :  { %418 = vrot.lane.b32.xlu0 %v417_v45, %s3620_s3  ;;  %v746_v45 = vlaneseq }
 0xaa6   :  { %76 = vperm.xlu0 %3391, %v52_v41  }
 0xaac   :  { %v62_v48 = vpop.permute.xlu1 %61 }
 0xaad   :  { %v69_v50 = vmul.f32 %v3739_v7, %v62_v48 }
 0xb14   :  { %v419_v46 = vpop.permute.xlu0 %418 }
 0xb15   :  { %3139 = vmatmul.mubr.msk.bf16.vlgmr.msra.gmra.mrb[8].mxu0 %vm110_vm1, %v419_v46  ;;  %v3859_v46 = vshrl.u32 %v746_v45, 7 }
 0xb16   :  { %3151 = vmatpush3.bf16.msra.mxu0 %v3706_v0  ;;  %3154 = vmatprep.mubr.msk.bf16.mxu0 %vm3616_vm0, %v3615_v1 }
 0xb17   :  { %3152 = vmatprep.subr.bf16.mxu0 %v3615_v1 }
 0xb1a   :  { %3153 = vmatpush3.bf16.msra.mxu0 %v3714_v2 }
 0xb1b   :  { %3166 = vmatprep.subr.bf16.mxu0 %v3615_v1 }
 0xb25   :  { %v77_v47 = vpop.permute.xlu0 %76 }
 0xb26   :  { %v84_v49 = vmul.f32 %v3744_v8, %v77_v47 }
 0xb28   :  { %v86_v51 = vadd.f32 %v84_v49, %v69_v50 }
 0xb2a   :  { %v3810_v52 = vadd.f32 %v3751_v13, %v86_v51  ;;  %v472_v13 = vrot.slane %v408_v40, 6  ;;  %v3866_v51 = vsub.s32 1, %v3859_v46 }
 0xbe8   :  { %v457_v53 = vpop.f32.mrb[8].mxu0 }
 0xbe9   :  { %v463_v54 = vadd.f32 %v457_v53, %v3810_v52  ;;  %v3140_v55 = vpop.f32.mrb[9].mxu0  ;;  %v3871_v53 = vld [vmem:[%s4458_s10] sm:$0xff] }
 0xbea   :  { %v460_v56 = vpop.f32.mrb[10].mxu0  ;;  %v873_v55 = vrot.slane %v3871_v53, %v3866_v51 }
 0xbeb   :  { %3463 = vtanh.f32 %v463_v54  ;;  %v3141_v57 = vpop.f32.mrb[11].mxu0  ;;  %v2913_v59 = vmul.f32 -1.442695, %v463_v54 }
 0xbec   :  { %v3878_v57 = vsub.s32 0, %v3859_v46 }
 0xbed   :  { %3465 = vpow2.f32 %v2913_v59  ;;  %v3880_v59 = vand.u32 127, %v746_v45 }
 0xbef   :  { %vm782_vm2 = vcmp.ge.s32.totalorder %v3880_v59, 8  ;;  %vm783_vm3 = vcmp.lt.s32.totalorder %v3880_v59, 16  ;;  %vm787_vm5 = vcmp.ge.s32.totalorder %v3880_v59, 16  ;;  %vm788_vm6 = vcmp.lt.s32.totalorder %v3880_v59, 24 }
 0xbf0   :  { %vm784_vm4 = vmand %vm782_vm2, %vm783_vm3  ;;  %vm792_vm8 = vcmp.ge.s32.totalorder %v3880_v59, 24  ;;  %vm793_vm9 = vcmp.lt.s32.totalorder %v3880_v59, 32  ;;  %vm778_vm11 = vcmp.lt.s32.totalorder %v3880_v59, 8 }
 0xbf1   :  { %vm789_vm7 = vmand %vm787_vm5, %vm788_vm6 }
 0xbf2   :  { %vm794_vm10 = vmand %vm792_vm8, %vm793_vm9 }
 0xbf5   :  { %v3464_v58 = vpop.eup %3463 }
 0xbf6   :  { %476 = vrot.lane.b32.xlu1 %v3464_v58, %s3619_s29 }
 0xbf7   :  { %v3466_v60 = vpop.eup %3465 }
 0xbf8   :  { %v467_v8 = vadd.f32 1.0, %v3466_v60 }
 0xbfa   :  { %3467 = vrcp.f32 %v467_v8  ;;  %v865_v8 = vrot.slane %v3871_v53, %v3878_v57 }
 0xc04   :  { %v3468_v7 = vpop.eup %3467 }
 0xc05   :  { %v474_v63 = vmul.f32 %v3468_v7, %v472_v13 }
 0xc68   :  { %v477_v61 = vpop.permute.xlu1 %476 }
 0xc69   :  { %v479_v62 = vmul.f32 %v3468_v7, %v477_v61 }
 0xc6b   :  { %481 = vrot.lane.b32.xlu0 %v479_v62, %s3620_s3 }
 0xcdd   :  { %v482_v3 = vpop.permute.xlu0 %481 }
 0xcde   :  { %v484_v4 = vadd.f32 %v482_v3, %v474_v63  ;;  %v3891_v63 = vsel %vm784_vm4, 1.0, %v3615_v1  ;;  %v3894_v3 = vsel %vm789_vm7, 1.0, %v3615_v1 }
 0xce0   :  { %3469 = vtanh.f32 %v484_v4  ;;  %v550_v25 = vrot.slane %v484_v4, 6 }
 0xcea   :  { %v3470_v5 = vpop.eup %3469 }
 0xceb   :  { %487 = vrot.lane.b32.xlu1 %v3470_v5, %s3619_s29 }
 0xd5d   :  { %v488_v6 = vpop.permute.xlu1 %487 }
 0xd5e   :  { %v490_v9 = vmul.f32 %v3468_v7, %v488_v6 }
 0xd60   :  { %v491_v10 = vpack.c.bf16 %v490_v9, %v490_v9 }
 0xd62   :  { %493 = vrot.lane.b32.xlu0 %v491_v10, %s3620_s3 }
 0xdd4   :  { %v494_v11 = vpop.permute.xlu0 %493 }
 0xdd5   :  { %3147 = vmatmul.mubr.msk.bf16.vlgmr.msra.gmra.mrb[8].mxu1 %vm110_vm1, %v494_v11 }
 0xdd6   :  { %3159 = vmatpush3.bf16.msra.mxu1 %v3706_v0  ;;  %3162 = vmatprep.mubr.msk.bf16.mxu1 %vm3616_vm0, %v3615_v1 }
 0xdd7   :  { %3160 = vmatprep.subr.bf16.mxu1 %v3615_v1 }
 0xdda   :  { %3161 = vmatpush3.bf16.msra.mxu1 %v3714_v2 }
 0xddb   :  { %3174 = vmatprep.subr.bf16.mxu1 %v3615_v1 }
 0xea8   :  { %v532_v12 = vpop.f32.mrb[8].mxu1 }
 0xea9   :  { %v539_v15 = vrot.slane %v532_v12, 6  ;;  %v3148_v16 = vpop.f32.mrb[9].mxu1 }
 0xeaa   :  { %v535_v17 = vpop.f32.mrb[10].mxu1 }
 0xeab   :  { %v541_v18 = vadd.f32 %v539_v15, %v3810_v52  ;;  %v3149_v19 = vpop.f32.mrb[11].mxu1 }
 0xead   :  { %3471 = vtanh.f32 %v541_v18  ;;  %v2915_v0 = vmul.f32 -1.442695, %v541_v18 }
 0xeaf   :  { %3473 = vpow2.f32 %v2915_v0 }
 0xeb7   :  { %v3472_v20 = vpop.eup %3471 }
 0xeb8   :  { %554 = vrot.lane.b32.xlu1 %v3472_v20, %s3619_s29  ;;  %v3906_v20 = vsel %vm794_vm10, 1.0, %v3615_v1 }
 0xeb9   :  { %v3474_v21 = vpop.eup %3473 }
 0xeba   :  { %v545_v22 = vadd.f32 1.0, %v3474_v21 }
 0xebc   :  { %3475 = vrcp.f32 %v545_v22 }
 0xec6   :  { %v3476_v23 = vpop.eup %3475 }
 0xec7   :  { %v552_v26 = vmul.f32 %v3476_v23, %v550_v25 }
 0xf2a   :  { %v555_v2 = vpop.permute.xlu1 %554 }
 0xf2b   :  { %v557_v24 = vmul.f32 %v3476_v23, %v555_v2  ;;  %v3913_v2 = vsel %vm778_vm11, 1.0, %v3615_v1 }
 0xf2d   :  { %559 = vrot.lane.b32.xlu0 %v557_v24, %s3620_s3 }
 0xf9f   :  { %v560_v27 = vpop.permute.xlu0 %559 }
 0xfa0   :  { %v3827_v28 = vadd.f32 %v560_v27, %v552_v26 }
 0xfa2   :  { %3477 = vtanh.f32 %v3827_v28  ;;  %v629_v26 = vrot.slane %v3827_v28, 6 }
 0xfac   :  { %v3478_v29 = vpop.eup %3477 }
 0xfad   :  { %565 = vrot.lane.b32.xlu1 %v3478_v29, %s3619_s29 }
0x101f   :  { %v566_v30 = vpop.permute.xlu1 %565 }
0x1020   :  { %v568_v31 = vmul.f32 %v3476_v23, %v566_v30 }
0x1022   :  { %v569_v32 = vpack.c.bf16 %v568_v31, %v568_v31 }
0x1024   :  { %v571_v33 = vrot.slane %v569_v32, 1 }
0x1026   :  { %572 = vrot.lane.b32.xlu0 %v571_v33, %s3620_s3 }
0x1098   :  { %v573_v35 = vpop.permute.xlu0 %572 }
0x1099   :  { %3155 = vmatmul.mubr.msk.bf16.vlgmr.msra.gmra.mrb[12].mxu0 %vm110_vm1, %v573_v35 }
0x109a   :  { %3167 = vmatpush3.bf16.msra.mxu0 %v3405_v34  ;;  %3170 = vmatprep.mubr.msk.bf16.mxu0 %vm3616_vm0, %v3615_v1 }
0x109b   :  { %3168 = vmatprep.subr.bf16.mxu0 %v3615_v1 }
0x109e   :  { %3169 = vmatpush3.bf16.msra.mxu0 %v3406_v36 }
0x109f   :  { %3180 = vmatprep.subr.bf16.mxu0 %v3615_v1 }
0x10a1   :  { %3171 = vmatmul.mubr.msk.bf16.vlgmr.msra.gmra.mrb[16].mxu0 %vm110_vm1, %v801_v39 }
0x10a2   :  { %3182 = vmatprep.mubr.msk.bf16.mxu0 %vm3616_vm0, %v3615_v1 }
0x116c   :  { %v611_v40 = vpop.f32.mrb[12].mxu0 }
0x116d   :  { %v618_v14 = vrot.slane %v611_v40, 4  ;;  %v3156_v41 = vpop.f32.mrb[13].mxu0  ;;  %v3939_v40 = vld [vmem:[%s4449_s1] sm:$0xff] }
0x116e   :  { %v614_v42 = vpop.f32.mrb[14].mxu0  ;;  %v3944_v41 = vld [vmem:[%s4449_s1 + $0x8] sm:$0xff] }
0x116f   :  { %v620_v43 = vadd.f32 %v618_v14, %v3810_v52  ;;  %v3157_v44 = vpop.f32.mrb[15].mxu0 }
0x1171   :  { %3479 = vtanh.f32 %v620_v43  ;;  %v2917_v56 = vmul.f32 -1.442695, %v620_v43 }
0x1173   :  { %3481 = vpow2.f32 %v2917_v56 }
0x1174   :  { %v3861_v47 = vpop.f32.mrb[16].mxu0 }
0x1175   :  { %v3172_v48 = vpop.f32.mrb[17].mxu0  ;;  %v866_v7 = vadd.f32 %v865_v8, %v3861_v47 }
0x1176   :  { %v3863_v49 = vpop.f32.mrb[18].mxu0 }
0x1177   :  { %v3173_v50 = vpop.f32.mrb[19].mxu0  ;;  %v867_v61 = vadd.f32 %v865_v8, %v3863_v49  ;;  %v868_v62 = vmul.f32 0.35355338, %v866_v7 }
0x1179   :  { %v869_v13 = vmul.f32 0.35355338, %v867_v61  ;;  %v975_v4 = vmul.f32 %v3891_v63, %v868_v62  ;;  %v1148_v11 = vmul.f32 %v3894_v3, %v868_v62  ;;  %v1275_v21 = vmul.f32 %v3906_v20, %v868_v62 }
0x117a   :  { %v891_v24 = vmul.f32 %v3913_v2, %v868_v62 }
0x117b   :  { %v3480_v54 = vpop.eup %3479  ;;  %v976_v5 = vmul.f32 %v3891_v63, %v869_v13  ;;  %v1149_v12 = vmul.f32 %v3894_v3, %v869_v13  ;;  %v1276_v22 = vmul.f32 %v3906_v20, %v869_v13  ;;  %v892_v25 = vmul.f32 %v3913_v2, %v869_v13 }
0x117c   :  { %633 = vrot.lane.b32.xlu1 %v3480_v54, %s3619_s29 }
0x117d   :  { %v3482_v58 = vpop.eup %3481  ;;  %v977_v15 = vpack.c.bf16 %v976_v5, %v975_v4  ;;  %v1150_v19 = vpack.c.bf16 %v1149_v12, %v1148_v11  ;;  %v1277_v23 = vpack.c.bf16 %v1276_v22, %v1275_v21  ;;  %v893_v30 = vpack.c.bf16 %v892_v25, %v891_v24 }
0x117e   :  { %v624_v60 = vadd.f32 1.0, %v3482_v58 }
0x1180   :  { %875 = vrot.lane.b32.xlu1 %v873_v55, %s3620_s3  ;;  %3483 = vrcp.f32 %v624_v60 }
0x118a   :  { %v3484_v6 = vpop.eup %3483 }
0x118b   :  { %v631_v27 = vmul.f32 %v3484_v6, %v629_v26 }
0x11ee   :  { %v634_v9 = vpop.permute.xlu1 %633 }
0x11ef   :  { %v636_v10 = vmul.f32 %v3484_v6, %v634_v9 }
0x11f1   :  { %638 = vrot.lane.b32.xlu0 %v636_v10, %s3620_s3 }
0x11f2   :  { %v876_v16 = vpop.permute.xlu1 %875 }
0x11f3   :  { %v878_v17 = vadd.f32 %v876_v16, %v3861_v47  ;;  %v879_v18 = vadd.f32 %v876_v16, %v3863_v49 }
0x11f5   :  { %v880_v0 = vpack.c.bf16 %v879_v18, %v878_v17 }
0x11f7   :  { %895 = vrot.lane.b32.xlu1 %v880_v0, %s3621_s24 }
0x1263   :  { %v639_v29 = vpop.permute.xlu0 %638 }
0x1264   :  { %v3918_v31 = vadd.f32 %v639_v29, %v631_v27  ;;  %v3393_v29 = vpack.i.bf16 %v3913_v2, %v3891_v63 }
0x1266   :  { %3485 = vtanh.f32 %v3918_v31 }
0x1269   :  { %v896_v32 = vpop.permute.xlu1 %895 }
0x126a   :  { %v901_v33 = vsel %vm110_vm1, %v896_v32, 0  ;;  %v3398_v32 = vpack.i.bf16 %v3906_v20, %v3894_v3 }
0x126b   :  { %3181 = vmatpush3.bf16.xpose.msra.mxu0 %v901_v33 }
0x126c   :  { %3198 = vmatprep.subr.bf16.mxu0 %v3615_v1 }
0x1270   :  { %v3486_v34 = vpop.eup %3485 }
0x1271   :  { %644 = vrot.lane.b32.xlu0 %v3486_v34, %s3619_s29 }
0x1272   :  { %3183 = vmatmul.mubr.msk.bf16.vlgmr.msra.gmra.mrb[20].mxu0 %vm110_vm1, %v977_v15 }
0x1273   :  { %3199 = vmatpush3.bf16.xpose.msra.mxu0 %v901_v33  ;;  %3200 = vmatprep.mubr.msk.bf16.mxu0 %vm3616_vm0, %v3615_v1 }
0x1274   :  { %3210 = vmatprep.subr.bf16.mxu0 %v3615_v1 }
0x127a   :  { %3201 = vmatmul.mubr.msk.bf16.vlgmr.msra.gmra.mrb[24].mxu0 %vm110_vm1, %v1150_v19 }
0x127b   :  { %3211 = vmatpush3.bf16.xpose.msra.mxu0 %v901_v33  ;;  %3212 = vmatprep.mubr.msk.bf16.mxu0 %vm3616_vm0, %v3615_v1 }
0x127c   :  { %3222 = vmatprep.subr.bf16.mxu0 %v3615_v1 }
0x1282   :  { %3213 = vmatmul.mubr.msk.bf16.vlgmr.msra.gmra.mrb[28].mxu0 %vm110_vm1, %v1277_v23 }
0x1283   :  { %3226 = vmatprep.mubr.msk.bf16.mxu0 %vm3616_vm0, %v3615_v1 }
0x12e3   :  { %v645_v28 = vpop.permute.xlu0 %644 }
0x12e4   :  { %v647_v35 = vmul.f32 %v3484_v6, %v645_v28 }
0x12e6   :  { %v648_v36 = vpack.c.bf16 %v647_v35, %v647_v35 }
0x12e8   :  { %v650_v39 = vrot.slane %v648_v36, 2 }
0x12ea   :  { %651 = vrot.lane.b32.xlu0 %v650_v39, %s3620_s3 }
0x1345   :  { %v1015_v14 = vpop.f32.mrb[20].mxu0 }
0x1346   :  { %v1016_v42 = vadd.f32 %v1015_v14, %v3939_v40  ;;  %v3184_v43 = vpop.f32.mrb[21].mxu0 }
0x1347   :  { %v1018_v44 = vpop.f32.mrb[22].mxu0 }
0x1348   :  { %v1019_v45 = vadd.f32 %v1018_v44, %v3944_v41  ;;  %v1022_v48 = vsel %vm944_vm12, %v1016_v42, -inf  ;;  %v3185_v50 = vpop.f32.mrb[23].mxu0 }
0x1349   :  { %1023 = vmax.xlane.f32.xlu1 %v1022_v48 }
0x134a   :  { %v1025_v54 = vsel %vm944_vm12, %v1019_v45, -inf }
0x134b   :  { %1026 = vmax.xlane.f32.xlu0 %v1025_v54 }
0x134d   :  { %v1188_v55 = vpop.f32.mrb[24].mxu0 }
0x134e   :  { %v3202_v56 = vpop.f32.mrb[25].mxu0  ;;  %v1189_v18 = vadd.f32 %v1188_v55, %v3939_v40 }
0x134f   :  { %v1191_v58 = vpop.f32.mrb[26].mxu0 }
0x1350   :  { %v1192_v60 = vadd.f32 %v1191_v58, %v3944_v41  ;;  %v3203_v8 = vpop.f32.mrb[27].mxu0  ;;  %v1195_v25 = vsel %vm944_vm12, %v1189_v18, -inf }
0x1352   :  { %v1198_v7 = vsel %vm944_vm12, %v1192_v60, -inf }
0x1353   :  { %1199 = vmax.xlane.f32.xlu1 %v1198_v7 }
0x1355   :  { %v1315_v61 = vpop.f32.mrb[28].mxu0 }
0x1356   :  { %v3214_v62 = vpop.f32.mrb[29].mxu0  ;;  %v1316_v24 = vadd.f32 %v1315_v61, %v3939_v40 }
0x1357   :  { %v1318_v13 = vpop.f32.mrb[30].mxu0 }
0x1358   :  { %v3215_v4 = vpop.f32.mrb[31].mxu0  ;;  %v1319_v22 = vadd.f32 %v1318_v13, %v3944_v41  ;;  %v1322_v27 = vsel %vm944_vm12, %v1316_v24, -inf }
0x135a   :  { %v1325_v26 = vsel %vm944_vm12, %v1319_v22, -inf }
0x135c   :  { %v652_v5 = vpop.permute.xlu0 %651 }
0x135d   :  { %3163 = vmatmul.mubr.msk.bf16.vlgmr.msra.gmra.mrb[12].mxu1 %vm110_vm1, %v652_v5 }
0x135e   :  { %3175 = vmatpush3.bf16.xpose.msra.mxu1 %v901_v33  ;;  %3176 = vmatprep.mubr.msk.bf16.mxu1 %vm3616_vm0, %v3615_v1 }
0x135f   :  { %3186 = vmatprep.subr.bf16.mxu1 %v3615_v1 }
0x1365   :  { %3177 = vmatmul.mubr.msk.bf16.vlgmr.msra.gmra.mrb[16].mxu1 %vm110_vm1, %v893_v30  ;;  %v3980_v30 = vsub.s32 2, %v3859_v46 }
0x1366   :  { %3188 = vmatprep.mubr.msk.bf16.mxu1 %vm3616_vm0, %v3615_v1 }
0x1367   :  { %v884_v33 = vrot.slane %v3871_v53, %v3980_v30 }
0x13d6   :  { %v1024_v34 = vpop.xlane.xlu1 %1023 }
0x13d7   :  { %v1028_v35 = vsub.f32 %v1016_v42, %v1024_v34 }
0x13d8   :  { %v1027_v28 = vpop.xlane.xlu0 %1026 }
0x13d9   :  { %v1029_v39 = vsub.f32 %v1019_v45, %v1027_v28  ;;  %v1030_v14 = vmul.f32 1.442695, %v1028_v35 }
0x13db   :  { %v1032_v44 = vmul.f32 1.442695, %v1029_v39  ;;  %3487 = vpow2.f32 %v1030_v14 }
0x13dd   :  { %3489 = vpow2.f32 %v1032_v44 }
0x13e0   :  { %v1200_v36 = vpop.xlane.xlu1 %1199 }
0x13e1   :  { %v1202_v43 = vsub.f32 %v1192_v60, %v1200_v36 }
0x13e3   :  { %v1205_v48 = vmul.f32 1.442695, %v1202_v43 }
0x13e5   :  { %3491 = vpow2.f32 %v1205_v48  ;;  %v3989_v50 = vpop.eup %3487 }
0x13e6   :  { %v1034_v55 = vsel %vm944_vm12, %v3989_v50, 0.0 }
0x13e7   :  { %v3991_v54 = vpop.eup %3489 }
0x13e8   :  { %v1037_v42 = vsel %vm944_vm12, %v3991_v54, 0.0 }
0x13ef   :  { %v3995_v56 = vpop.eup %3491 }
0x13f0   :  { %v1210_v45 = vsel %vm944_vm12, %v3995_v56, 0.0 }
0x1430   :  { %v3959_v6 = vpop.f32.mrb[12].mxu1 }
0x1431   :  { %v3164_v9 = vpop.f32.mrb[13].mxu1 }
0x1432   :  { %v693_v10 = vpop.f32.mrb[14].mxu1 }
0x1433   :  { %v3165_v11 = vpop.f32.mrb[15].mxu1 }
0x1438   :  { %v937_v12 = vpop.f32.mrb[16].mxu1 }
0x1439   :  { %v3962_v15 = vadd.f32 %v937_v12, %v3939_v40  ;;  %v3178_v16 = vpop.f32.mrb[17].mxu1 }
0x143a   :  { %v940_v17 = vpop.f32.mrb[18].mxu1 }
0x143b   :  { %v3966_v19 = vadd.f32 %v940_v17, %v3944_v41  ;;  %v3179_v0 = vpop.f32.mrb[19].mxu1  ;;  %v945_v21 = vsel %vm944_vm12, %v3962_v15, -inf }
0x143c   :  { %946 = vmax.xlane.f32.xlu0 %v945_v21 }
0x143d   :  { %v948_v23 = vsel %vm944_vm12, %v3966_v19, -inf }
0x143e   :  { %949 = vmax.xlane.f32.xlu1 %v948_v23 }
0x1440   :  { %1196 = vmax.xlane.f32.xlu0 %v1195_v25 }
0x1442   :  { %1326 = vmax.xlane.f32.xlu1 %v1325_v26 }
0x1444   :  { %1323 = vmax.xlane.f32.xlu0 %v1322_v27 }
0x1453   :  { %3394 = vrot.lane.b32.xlu1 %v3393_v29, %s3619_s29 }
0x1457   :  { %3399 = vrot.lane.b32.xlu1 %v3398_v32, %s3619_s29 }
0x145a   :  { %886 = vrot.lane.b32.xlu0 %v884_v33, %s3619_s29 }
0x1479   :  { %1035 = vadd.xlane.f32.xlu0 %v1034_v55 }
0x147b   :  { %1038 = vadd.xlane.f32.xlu1 %v1037_v42 }
0x147d   :  { %1211 = vadd.xlane.f32.xlu0 %v1210_v45 }
0x14c9   :  { %v947_v58 = vpop.xlane.xlu0 %946 }
0x14ca   :  { %v951_v9 = vsub.f32 %v3962_v15, %v947_v58  ;;  %v697_v58 = vrot.slane %v3959_v6, 2 }
0x14cb   :  { %v950_v60 = vpop.xlane.xlu1 %949 }
0x14cc   :  { %v953_v23 = vmul.f32 1.442695, %v951_v9 }
0x14cd   :  { %v1197_v8 = vpop.xlane.xlu0 %1196 }
0x14ce   :  { %v1201_v7 = vsub.f32 %v1189_v18, %v1197_v8 }
0x14cf   :  { %v1327_v61 = vpop.xlane.xlu1 %1326 }
0x14d0   :  { %v1203_v62 = vmul.f32 1.442695, %v1201_v7  ;;  %v1329_v13 = vsub.f32 %v1319_v22, %v1327_v61  ;;  %v952_v22 = vsub.f32 %v3966_v19, %v950_v60  ;;  %v699_v7 = vadd.f32 %v697_v58, %v3810_v52 }
0x14d1   :  { %v1324_v4 = vpop.xlane.xlu0 %1323 }
0x14d2   :  { %3493 = vpow2.f32 %v1203_v62  ;;  %v1328_v5 = vsub.f32 %v1316_v24, %v1324_v4  ;;  %v1332_v10 = vmul.f32 1.442695, %v1329_v13  ;;  %v955_v36 = vmul.f32 1.442695, %v952_v22 }
0x14d3   :  { %v3395_v11 = vpop.permute.xlu1 %3394  ;;  %v2919_v6 = vmul.f32 -1.442695, %v699_v7 }
0x14d4   :  { %v1330_v12 = vmul.f32 1.442695, %v1328_v5  ;;  %v4002_v16 = vunpack.i.l.bf16 %v3395_v11  ;;  %v4004_v17 = vunpack.i.h.bf16 %v3395_v11 }
0x14d5   :  { %v887_v0 = vpop.permute.xlu0 %886 }
0x14d6   :  { %3495 = vpow2.f32 %v1330_v12  ;;  %v889_v21 = vadd.f32 %v887_v0, %v3861_v47  ;;  %v890_v18 = vadd.f32 %v887_v0, %v3863_v49 }
0x14d7   :  { %3497 = vpow2.f32 %v1332_v10  ;;  %v3400_v24 = vpop.permute.xlu1 %3399 }
0x14d8   :  { %v4009_v25 = vunpack.i.h.bf16 %v3400_v24  ;;  %v4011_v15 = vunpack.i.l.bf16 %v3400_v24  ;;  %v1049_v26 = vmul.f32 %v4002_v16, %v889_v21  ;;  %v1050_v27 = vmul.f32 %v4002_v16, %v890_v18 }
0x14d9   :  { %v972_v29 = vmul.f32 %v4004_v17, %v889_v21  ;;  %v973_v32 = vmul.f32 %v4004_v17, %v890_v18  ;;  %3499 = vpow2.f32 %v953_v23 }
0x14da   :  { %v1051_v47 = vpack.c.bf16 %v1050_v27, %v1049_v26  ;;  %v1222_v49 = vmul.f32 %v4011_v15, %v889_v21  ;;  %v1223_v33 = vmul.f32 %v4011_v15, %v890_v18  ;;  %v1349_v19 = vmul.f32 %v4009_v25, %v889_v21 }
0x14db   :  { %v1350_v34 = vmul.f32 %v4009_v25, %v890_v18  ;;  %v974_v28 = vpack.c.bf16 %v973_v32, %v972_v29  ;;  %3501 = vpow2.f32 %v955_v36 }
0x14dc   :  { %v4021_v35 = vpop.eup %3493  ;;  %v1224_v39 = vpack.c.bf16 %v1223_v33, %v1222_v49  ;;  %3503 = vtanh.f32 %v699_v7 }
0x14dd   :  { %v1207_v14 = vsel %vm944_vm12, %v4021_v35, 0.0  ;;  %v1351_v43 = vpack.c.bf16 %v1350_v34, %v1349_v19  ;;  %3505 = vpow2.f32 %v2919_v6  ;;  %v3407_v6 = vld [vmem:[%s4454_s6] sm:$0xff]  }
0x14de   :  { %1208 = vadd.xlane.f32.xlu1 %v1207_v14  ;;  %3223 = vmatpush3.bf16.msra.mxu0 %v3407_v6 }
0x14df   :  { %3224 = vmatprep.subr.bf16.mxu0 %v3615_v1 }
0x14e0   :  { %v4025_v44 = vpop.eup %3495 }
0x14e1   :  { %v4027_v48 = vpop.eup %3497  ;;  %v1334_v55 = vsel %vm944_vm12, %v4025_v44, 0.0 }
0x14e2   :  { %1335 = vadd.xlane.f32.xlu0 %v1334_v55  ;;  %v1337_v42 = vsel %vm944_vm12, %v4027_v48, 0.0 }
0x14e3   :  { %v3500_v45 = vpop.eup %3499 }
0x14e4   :  { %v957_v60 = vsel %vm944_vm12, %v3500_v45, 0.0 }
0x14e5   :  { %v3502_v8 = vpop.eup %3501 }
0x14e6   :  { %1338 = vadd.xlane.f32.xlu0 %v1337_v42  ;;  %v960_v61 = vsel %vm944_vm12, %v3502_v8, 0.0  ;;  %v3504_v62 = vpop.eup %3503 }
0x14e7   :  { %v3506_v52 = vpop.eup %3505 }
0x14e8   :  { %v703_v12 = vadd.f32 1.0, %v3506_v52 }
0x14ea   :  { %958 = vadd.xlane.f32.xlu0 %v957_v60 }
0x14ee   :  { %961 = vadd.xlane.f32.xlu0 %v960_v61 }
0x14ef   :  { %1053 = vrot.lane.b32.xlu1 %v1051_v47, %s3619_s29 }
0x14f3   :  { %1226 = vrot.lane.b32.xlu1 %v1224_v39, %s3619_s29 }
0x14f7   :  { %1353 = vrot.lane.b32.xlu1 %v1351_v43, %s3619_s29 }
0x14fb   :  { %712 = vrot.lane.b32.xlu1 %v3504_v62, %s3619_s29 }
0x1504   :  { %1101 = vrot.lane.b32.xlu0 %v974_v28, %s3619_s29 }
0x1506   :  { %v1036_v4 = vpop.xlane.xlu0 %1035 }
0x1508   :  { %v1039_v13 = vpop.xlane.xlu1 %1038 }
0x1509   :  { %3507 = vrcp.f32 %v1039_v13  ;;  %v4079_v13 = vsub.s32 7, %v3859_v46 }
0x150a   :  { %3509 = vrcp.f32 %v1036_v4  ;;  %v1212_v9 = vpop.xlane.xlu0 %1211 }
0x150b   :  { %3511 = vrcp.f32 %v703_v12 }
0x1513   :  { %v3508_v5 = vpop.eup %3507 }
0x1514   :  { %v3510_v11 = vpop.eup %3509  ;;  %v1043_v0 = vmul.f32 %v3508_v5, %v3991_v54 }
0x1515   :  { %v1042_v21 = vmul.f32 %v3510_v11, %v3989_v50  ;;  %v3512_v54 = vpop.eup %3511 }
0x1517   :  { %v1044_v22 = vpack.c.bf16 %v1043_v0, %v1042_v21 }
0x156b   :  { %v1209_v10 = vpop.xlane.xlu1 %1208 }
0x156f   :  { %v1336_v18 = vpop.xlane.xlu0 %1335  ;;  %v1054_v23 = vpop.permute.xlu1 %1053 }
0x1570   :  { %3187 = vmatpush3.bf16.msra.mxu1 %v1054_v23 }
0x1571   :  { %3192 = vmatprep.subr.bf16.mxu1 %v3615_v1 }
0x1573   :  { %v1339_v24 = vpop.xlane.xlu0 %1338  ;;  %3189 = vmatmul.mubr.msk.bf16.vlgmr.msra.gmra.mrb[20].mxu1 %vm944_vm12, %v1044_v22  ;;  %v1227_v26 = vpop.permute.xlu1 %1226  ;;  %v3409_v22 = vld [vmem:[%s4455_s7] sm:$0xff]  }
0x1574   :  { %3194 = vmatprep.mubr.msk.bf16.mxu1 %vm3616_vm0, %v3615_v1 }
0x1577   :  { %v959_v27 = vpop.xlane.xlu0 %958  ;;  %v1354_v29 = vpop.permute.xlu1 %1353 }
0x1578   :  { %3513 = vrcp.f32 %v959_v27 }
0x157b   :  { %v962_v32 = vpop.xlane.xlu0 %961  ;;  %v713_v50 = vpop.permute.xlu1 %712 }
0x157c   :  { %3515 = vrcp.f32 %v962_v32  ;;  %v715_v47 = vmul.f32 %v3512_v54, %v713_v50  ;;  %v4106_v32 = vsub.s32 3, %v3859_v46 }
0x157d   :  { %3517 = vrcp.f32 %v1209_v10 }
0x157e   :  { %717 = vrot.lane.b32.xlu1 %v715_v47, %s3620_s3  ;;  %3519 = vrcp.f32 %v1212_v9  ;;  %v1410_v50 = vrot.slane %v3871_v53, %v4106_v32 }
0x157f   :  { %v1102_v49 = vpop.permute.xlu0 %1101  ;;  %3521 = vrcp.f32 %v1339_v24 }
0x1580   :  { %3193 = vmatpush3.bf16.msra.mxu1 %v1102_v49  ;;  %3523 = vrcp.f32 %v1336_v18 }
0x1581   :  { %3204 = vmatprep.subr.bf16.mxu1 %v3615_v1 }
0x1582   :  { %v3514_v33 = vpop.eup %3513 }
0x1583   :  { %v965_v34 = vmul.f32 %v3514_v33, %v3500_v45 }
0x1586   :  { %v3516_v19 = vpop.eup %3515 }
0x1587   :  { %v966_v28 = vmul.f32 %v3516_v19, %v3502_v8  ;;  %v3518_v39 = vpop.eup %3517 }
0x1588   :  { %v3520_v14 = vpop.eup %3519  ;;  %v1215_v43 = vmul.f32 %v3518_v39, %v4021_v35 }
0x1589   :  { %v967_v36 = vpack.c.bf16 %v966_v28, %v965_v34  ;;  %v1216_v55 = vmul.f32 %v3520_v14, %v3995_v56  ;;  %v3522_v45 = vpop.eup %3521  ;;  %v708_v56 = vrot.slane %v3918_v31, 6  ;;  %v4076_v31 = vsub.s32 6, %v3859_v46 }
0x158a   :  { %v3524_v58 = vpop.eup %3523  ;;  %v1343_v60 = vmul.f32 %v3522_v45, %v4027_v48 }
0x158b   :  { %3195 = vmatmul.mubr.msk.bf16.vlgmr.msra.gmra.mrb[20].mxu1 %vm944_vm12, %v967_v36  ;;  %v1217_v42 = vpack.c.bf16 %v1216_v55, %v1215_v43  ;;  %v1342_v8 = vmul.f32 %v3524_v58, %v4025_v44  ;;  %v710_v35 = vmul.f32 %v3512_v54, %v708_v56  ;;  %v3408_v44 = vld [vmem:[%s4454_s6 + $0x8] sm:$0xff]  }
0x158c   :  { %3205 = vmatpush3.bf16.msra.mxu1 %v1227_v26  ;;  %3206 = vmatprep.mubr.msk.bf16.mxu1 %vm3616_vm0, %v3615_v1 }
0x158d   :  { %3216 = vmatprep.subr.bf16.mxu1 %v3615_v1  ;;  %v1344_v7 = vpack.c.bf16 %v1343_v60, %v1342_v8  ;;  %3225 = vmatpush3.bf16.msra.mxu0 %v3408_v44 }
0x158e   :  { %3230 = vmatprep.subr.bf16.mxu0 %v3615_v1 }
0x1597   :  { %3207 = vmatmul.mubr.msk.bf16.vlgmr.msra.gmra.mrb[20].mxu1 %vm944_vm12, %v1217_v42 }
0x1598   :  { %3217 = vmatpush3.bf16.msra.mxu1 %v1354_v29  ;;  %3218 = vmatprep.mubr.msk.bf16.mxu1 %vm3616_vm0, %v3615_v1  ;;  %v3410_v29 = vld [vmem:[%s4455_s7 + $0x8] sm:$0xff]  }
0x1599   :  { %3238 = vmatprep.subr.bf16.mxu1 %v3615_v1 }
0x15a3   :  { %3219 = vmatmul.mubr.msk.bf16.vlgmr.msra.gmra.mrb[20].mxu1 %vm944_vm12, %v1344_v7 }
0x15a4   :  { %3242 = vmatprep.mubr.msk.bf16.mxu1 %vm3616_vm0, %v3615_v1 }
0x15f0   :  { %v718_v61 = vpop.permute.xlu1 %717 }
0x15f1   :  { %v720_v62 = vadd.f32 %v718_v61, %v710_v35 }
0x15f3   :  { %3525 = vtanh.f32 %v720_v62 }
0x15fd   :  { %v3526_v48 = vpop.eup %3525 }
0x15fe   :  { %723 = vrot.lane.b32.xlu0 %v3526_v48, %s3619_s29 }
0x1670   :  { %v724_v4 = vpop.permute.xlu0 %723 }
0x1671   :  { %v4081_v52 = vmul.f32 %v3512_v54, %v724_v4 }
0x1673   :  { %v749_v5 = vrot.slane %v4081_v52, %v4076_v31  ;;  %v767_v9 = vrot.slane %v4081_v52, %v4079_v13 }
0x1675   :  { %v751_v10 = vmul.f32 0.0, %v749_v5  ;;  %v768_v11 = vmul.f32 0.0, %v767_v9 }
0x1676   :  { %v1393_v12 = vpop.f32.mrb[20].mxu1 }
0x1677   :  { %v3220_v0 = vpop.f32.mrb[21].mxu1  ;;  %v770_v21 = vadd.f32 %v768_v11, %v749_v5  ;;  %v771_v18 = vadd.f32 %v767_v9, %v751_v10  ;;  %v1514_v11 = vsub.s32 4, %v3859_v46 }
0x1678   :  { %v1396_v23 = vpop.f32.mrb[22].mxu1  ;;  %v1499_v0 = vrot.slane %v3871_v53, %v4076_v31 }
0x1679   :  { %v1402_v24 = vpack.c.bf16 %v1396_v23, %v1393_v12  ;;  %v3221_v26 = vpop.f32.mrb[23].mxu1  ;;  %v772_v27 = vpack.c.bf16 %v771_v18, %v770_v21  ;;  %v4120_v12 = vld [vmem:[%s4458_s10 + $0x8] sm:$0xf]  ;;  %v1515_v18 = vrot.slane %v3871_v53, %v1514_v11 }
0x167b   :  { %1517 = vrot.lane.b32.xlu1 %v772_v27, %s3620_s3  ;;  %3227 = vmatmul.mubr.msk.bf16.vlgmr.msra.gmra.mrb[32].mxu0 %vm110_vm1, %v1402_v24 }
0x167c   :  { %3231 = vmatpush3.bf16.msra.mxu0 %v3409_v22  ;;  %3234 = vmatprep.mubr.msk.bf16.mxu0 %vm3616_vm0, %v3615_v1  ;;  %v1505_v22 = vrot.slane %v4120_v12, %v3866_v51 }
0x167d   :  { %3232 = vmatprep.subr.bf16.mxu0 %v3615_v1 }
0x1680   :  { %3233 = vmatpush3.bf16.msra.mxu0 %v3410_v29 }
0x1681   :  { %3246 = vmatprep.subr.bf16.mxu0 %v3615_v1 }
0x16ed   :  { %v4099_v54 = vpop.permute.xlu1 %1517 }
0x16ee   :  { %3235 = vmatmul.mubr.msk.bf16.vlgmr.msra.gmra.mrb[36].mxu0 %vm110_vm1, %v4099_v54 }
0x16ef   :  { %3254 = vmatprep.mubr.msk.bf16.mxu0 %vm3616_vm0, %v3615_v1 }
0x174e   :  { %v1460_v47 = vpop.f32.mrb[32].mxu0 }
0x174f   :  { %v1461_v49 = vadd.f32 %v1460_v47, %v1410_v50  ;;  %v3228_v33 = vpop.f32.mrb[33].mxu0 }
0x1750   :  { %v1463_v19 = vpop.f32.mrb[34].mxu0 }
0x1751   :  { %v1464_v34 = vadd.f32 %v1463_v19, %v1410_v50  ;;  %v3229_v28 = vpop.f32.mrb[35].mxu0  ;;  %v1467_v36 = vadd.f32 %v1461_v49, %v3844_v37 }
0x1753   :  { %v1469_v39 = vsel %vm110_vm1, %v1467_v36, 0.0  ;;  %v1468_v14 = vadd.f32 %v1464_v34, %v3849_v38 }
0x1754   :  { %1470 = vadd.xlane.f32.xlu0 %v1469_v39 }
0x1755   :  { %v1472_v43 = vsel %vm110_vm1, %v1468_v14, 0.0 }
0x1756   :  { %1473 = vadd.xlane.f32.xlu1 %v1472_v43 }
0x17c1   :  { %v1568_v55 = vpop.f32.mrb[36].mxu0 }
0x17c2   :  { %v3236_v42 = vpop.f32.mrb[37].mxu0  ;;  %v1569_v27 = vadd.f32 %v1568_v55, %v1515_v18 }
0x17c3   :  { %v1571_v45 = vpop.f32.mrb[38].mxu0 }
0x17c4   :  { %v3237_v58 = vpop.f32.mrb[39].mxu0  ;;  %v1572_v33 = vadd.f32 %v1571_v45, %v1515_v18 }
0x17e1   :  { %v1471_v60 = vpop.xlane.xlu0 %1470 }
0x17e2   :  { %v1476_v8 = vmul.f32 0.03125, %v1471_v60 }
0x17e3   :  { %v1474_v7 = vpop.xlane.xlu1 %1473 }
0x17e4   :  { %v1478_v56 = vsub.f32 %v1467_v36, %v1476_v8  ;;  %v1477_v35 = vmul.f32 0.03125, %v1474_v7 }
0x17e6   :  { %v1479_v61 = vsub.f32 %v1468_v14, %v1477_v35  ;;  %v1480_v62 = vmul.f32 %v1478_v56, %v1478_v56  ;;  %v3412_v35 = vld [vmem:[%s4456_s8 + $0x8] sm:$0xff]  }
0x17e8   :  { %v1482_v37 = vsel %vm110_vm1, %v1480_v62, 0.0  ;;  %v1481_v6 = vmul.f32 %v1479_v61, %v1479_v61  ;;  %v3414_v62 = vld [vmem:[%s4457_s9 + $0x8] sm:$0xff]  }
0x17e9   :  { %1483 = vadd.xlane.f32.xlu0 %v1482_v37 }
0x17ea   :  { %v1485_v38 = vsel %vm110_vm1, %v1481_v6, 0.0 }
0x17ed   :  { %1486 = vadd.xlane.f32.xlu0 %v1485_v38 }
0x1876   :  { %v1484_v44 = vpop.xlane.xlu0 %1483 }
0x1877   :  { %v1488_v48 = vmul.f32 0.03125, %v1484_v44 }
0x1879   :  { %v1490_v4 = vadd.f32 1e-05, %v1488_v48 }
0x187a   :  { %v1487_v5 = vpop.xlane.xlu0 %1486 }
0x187b   :  { %3527 = vrsqrt.f32 %v1490_v4  ;;  %v1489_v9 = vmul.f32 0.03125, %v1487_v5 }
0x187d   :  { %v1491_v10 = vadd.f32 1e-05, %v1489_v9  ;;  %v1606_v9 = vrot.slane %v3871_v53, %v4079_v13 }
0x187f   :  { %3529 = vrsqrt.f32 %v1491_v10 }
0x1885   :  { %v3528_v21 = vpop.eup %3527 }
0x1886   :  { %v1494_v23 = vmul.f32 %v3528_v21, %v1478_v56  ;;  %v3411_v56 = vld [vmem:[%s4456_s8] sm:$0xff]   ;;  %v1612_v21 = vrot.slane %v4120_v12, %v3980_v30 }
0x1887   :  { %3239 = vmatpush3.bf16.msra.mxu1 %v3411_v56 }
0x1888   :  { %v1500_v24 = vmul.f32 %v1499_v0, %v1494_v23  ;;  %3240 = vmatprep.subr.bf16.mxu1 %v3615_v1 }
0x1889   :  { %v3530_v26 = vpop.eup %3529 }
0x188a   :  { %v1506_v29 = vadd.f32 %v1505_v22, %v1500_v24  ;;  %v1495_v50 = vmul.f32 %v3530_v26, %v1479_v61  ;;  %v3413_v61 = vld [vmem:[%s4457_s9] sm:$0xff]  }
0x188b   :  { %3241 = vmatpush3.bf16.msra.mxu1 %v3412_v35  ;;  %3247 = vmatpush3.bf16.msra.mxu0 %v3413_v61 }
0x188c   :  { %v1575_v47 = vadd.f32 %v1569_v27, %v1506_v29  ;;  %v1501_v49 = vmul.f32 %v1499_v0, %v1495_v50  ;;  %3258 = vmatprep.subr.bf16.mxu1 %v3615_v1  ;;  %3248 = vmatprep.subr.bf16.mxu0 %v3615_v1  ;;  %v3415_v29 = vld [vmem:[%s4457_s9 + $0x10] sm:$0xff]   ;;  %v3416_v50 = vld [vmem:[%s4457_s9 + $0x18] sm:$0xff]  }
0x188e   :  { %v1577_v19 = vsel %vm110_vm1, %v1575_v47, 0.0  ;;  %v1507_v34 = vadd.f32 %v1505_v22, %v1501_v49 }
0x188f   :  { %1578 = vadd.xlane.f32.xlu1 %v1577_v19  ;;  %3249 = vmatpush3.bf16.msra.mxu0 %v3414_v62 }
0x1890   :  { %v1576_v28 = vadd.f32 %v1572_v33, %v1507_v34  ;;  %3250 = vmatprep.subr.bf16.mxu0 %v3615_v1 }
0x1892   :  { %v1580_v36 = vsel %vm110_vm1, %v1576_v28, 0.0 }
0x1893   :  { %1581 = vadd.xlane.f32.xlu0 %v1580_v36  ;;  %3251 = vmatpush3.bf16.msra.mxu0 %v3415_v29 }
0x1894   :  { %3252 = vmatprep.subr.bf16.mxu0 %v3615_v1 }
0x1897   :  { %3253 = vmatpush3.bf16.msra.mxu0 %v3416_v50 }
0x1898   :  { %3272 = vmatprep.subr.bf16.mxu0 %v3615_v1 }
0x191c   :  { %v1579_v39 = vpop.xlane.xlu1 %1578 }
0x191d   :  { %v1583_v14 = vmul.f32 0.03125, %v1579_v39 }
0x191f   :  { %v1585_v43 = vsub.f32 %v1575_v47, %v1583_v14  ;;  %v2941_v47 = vld [vmem:[%s4459_s11] ss:$0 sm:$0xff] }
0x1920   :  { %v1582_v42 = vpop.xlane.xlu0 %1581 }
0x1921   :  { %v1584_v58 = vmul.f32 0.03125, %v1582_v42  ;;  %v1587_v60 = vmul.f32 %v1585_v43, %v1585_v43  ;;  %v1696_v42 = vsub.s32 5, %v3859_v46 }
0x1923   :  { %v1586_v55 = vsub.f32 %v1576_v28, %v1584_v58  ;;  %v1589_v8 = vsel %vm110_vm1, %v1587_v60, 0.0  ;;  %v1697_v58 = vrot.slane %v3871_v53, %v1696_v42 }
0x1924   :  { %1590 = vadd.xlane.f32.xlu1 %v1589_v8 }
0x1925   :  { %v1588_v7 = vmul.f32 %v1586_v55, %v1586_v55 }
0x1927   :  { %v1592_v45 = vsel %vm110_vm1, %v1588_v7, 0.0 }
0x1928   :  { %1593 = vadd.xlane.f32.xlu0 %v1592_v45 }
0x19b1   :  { %v1591_v37 = vpop.xlane.xlu1 %1590 }
0x19b2   :  { %v1595_v6 = vmul.f32 0.03125, %v1591_v37 }
0x19b4   :  { %v1597_v38 = vadd.f32 1e-05, %v1595_v6 }
0x19b5   :  { %v1594_v44 = vpop.xlane.xlu0 %1593 }
0x19b6   :  { %3531 = vrsqrt.f32 %v1597_v38  ;;  %v1596_v48 = vmul.f32 0.03125, %v1594_v44 }
0x19b8   :  { %v1598_v4 = vadd.f32 1e-05, %v1596_v48 }
0x19ba   :  { %3533 = vrsqrt.f32 %v1598_v4 }
0x19c0   :  { %v3532_v5 = vpop.eup %3531 }
0x19c1   :  { %v1601_v10 = vmul.f32 %v3532_v5, %v1585_v43 }
0x19c3   :  { %v1607_v18 = vmul.f32 %v1606_v9, %v1601_v10 }
0x19c4   :  { %v3534_v0 = vpop.eup %3533 }
0x19c5   :  { %v1602_v23 = vmul.f32 %v3534_v0, %v1586_v55  ;;  %v1613_v24 = vadd.f32 %v1612_v21, %v1607_v18  ;;  %v3418_v18 = vld [vmem:[%s4453_s5 + $0x18] sm:$0xff]  }
0x19c7   :  { %v1608_v22 = vmul.f32 %v1606_v9, %v1602_v23  ;;  %v4188_v23 = vld [vmem:[%s4458_s10 + $0x10] sm:$0xff] }
0x19c9   :  { %v1614_v26 = vadd.f32 %v1612_v21, %v1608_v22  ;;  %v3417_v21 = vld [vmem:[%s4453_s5 + $0x10] sm:$0xff]   ;;  %v1883_v22 = vrot.slane %v4188_v23, %v3866_v51 }
0x19cb   :  { %v1615_v27 = vpack.c.bf16 %v1614_v26, %v1613_v24 }
0x19cd   :  { %3243 = vmatmul.mubr.msk.bf16.vlgmr.msra.gmra.mrb[24].mxu1 %vm110_vm1, %v1615_v27 }
0x19ce   :  { %3262 = vmatprep.mubr.msk.bf16.mxu1 %vm3616_vm0, %v3615_v1  ;;  %3259 = vmatpush3.bf16.msra.mxu1 %v3417_v21 }
0x19cf   :  { %3260 = vmatprep.subr.bf16.mxu1 %v3615_v1 }
0x19d2   :  { %3261 = vmatpush3.bf16.msra.mxu1 %v3418_v18 }
0x19d3   :  { %3266 = vmatprep.subr.bf16.mxu1 %v3615_v1 }
0x1aa0   :  { %v1676_v49 = vpop.f32.mrb[24].mxu1 }
0x1aa1   :  { %v1677_v33 = vadd.f32 %v2941_v47, %v1676_v49  ;;  %v3244_v19 = vpop.f32.mrb[25].mxu1  ;;  %v1798_v49 = vrot.slane %v4120_v12, %v3878_v57 }
0x1aa2   :  { %v1679_v34 = vpop.f32.mrb[26].mxu1 }
0x1aa3   :  { %v1680_v28 = vadd.f32 %v2941_v47, %v1679_v34  ;;  %v3245_v36 = vpop.f32.mrb[27].mxu1  ;;  %v1683_v39 = vmax.f32 %v1677_v33, 0.0 }
0x1aa5   :  { %v1684_v14 = vmax.f32 %v1680_v28, 0.0  ;;  %v1804_v28 = vrot.slane %v4120_v12, %v4106_v32 }
0x1aa7   :  { %v1685_v43 = vpack.c.bf16 %v1684_v14, %v1683_v39 }
0x1aa9   :  { %3255 = vmatmul.mubr.msk.bf16.vlgmr.msra.gmra.mrb[40].mxu0 %vm1722_vm13, %v1685_v43 }
0x1aaa   :  { %3274 = vmatprep.mubr.msk.bf16.mxu0 %vm3616_vm0, %v3615_v1 }
0x1b7c   :  { %v1760_v60 = vpop.f32.mrb[40].mxu0 }
0x1b7d   :  { %v1761_v55 = vadd.f32 %v1760_v60, %v1697_v58  ;;  %v3256_v8 = vpop.f32.mrb[41].mxu0 }
0x1b7e   :  { %v1763_v7 = vpop.f32.mrb[42].mxu0 }
0x1b7f   :  { %v1764_v45 = vadd.f32 %v1763_v7, %v1697_v58  ;;  %v3257_v56 = vpop.f32.mrb[43].mxu0  ;;  %v1767_v35 = vadd.f32 %v1761_v55, %v1613_v24  ;;  %v1875_v55 = vrot.slane %v4188_v23, %v3878_v57 }
0x1b81   :  { %v1769_v61 = vsel %vm110_vm1, %v1767_v35, 0.0  ;;  %v1768_v62 = vadd.f32 %v1764_v45, %v1614_v26 }
0x1b82   :  { %1770 = vadd.xlane.f32.xlu1 %v1769_v61 }
0x1b83   :  { %v1772_v37 = vsel %vm110_vm1, %v1768_v62, 0.0 }
0x1b84   :  { %1773 = vadd.xlane.f32.xlu0 %v1772_v37 }
0x1c0f   :  { %v1771_v6 = vpop.xlane.xlu1 %1770 }
0x1c10   :  { %v1775_v38 = vmul.f32 0.03125, %v1771_v6 }
0x1c11   :  { %v1774_v44 = vpop.xlane.xlu0 %1773 }
0x1c12   :  { %v1777_v48 = vsub.f32 %v1767_v35, %v1775_v38  ;;  %v1776_v4 = vmul.f32 0.03125, %v1774_v44 }
0x1c14   :  { %v1778_v53 = vsub.f32 %v1768_v62, %v1776_v4  ;;  %v1779_v5 = vmul.f32 %v1777_v48, %v1777_v48 }
0x1c16   :  { %v1781_v9 = vsel %vm110_vm1, %v1779_v5, 0.0  ;;  %v1780_v10 = vmul.f32 %v1778_v53, %v1778_v53 }
0x1c17   :  { %1782 = vadd.xlane.f32.xlu1 %v1781_v9 }
0x1c18   :  { %v1784_v0 = vsel %vm110_vm1, %v1780_v10, 0.0 }
0x1c19   :  { %1785 = vadd.xlane.f32.xlu0 %v1784_v0 }
0x1c28   :  { %1885 = vrot.lane.b32.xlu1 %v1883_v22, %s3620_s3 }
0x1ca4   :  { %v1783_v24 = vpop.xlane.xlu1 %1782 }
0x1ca5   :  { %v1787_v26 = vmul.f32 0.03125, %v1783_v24 }
0x1ca6   :  { %v1786_v27 = vpop.xlane.xlu0 %1785 }
0x1ca7   :  { %v1789_v29 = vadd.f32 1e-05, %v1787_v26  ;;  %v1788_v50 = vmul.f32 0.03125, %v1786_v27 }
0x1ca8   :  { %v1886_v12 = vpop.permute.xlu1 %1885 }
0x1ca9   :  { %3535 = vrsqrt.f32 %v1789_v29  ;;  %v1790_v47 = vadd.f32 1e-05, %v1788_v50 }
0x1cab   :  { %3537 = vrsqrt.f32 %v1790_v47 }
0x1cb3   :  { %v3536_v33 = vpop.eup %3535 }
0x1cb4   :  { %v1793_v19 = vmul.f32 %v3536_v33, %v1777_v48 }
0x1cb5   :  { %v3538_v34 = vpop.eup %3537 }
0x1cb6   :  { %v1799_v36 = vmul.f32 %v1798_v49, %v1793_v19  ;;  %v1794_v39 = vmul.f32 %v3538_v34, %v1778_v53 }
0x1cb8   :  { %v1800_v14 = vmul.f32 %v1798_v49, %v1794_v39  ;;  %v4198_v43 = vadd.f32 %v1804_v28, %v1799_v36 }
0x1cba   :  { %v4200_v58 = vadd.f32 %v1804_v28, %v1800_v14 }
0x1cbc   :  { %v1810_v60 = vpack.c.bf16 %v4200_v58, %v4198_v43 }
0x1cbe   :  { %3263 = vmatmul.mubr.msk.bf16.vlgmr.msra.gmra.mrb[28].mxu1 %vm110_vm1, %v1810_v60 }
0x1cbf   :  { %3268 = vmatprep.mubr.msk.bf16.mxu1 %vm3616_vm0, %v3615_v1 }
0x1d91   :  { %v4209_v8 = vpop.f32.mrb[28].mxu1 }
0x1d92   :  { %v1876_v7 = vadd.f32 %v1875_v55, %v4209_v8  ;;  %v3264_v45 = vpop.f32.mrb[29].mxu1  ;;  %v1888_v6 = vadd.f32 %v1886_v12, %v4209_v8 }
0x1d93   :  { %v4212_v56 = vpop.f32.mrb[30].mxu1 }
0x1d94   :  { %v1878_v35 = vmul.f32 0.35355338, %v1876_v7  ;;  %v1877_v61 = vadd.f32 %v1875_v55, %v4212_v56  ;;  %v1889_v62 = vadd.f32 %v1886_v12, %v4212_v56  ;;  %v3265_v37 = vpop.f32.mrb[31].mxu1 }
0x1d96   :  { %v1879_v38 = vmul.f32 0.35355338, %v1877_v61  ;;  %v1890_v44 = vpack.c.bf16 %v1889_v62, %v1888_v6  ;;  %v1901_v48 = vmul.f32 %v3913_v2, %v1878_v35  ;;  %v1980_v4 = vmul.f32 %v3891_v63, %v1878_v35 }
0x1d97   :  { %v2149_v53 = vmul.f32 %v3894_v3, %v1878_v35  ;;  %v2272_v5 = vmul.f32 %v3906_v20, %v1878_v35 }
0x1d98   :  { %v1902_v9 = vmul.f32 %v3913_v2, %v1879_v38  ;;  %v1981_v10 = vmul.f32 %v3891_v63, %v1879_v38  ;;  %v2150_v0 = vmul.f32 %v3894_v3, %v1879_v38  ;;  %v2273_v21 = vmul.f32 %v3906_v20, %v1879_v38  ;;  %1905 = vrot.lane.b32.xlu0 %v1890_v44, %s3621_s24 }
0x1d9a   :  { %v1903_v18 = vpack.c.bf16 %v1902_v9, %v1901_v48  ;;  %v1982_v22 = vpack.c.bf16 %v1981_v10, %v1980_v4  ;;  %v2151_v24 = vpack.c.bf16 %v2150_v0, %v2149_v53  ;;  %v2274_v26 = vpack.c.bf16 %v2273_v21, %v2272_v5 }
0x1d9b   :  { %v1894_v0 = vrot.slane %v4188_v23, %v3980_v30 }
0x1e0a   :  { %v1906_v27 = vpop.permute.xlu0 %1905 }
0x1e0b   :  { %v1911_v29 = vsel %vm110_vm1, %v1906_v27, 0 }
0x1e0c   :  { %3267 = vmatpush3.bf16.xpose.msra.mxu1 %v1911_v29  ;;  %3273 = vmatpush3.bf16.xpose.msra.mxu0 %v1911_v29 }
0x1e0d   :  { %3290 = vmatprep.subr.bf16.mxu0 %v3615_v1  ;;  %3278 = vmatprep.subr.bf16.mxu1 %v3615_v1 }
0x1e13   :  { %3269 = vmatmul.mubr.msk.bf16.vlgmr.msra.gmra.mrb[32].mxu1 %vm110_vm1, %v1903_v18  ;;  %3275 = vmatmul.mubr.msk.bf16.vlgmr.msra.gmra.mrb[44].mxu0 %vm110_vm1, %v1982_v22 }
0x1e14   :  { %3291 = vmatpush3.bf16.xpose.msra.mxu0 %v1911_v29  ;;  %3292 = vmatprep.mubr.msk.bf16.mxu0 %vm3616_vm0, %v3615_v1 }
0x1e15   :  { %3302 = vmatprep.subr.bf16.mxu0 %v3615_v1  ;;  %3280 = vmatprep.mubr.msk.bf16.mxu1 %vm3616_vm0, %v3615_v1 }
0x1e1b   :  { %3293 = vmatmul.mubr.msk.bf16.vlgmr.msra.gmra.mrb[48].mxu0 %vm110_vm1, %v2151_v24 }
0x1e1c   :  { %3303 = vmatpush3.bf16.xpose.msra.mxu0 %v1911_v29  ;;  %3304 = vmatprep.mubr.msk.bf16.mxu0 %vm3616_vm0, %v3615_v1 }
0x1e1d   :  { %3314 = vmatprep.subr.bf16.mxu0 %v3615_v1 }
0x1e23   :  { %3305 = vmatmul.mubr.msk.bf16.vlgmr.msra.gmra.mrb[52].mxu0 %vm110_vm1, %v2274_v26 }
0x1e24   :  { %3318 = vmatprep.mubr.msk.bf16.mxu0 %vm3616_vm0, %v3615_v1 }
0x1ee6   :  { %v1947_v63 = vpop.f32.mrb[32].mxu1  ;;  %v2020_v3 = vpop.f32.mrb[44].mxu0 }
0x1ee7   :  { %v2021_v20 = vadd.f32 %v2020_v3, %v3939_v40  ;;  %v3270_v2 = vpop.f32.mrb[33].mxu1  ;;  %v3276_v50 = vpop.f32.mrb[45].mxu0  ;;  %v1948_v33 = vadd.f32 %v1947_v63, %v3939_v40 }
0x1ee8   :  { %v1950_v47 = vpop.f32.mrb[34].mxu1  ;;  %v2023_v49 = vpop.f32.mrb[46].mxu0 }
0x1ee9   :  { %v2024_v19 = vadd.f32 %v2023_v49, %v3944_v41  ;;  %v3271_v34 = vpop.f32.mrb[35].mxu1  ;;  %v3277_v28 = vpop.f32.mrb[47].mxu0  ;;  %v2027_v36 = vsel %vm944_vm12, %v2021_v20, -inf  ;;  %v1951_v39 = vadd.f32 %v1950_v47, %v3944_v41  ;;  %v1954_v60 = vsel %vm944_vm12, %v1948_v33, -inf }
0x1eea   :  { %2028 = vmax.xlane.f32.xlu1 %v2027_v36 }
0x1eeb   :  { %v2030_v14 = vsel %vm944_vm12, %v2024_v19, -inf  ;;  %v1957_v45 = vsel %vm944_vm12, %v1951_v39, -inf }
0x1eec   :  { %2031 = vmax.xlane.f32.xlu0 %v2030_v14 }
0x1eee   :  { %v2189_v55 = vpop.f32.mrb[48].mxu0  ;;  %1955 = vmax.xlane.f32.xlu1 %v1954_v60 }
0x1eef   :  { %v2190_v12 = vadd.f32 %v2189_v55, %v3939_v40  ;;  %v3294_v7 = vpop.f32.mrb[49].mxu0 }
0x1ef0   :  { %v2192_v35 = vpop.f32.mrb[50].mxu0  ;;  %1958 = vmax.xlane.f32.xlu0 %v1957_v45 }
0x1ef1   :  { %v2193_v61 = vadd.f32 %v2192_v35, %v3944_v41  ;;  %v3295_v62 = vpop.f32.mrb[51].mxu0  ;;  %v2196_v37 = vsel %vm944_vm12, %v2190_v12, -inf }
0x1ef2   :  { %2197 = vmax.xlane.f32.xlu1 %v2196_v37 }
0x1ef3   :  { %v2199_v6 = vsel %vm944_vm12, %v2193_v61, -inf }
0x1ef4   :  { %2200 = vmax.xlane.f32.xlu0 %v2199_v6 }
0x1ef6   :  { %v2312_v38 = vpop.f32.mrb[52].mxu0 }
0x1ef7   :  { %v4256_v44 = vadd.f32 %v2312_v38, %v3939_v40  ;;  %v3306_v48 = vpop.f32.mrb[53].mxu0 }
0x1ef8   :  { %v2315_v4 = vpop.f32.mrb[54].mxu0 }
0x1ef9   :  { %v4259_v53 = vadd.f32 %v2315_v4, %v3944_v41  ;;  %v3307_v5 = vpop.f32.mrb[55].mxu0  ;;  %v2319_v9 = vsel %vm944_vm12, %v4256_v44, -inf }
0x1efa   :  { %2320 = vmax.xlane.f32.xlu1 %v2319_v9 }
0x1efb   :  { %v2322_v10 = vsel %vm944_vm12, %v4259_v53, -inf }
0x1efc   :  { %2323 = vmax.xlane.f32.xlu0 %v2322_v10 }
0x1f0b   :  { %1896 = vrot.lane.b32.xlu1 %v1894_v0, %s3619_s29 }
0x1f77   :  { %v2029_v40 = vpop.xlane.xlu1 %2028 }
0x1f78   :  { %v2033_v21 = vsub.f32 %v2021_v20, %v2029_v40 }
0x1f79   :  { %v2032_v18 = vpop.xlane.xlu0 %2031 }
0x1f7a   :  { %v2035_v22 = vmul.f32 1.442695, %v2033_v21  ;;  %v2034_v41 = vsub.f32 %v2024_v19, %v2032_v18 }
0x1f7b   :  { %v1956_v24 = vpop.xlane.xlu1 %1955 }
0x1f7c   :  { %3539 = vpow2.f32 %v2035_v22  ;;  %v1960_v26 = vsub.f32 %v1948_v33, %v1956_v24  ;;  %v2037_v27 = vmul.f32 1.442695, %v2034_v41 }
0x1f7d   :  { %v1959_v29 = vpop.xlane.xlu0 %1958 }
0x1f7e   :  { %v1962_v63 = vmul.f32 1.442695, %v1960_v26  ;;  %v1961_v3 = vsub.f32 %v1951_v39, %v1959_v29 }
0x1f7f   :  { %v2198_v2 = vpop.xlane.xlu1 %2197 }
0x1f80   :  { %3541 = vpow2.f32 %v1962_v63  ;;  %v2202_v50 = vsub.f32 %v2190_v12, %v2198_v2  ;;  %v1964_v49 = vmul.f32 1.442695, %v1961_v3 }
0x1f81   :  { %3543 = vpow2.f32 %v2037_v27  ;;  %v2201_v47 = vpop.xlane.xlu0 %2200 }
0x1f82   :  { %v2204_v34 = vmul.f32 1.442695, %v2202_v50  ;;  %v2203_v28 = vsub.f32 %v2193_v61, %v2201_v47 }
0x1f84   :  { %3545 = vpow2.f32 %v2204_v34  ;;  %v2206_v19 = vmul.f32 1.442695, %v2203_v28 }
0x1f85   :  { %3547 = vpow2.f32 %v1964_v49 }
0x1f86   :  { %v4268_v20 = vpop.eup %3539  ;;  %3549 = vpow2.f32 %v2206_v19 }
0x1f87   :  { %v2321_v36 = vpop.xlane.xlu1 %2320  ;;  %v2039_v33 = vsel %vm944_vm12, %v4268_v20, 0.0 }
0x1f88   :  { %2040 = vadd.xlane.f32.xlu0 %v2039_v33 }
0x1f8a   :  { %v4272_v14 = vpop.eup %3541 }
0x1f8b   :  { %v4274_v39 = vpop.eup %3543  ;;  %v1897_v60 = vpop.permute.xlu1 %1896  ;;  %v1966_v55 = vsel %vm944_vm12, %v4272_v14, 0.0 }
0x1f8c   :  { %v1899_v12 = vadd.f32 %v1897_v60, %v4209_v8  ;;  %v1900_v7 = vadd.f32 %v1897_v60, %v4212_v56  ;;  %1967 = vadd.xlane.f32.xlu0 %v1966_v55  ;;  %v2042_v35 = vsel %vm944_vm12, %v4274_v39, 0.0 }
0x1f8e   :  { %v4280_v45 = vpop.eup %3545  ;;  %v1977_v61 = vmul.f32 %v4004_v17, %v1899_v12  ;;  %v1978_v62 = vmul.f32 %v4004_v17, %v1900_v7  ;;  %v2050_v37 = vmul.f32 %v4002_v16, %v1899_v12  ;;  %v2051_v38 = vmul.f32 %v4002_v16, %v1900_v7 }
0x1f8f   :  { %v2208_v6 = vsel %vm944_vm12, %v4280_v45, 0.0  ;;  %v2219_v8 = vmul.f32 %v4011_v15, %v1899_v12  ;;  %v2220_v56 = vmul.f32 %v4011_v15, %v1900_v7  ;;  %v3548_v48 = vpop.eup %3547  ;;  %v2342_v5 = vmul.f32 %v4009_v25, %v1899_v12  ;;  %v2324_v15 = vpop.xlane.xlu0 %2323 }
0x1f90   :  { %2209 = vadd.xlane.f32.xlu1 %v2208_v6  ;;  %2043 = vadd.xlane.f32.xlu0 %v2042_v35  ;;  %v1979_v4 = vpack.c.bf16 %v1978_v62, %v1977_v61  ;;  %v2343_v9 = vmul.f32 %v4009_v25, %v1900_v7  ;;  %v2052_v17 = vpack.c.bf16 %v2051_v38, %v2050_v37  ;;  %v1969_v40 = vsel %vm944_vm12, %v3548_v48, 0.0  ;;  %v3550_v21 = vpop.eup %3549 }
0x1f91   :  { %v2221_v10 = vpack.c.bf16 %v2220_v56, %v2219_v8  ;;  %v2211_v16 = vsel %vm944_vm12, %v3550_v21, 0.0  ;;  %v2326_v18 = vsub.f32 %v4259_v53, %v2324_v15  ;;  %v2325_v25 = vsub.f32 %v4256_v44, %v2321_v36  ;;  %v3419_v53 = vld [vmem:[%s4454_s6 + $0x10] sm:$0xff]  }
0x1f92   :  { %v2344_v0 = vpack.c.bf16 %v2343_v9, %v2342_v5  ;;  %3315 = vmatpush3.bf16.msra.mxu0 %v3419_v53 }
0x1f93   :  { %v2329_v22 = vmul.f32 1.442695, %v2326_v18  ;;  %v2327_v41 = vmul.f32 1.442695, %v2325_v25  ;;  %3316 = vmatprep.subr.bf16.mxu0 %v3615_v1  ;;  %v3422_v18 = vld [vmem:[%s4455_s7 + $0x18] sm:$0xff]  }
0x1f94   :  { %1970 = vadd.xlane.f32.xlu0 %v1969_v40 }
0x1f95   :  { %3551 = vpow2.f32 %v2329_v22  ;;  %v2404_v22 = vrot.slane %v4188_v23, %v4106_v32 }
0x1f96   :  { %3553 = vpow2.f32 %v2327_v41 }
0x1f98   :  { %2212 = vadd.xlane.f32.xlu0 %v2211_v16 }
0x1f9f   :  { %v3552_v24 = vpop.eup %3551 }
0x1fa0   :  { %v2334_v26 = vsel %vm944_vm12, %v3552_v24, 0.0  ;;  %v3554_v27 = vpop.eup %3553 }
0x1fa1   :  { %2102 = vrot.lane.b32.xlu1 %v1979_v4, %s3619_s29  ;;  %v2331_v29 = vsel %vm944_vm12, %v3554_v27, 0.0 }
0x1fae   :  { %2054 = vrot.lane.b32.xlu0 %v2052_v17, %s3619_s29  ;;  %v3420_v17 = vld [vmem:[%s4454_s6 + $0x18] sm:$0xff]  }
0x1faf   :  { %3317 = vmatpush3.bf16.msra.mxu0 %v3420_v17 }
0x1fb0   :  { %3322 = vmatprep.subr.bf16.mxu0 %v3615_v1 }
0x1fc5   :  { %2335 = vadd.xlane.f32.xlu1 %v2334_v26 }
0x1fcd   :  { %2332 = vadd.xlane.f32.xlu0 %v2331_v29 }
0x1fd6   :  { %2223 = vrot.lane.b32.xlu1 %v2221_v10, %s3619_s29 }
0x1fe3   :  { %2346 = vrot.lane.b32.xlu0 %v2344_v0, %s3619_s29 }
0x2015   :  { %v2041_v44 = vpop.xlane.xlu0 %2040 }
0x2016   :  { %3555 = vrcp.f32 %v2041_v44 }
0x2019   :  { %v1968_v63 = vpop.xlane.xlu0 %1967 }
0x201d   :  { %v2044_v3 = vpop.xlane.xlu0 %2043  ;;  %v2210_v49 = vpop.xlane.xlu1 %2209 }
0x201e   :  { %3557 = vrcp.f32 %v2044_v3 }
0x2020   :  { %v3556_v47 = vpop.eup %3555 }
0x2021   :  { %v1971_v2 = vpop.xlane.xlu0 %1970  ;;  %v2047_v19 = vmul.f32 %v3556_v47, %v4268_v20  ;;  %v2103_v60 = vpop.permute.xlu1 %2102 }
0x2022   :  { %3559 = vrcp.f32 %v1971_v2 }
0x2023   :  { %3561 = vrcp.f32 %v1968_v63 }
0x2025   :  { %v2213_v50 = vpop.xlane.xlu0 %2212 }
0x2026   :  { %3563 = vrcp.f32 %v2213_v50 }
0x2027   :  { %3565 = vrcp.f32 %v2210_v49 }
0x2028   :  { %v3558_v34 = vpop.eup %3557 }
0x2029   :  { %v2055_v28 = vpop.permute.xlu0 %2054  ;;  %v2048_v36 = vmul.f32 %v3558_v34, %v4274_v39 }
0x202a   :  { %3279 = vmatpush3.bf16.msra.mxu1 %v2055_v28 }
0x202b   :  { %3284 = vmatprep.subr.bf16.mxu1 %v3615_v1  ;;  %v2049_v33 = vpack.c.bf16 %v2048_v36, %v2047_v19 }
0x202c   :  { %v3560_v55 = vpop.eup %3559 }
0x202d   :  { %3281 = vmatmul.mubr.msk.bf16.vlgmr.msra.gmra.mrb[36].mxu1 %vm944_vm12, %v2049_v33  ;;  %v3562_v12 = vpop.eup %3561  ;;  %v1975_v7 = vmul.f32 %v3560_v55, %v3548_v48 }
0x202e   :  { %3285 = vmatpush3.bf16.msra.mxu1 %v2103_v60  ;;  %3286 = vmatprep.mubr.msk.bf16.mxu1 %vm3616_vm0, %v3615_v1  ;;  %v1974_v20 = vmul.f32 %v3562_v12, %v4272_v14 }
0x202f   :  { %3296 = vmatprep.subr.bf16.mxu1 %v3615_v1 }
0x2030   :  { %v1976_v35 = vpack.c.bf16 %v1975_v7, %v1974_v20  ;;  %v3564_v39 = vpop.eup %3563 }
0x2031   :  { %v3566_v62 = vpop.eup %3565  ;;  %v2217_v37 = vmul.f32 %v3564_v39, %v3550_v21  ;;  %v3421_v21 = vld [vmem:[%s4455_s7 + $0x10] sm:$0xff]  }
0x2032   :  { %v2216_v6 = vmul.f32 %v3566_v62, %v4280_v45  ;;  %v4358_v62 = vld [vmem:[%s4458_s10 + $0x18] sm:$0xf] }
0x2034   :  { %v2218_v8 = vpack.c.bf16 %v2217_v37, %v2216_v6  ;;  %v2492_v37 = vrot.slane %v4188_v23, %v4076_v31 }
0x2039   :  { %3287 = vmatmul.mubr.msk.bf16.vlgmr.msra.gmra.mrb[36].mxu1 %vm944_vm12, %v1976_v35 }
0x203a   :  { %3298 = vmatprep.mubr.msk.bf16.mxu1 %vm3616_vm0, %v3615_v1 }
0x2052   :  { %v2336_v61 = vpop.xlane.xlu1 %2335 }
0x2053   :  { %3567 = vrcp.f32 %v2336_v61 }
0x2056   :  { %v2224_v38 = vpop.permute.xlu1 %2223 }
0x2057   :  { %3297 = vmatpush3.bf16.msra.mxu1 %v2224_v38  ;;  %v2509_v38 = vrot.slane %v4188_v23, %v1514_v11 }
0x2058   :  { %3308 = vmatprep.subr.bf16.mxu1 %v3615_v1 }
0x205a   :  { %3299 = vmatmul.mubr.msk.bf16.vlgmr.msra.gmra.mrb[36].mxu1 %vm944_vm12, %v2218_v8  ;;  %v2333_v14 = vpop.xlane.xlu0 %2332 }
0x205b   :  { %3569 = vrcp.f32 %v2333_v14  ;;  %3310 = vmatprep.mubr.msk.bf16.mxu1 %vm3616_vm0, %v3615_v1  ;;  %v2498_v14 = vrot.slane %v4358_v62, %v3866_v51 }
0x205d   :  { %v3568_v48 = vpop.eup %3567 }
0x205e   :  { %v2347_v56 = vpop.permute.xlu0 %2346  ;;  %v2340_v45 = vmul.f32 %v3568_v48, %v3552_v24 }
0x205f   :  { %3309 = vmatpush3.bf16.msra.mxu1 %v2347_v56 }
0x2060   :  { %3330 = vmatprep.subr.bf16.mxu1 %v3615_v1 }
0x2065   :  { %v3570_v4 = vpop.eup %3569 }
0x2066   :  { %v2339_v5 = vmul.f32 %v3570_v4, %v3554_v27 }
0x2068   :  { %v2341_v9 = vpack.c.bf16 %v2340_v45, %v2339_v5 }
0x206a   :  { %3311 = vmatmul.mubr.msk.bf16.vlgmr.msra.gmra.mrb[36].mxu1 %vm944_vm12, %v2341_v9 }
0x206b   :  { %3334 = vmatprep.mubr.msk.bf16.mxu1 %vm3616_vm0, %v3615_v1 }
0x213d   :  { %v2386_v10 = vpop.f32.mrb[36].mxu1 }
0x213e   :  { %v3312_v0 = vpop.f32.mrb[37].mxu1 }
0x213f   :  { %v2389_v40 = vpop.f32.mrb[38].mxu1 }
0x2140   :  { %v2395_v16 = vpack.c.bf16 %v2389_v40, %v2386_v10  ;;  %v3313_v15 = vpop.f32.mrb[39].mxu1 }
0x2142   :  { %3319 = vmatmul.mubr.msk.bf16.vlgmr.msra.gmra.mrb[56].mxu0 %vm110_vm1, %v2395_v16 }
0x2143   :  { %3323 = vmatpush3.bf16.msra.mxu0 %v3421_v21  ;;  %3326 = vmatprep.mubr.msk.bf16.mxu0 %vm3616_vm0, %v3615_v1 }
0x2144   :  { %3324 = vmatprep.subr.bf16.mxu0 %v3615_v1 }
0x2147   :  { %3325 = vmatpush3.bf16.msra.mxu0 %v3422_v18 }
0x2148   :  { %3338 = vmatprep.subr.bf16.mxu0 %v3615_v1 }
0x214a   :  { %3327 = vmatmul.mubr.msk.bf16.vlgmr.msra.gmra.mrb[60].mxu0 %vm110_vm1, %v4099_v54 }
0x214b   :  { %3346 = vmatprep.mubr.msk.bf16.mxu0 %vm3616_vm0, %v3615_v1 }
0x2215   :  { %v2454_v25 = vpop.f32.mrb[56].mxu0 }
0x2216   :  { %v2455_v41 = vadd.f32 %v2454_v25, %v2404_v22  ;;  %v3320_v24 = vpop.f32.mrb[57].mxu0 }
0x2217   :  { %v2457_v26 = vpop.f32.mrb[58].mxu0 }
0x2218   :  { %v2458_v27 = vadd.f32 %v2457_v26, %v2404_v22  ;;  %v3321_v29 = vpop.f32.mrb[59].mxu0  ;;  %v2461_v53 = vadd.f32 %v2455_v41, %v4198_v43 }
0x2219   :  { %v3424_v29 = vld [vmem:[%s4456_s8 + $0x18] sm:$0xff]  }
0x221a   :  { %v2462_v44 = vadd.f32 %v2458_v27, %v4200_v58  ;;  %v2463_v63 = vsel %vm110_vm1, %v2461_v53, 0.0  ;;  %v3423_v27 = vld [vmem:[%s4456_s8 + $0x10] sm:$0xff]  }
0x221b   :  { %2464 = vadd.xlane.f32.xlu1 %v2463_v63  ;;  %3331 = vmatpush3.bf16.msra.mxu1 %v3423_v27 }
0x221c   :  { %v2466_v54 = vsel %vm110_vm1, %v2462_v44, 0.0  ;;  %3332 = vmatprep.subr.bf16.mxu1 %v3615_v1 }
0x221d   :  { %2467 = vadd.xlane.f32.xlu0 %v2466_v54  ;;  %v2556_v3 = vpop.f32.mrb[60].mxu0 }
0x221e   :  { %v3328_v2 = vpop.f32.mrb[61].mxu0  ;;  %v2557_v4 = vadd.f32 %v2556_v3, %v2509_v38 }
0x221f   :  { %v2559_v50 = vpop.f32.mrb[62].mxu0  ;;  %3333 = vmatpush3.bf16.msra.mxu1 %v3424_v29 }
0x2220   :  { %v3329_v47 = vpop.f32.mrb[63].mxu0  ;;  %v2560_v10 = vadd.f32 %v2559_v50, %v2509_v38  ;;  %3350 = vmatprep.subr.bf16.mxu1 %v3615_v1 }
0x22a8   :  { %v2465_v49 = vpop.xlane.xlu1 %2464 }
0x22a9   :  { %v2469_v34 = vmul.f32 0.03125, %v2465_v49 }
0x22aa   :  { %v2468_v28 = vpop.xlane.xlu0 %2467 }
0x22ab   :  { %v2471_v19 = vsub.f32 %v2461_v53, %v2469_v34  ;;  %v2470_v36 = vmul.f32 0.03125, %v2468_v28  ;;  %v3425_v53 = vld [vmem:[%s4457_s9 + $0x20] sm:$0xff]   ;;  %v2594_v34 = vrot.slane %v4188_v23, %v4079_v13  ;;  %v3427_v13 = vld [vmem:[%s4457_s9 + $0x30] sm:$0xff]  }
0x22ac   :  { %3339 = vmatpush3.bf16.msra.mxu0 %v3425_v53 }
0x22ad   :  { %v2472_v33 = vsub.f32 %v2462_v44, %v2470_v36  ;;  %v2473_v60 = vmul.f32 %v2471_v19, %v2471_v19  ;;  %v3426_v44 = vld [vmem:[%s4457_s9 + $0x28] sm:$0xff]   ;;  %3340 = vmatprep.subr.bf16.mxu0 %v3615_v1  ;;  %v2600_v36 = vrot.slane %v4358_v62, %v3980_v30  ;;  %v3428_v30 = vld [vmem:[%s4457_s9 + $0x38] sm:$0xff]  }
0x22af   :  { %v2475_v43 = vsel %vm110_vm1, %v2473_v60, 0.0  ;;  %v2474_v58 = vmul.f32 %v2472_v33, %v2472_v33 }
0x22b0   :  { %2476 = vadd.xlane.f32.xlu1 %v2475_v43  ;;  %3341 = vmatpush3.bf16.msra.mxu0 %v3426_v44 }
0x22b1   :  { %v2478_v55 = vsel %vm110_vm1, %v2474_v58, 0.0  ;;  %3342 = vmatprep.subr.bf16.mxu0 %v3615_v1 }
0x22b4   :  { %2479 = vadd.xlane.f32.xlu1 %v2478_v55  ;;  %3343 = vmatpush3.bf16.msra.mxu0 %v3427_v13 }
0x22b5   :  { %3344 = vmatprep.subr.bf16.mxu0 %v3615_v1 }
0x22b8   :  { %3345 = vmatpush3.bf16.msra.mxu0 %v3428_v30 }
0x233d   :  { %v2477_v12 = vpop.xlane.xlu1 %2476 }
0x233e   :  { %v2481_v7 = vmul.f32 0.03125, %v2477_v12 }
0x2340   :  { %v2483_v20 = vadd.f32 1e-05, %v2481_v7  ;;  %v2986_v7 = vld [vmem:[%s4459_s11 + $0x1] ss:$0 sm:$0xff] }
0x2341   :  { %v2480_v35 = vpop.xlane.xlu1 %2479 }
0x2342   :  { %3571 = vrsqrt.f32 %v2483_v20  ;;  %v2482_v39 = vmul.f32 0.03125, %v2480_v35 }
0x2344   :  { %v2484_v61 = vadd.f32 1e-05, %v2482_v39 }
0x2346   :  { %3573 = vrsqrt.f32 %v2484_v61 }
0x234c   :  { %v3572_v6 = vpop.eup %3571 }
0x234d   :  { %v2487_v8 = vmul.f32 %v3572_v6, %v2471_v19 }
0x234f   :  { %v2493_v56 = vmul.f32 %v2492_v37, %v2487_v8 }
0x2350   :  { %v3574_v48 = vpop.eup %3573 }
0x2351   :  { %v2499_v45 = vadd.f32 %v2498_v14, %v2493_v56  ;;  %v2488_v5 = vmul.f32 %v3574_v48, %v2472_v33  ;;  %v2688_v56 = vrot.slane %v4188_v23, %v1696_v42 }
0x2353   :  { %v2563_v9 = vadd.f32 %v2557_v4, %v2499_v45  ;;  %v2494_v17 = vmul.f32 %v2492_v37, %v2488_v5 }
0x2355   :  { %v2565_v0 = vsel %vm110_vm1, %v2563_v9, 0.0  ;;  %v2500_v31 = vadd.f32 %v2498_v14, %v2494_v17 }
0x2356   :  { %2566 = vadd.xlane.f32.xlu1 %v2565_v0 }
0x2357   :  { %v2564_v40 = vadd.f32 %v2560_v10, %v2500_v31 }
0x2359   :  { %v2568_v21 = vsel %vm110_vm1, %v2564_v40, 0.0 }
0x235a   :  { %2569 = vadd.xlane.f32.xlu1 %v2568_v21 }
0x23e3   :  { %v2567_v11 = vpop.xlane.xlu1 %2566 }
0x23e4   :  { %v2571_v16 = vmul.f32 0.03125, %v2567_v11 }
0x23e6   :  { %v2573_v15 = vsub.f32 %v2563_v9, %v2571_v16 }
0x23e7   :  { %v2570_v51 = vpop.xlane.xlu1 %2569 }
0x23e8   :  { %v2572_v18 = vmul.f32 0.03125, %v2570_v51  ;;  %v2575_v22 = vmul.f32 %v2573_v15, %v2573_v15 }
0x23ea   :  { %v2574_v25 = vsub.f32 %v2564_v40, %v2572_v18  ;;  %v2577_v41 = vsel %vm110_vm1, %v2575_v22, 0.0 }
0x23eb   :  { %2578 = vadd.xlane.f32.xlu0 %v2577_v41  ;;  %v3430_v41 = vld [vmem:[%s4460_s12 + $0x8] sm:$0xff]  }
0x23ec   :  { %v2576_v24 = vmul.f32 %v2574_v25, %v2574_v25 }
0x23ee   :  { %v2580_v26 = vsel %vm110_vm1, %v2576_v24, 0.0 }
0x23ef   :  { %2581 = vadd.xlane.f32.xlu1 %v2580_v26 }
0x2478   :  { %v2579_v63 = vpop.xlane.xlu0 %2578 }
0x2479   :  { %v2583_v54 = vmul.f32 0.03125, %v2579_v63  ;;  %v2788_v63 = vrot.slane %v4358_v62, %v3878_v57 }
0x247b   :  { %v2585_v3 = vadd.f32 1e-05, %v2583_v54 }
0x247c   :  { %v2582_v2 = vpop.xlane.xlu1 %2581 }
0x247d   :  { %3575 = vrsqrt.f32 %v2585_v3  ;;  %v2584_v50 = vmul.f32 0.03125, %v2582_v2 }
0x247f   :  { %v2586_v47 = vadd.f32 1e-05, %v2584_v50 }
0x2481   :  { %3577 = vrsqrt.f32 %v2586_v47 }
0x2487   :  { %v3576_v49 = vpop.eup %3575 }
0x2488   :  { %v2589_v28 = vmul.f32 %v3576_v49, %v2573_v15 }
0x248a   :  { %v2595_v33 = vmul.f32 %v2594_v34, %v2589_v28 }
0x248b   :  { %v3578_v19 = vpop.eup %3577 }
0x248c   :  { %v2590_v60 = vmul.f32 %v3578_v19, %v2574_v25  ;;  %v2601_v58 = vadd.f32 %v2600_v36, %v2595_v33  ;;  %v3429_v25 = vld [vmem:[%s4460_s12] sm:$0xff]   ;;  %s3622_s12 = smov [#allocation2]  }
0x248e   :  { %v2596_v43 = vmul.f32 %v2594_v34, %v2590_v60 }
0x2490   :  { %v2602_v55 = vadd.f32 %v2600_v36, %v2596_v43 }
0x2492   :  { %v2603_v12 = vpack.c.bf16 %v2602_v55, %v2601_v58 }
0x2494   :  { %3335 = vmatmul.mubr.msk.bf16.vlgmr.msra.gmra.mrb[40].mxu1 %vm110_vm1, %v2603_v12 }
0x2495   :  { %3354 = vmatprep.mubr.msk.bf16.mxu1 %vm3616_vm0, %v3615_v1  ;;  %3351 = vmatpush3.bf16.msra.mxu1 %v3429_v25 }
0x2496   :  { %3352 = vmatprep.subr.bf16.mxu1 %v3615_v1  ;;  %v2794_v1 = vrot.slane %v4358_v62, %v4106_v32 }
0x2499   :  { %3353 = vmatpush3.bf16.msra.mxu1 %v3430_v41 }
0x2567   :  { %v2666_v20 = vpop.f32.mrb[40].mxu1 }
0x2568   :  { %v2667_v35 = vadd.f32 %v2986_v7, %v2666_v20  ;;  %v3336_v39 = vpop.f32.mrb[41].mxu1 }
0x2569   :  { %v2669_v61 = vpop.f32.mrb[42].mxu1 }
0x256a   :  { %v2670_v37 = vadd.f32 %v2986_v7, %v2669_v61  ;;  %v3337_v6 = vpop.f32.mrb[43].mxu1  ;;  %v2673_v38 = vmax.f32 %v2667_v35, 0.0 }
0x256c   :  { %v2674_v8 = vmax.f32 %v2670_v37, 0.0 }
0x256e   :  { %v2675_v14 = vpack.c.bf16 %v2674_v8, %v2673_v38 }
0x2570   :  { %3347 = vmatmul.mubr.msk.bf16.vlgmr.msra.gmra.mrb[64].mxu0 %vm1722_vm13, %v2675_v14 }
0x2643   :  { %v2750_v48 = vpop.f32.mrb[64].mxu0 }
0x2644   :  { %v2751_v4 = vadd.f32 %v2750_v48, %v2688_v56  ;;  %v3348_v45 = vpop.f32.mrb[65].mxu0 }
0x2645   :  { %v2753_v5 = vpop.f32.mrb[66].mxu0 }
0x2646   :  { %v2757_v9 = vadd.f32 %v2751_v4, %v2601_v58  ;;  %v2754_v17 = vadd.f32 %v2753_v5, %v2688_v56  ;;  %v3349_v10 = vpop.f32.mrb[67].mxu0 }
0x2648   :  { %v2758_v0 = vadd.f32 %v2754_v17, %v2602_v55  ;;  %v2759_v31 = vsel %vm110_vm1, %v2757_v9, 0.0 }
0x2649   :  { %2760 = vadd.xlane.f32.xlu0 %v2759_v31 }
0x264a   :  { %v2762_v40 = vsel %vm110_vm1, %v2758_v0, 0.0 }
0x264b   :  { %2763 = vadd.xlane.f32.xlu1 %v2762_v40 }
0x26d6   :  { %v2761_v21 = vpop.xlane.xlu0 %2760 }
0x26d7   :  { %v2765_v11 = vmul.f32 0.03125, %v2761_v21 }
0x26d8   :  { %v2764_v16 = vpop.xlane.xlu1 %2763 }
0x26d9   :  { %v2767_v46 = vsub.f32 %v2757_v9, %v2765_v11  ;;  %v2766_v15 = vmul.f32 0.03125, %v2764_v16 }
0x26db   :  { %v2768_v42 = vsub.f32 %v2758_v0, %v2766_v15  ;;  %v2769_v23 = vmul.f32 %v2767_v46, %v2767_v46 }
0x26dd   :  { %v2771_v51 = vsel %vm110_vm1, %v2769_v23, 0.0  ;;  %v2770_v18 = vmul.f32 %v2768_v42, %v2768_v42 }
0x26de   :  { %2772 = vadd.xlane.f32.xlu0 %v2771_v51 }
0x26df   :  { %v2774_v22 = vsel %vm110_vm1, %v2770_v18, 0.0 }
0x26e0   :  { %2775 = vadd.xlane.f32.xlu1 %v2774_v22 }
0x26f4   :  { %728 = vrot.lane.b32.xlu0 %v4081_v52, %s3620_s3  ;;  %s2890_s3 = sshll.u32 %s3622_s12, 4  ;;  %s2891_s3 = int_to_ptr.vmem [resolvable:$true] %s2890_s3 }
0x26f5   :  { %s3591_s29 = scalar_lea.vmem %s2891_s3, 32  ;;  %p3596_p1 = scmp.lt.s32.totalorder %s2891_s3, %s2891_s3 }
0x26f6   :  { %p3592_p0 = scmp.ne.s32.totalorder %s2891_s3, %s3591_s29  ;;  %p3597_p2 = scmp.lt.s32.totalorder %s3591_s29, %s3591_s29 }
0x26f8   :  { %p3598_p3 = por %p3597_p2, %p3596_p1 }
0x26fa   :  { %p3599_p4 = pnand %p3598_p3, %p3592_p0 }
0x276b   :  { %v2773_v24 = vpop.xlane.xlu0 %2772 }
0x276c   :  { %v2777_v26 = vmul.f32 0.03125, %v2773_v24 }
0x276d   :  { %v2776_v27 = vpop.xlane.xlu1 %2775 }
0x276e   :  { %v2779_v29 = vadd.f32 1e-05, %v2777_v26  ;;  %v2778_v53 = vmul.f32 0.03125, %v2776_v27 }
0x276f   :  { %v729_v44 = vpop.permute.xlu0 %728 }
0x2770   :  { %3579 = vrsqrt.f32 %v2779_v29  ;;  %v2780_v52 = vadd.f32 1e-05, %v2778_v53  ;;  %732 = vst.msk [vmem:[#allocation2 - $0x6] sm:$0xc0] %vm731_vm14, %v729_v44 }
0x2772   :  { %3581 = vrsqrt.f32 %v2780_v52 }
0x277a   :  { %v3580_v54 = vpop.eup %3579 }
0x277b   :  { %v2783_v3 = vmul.f32 %v3580_v54, %v2767_v46 }
0x277c   :  { %v3582_v2 = vpop.eup %3581 }
0x277d   :  { %v2789_v50 = vmul.f32 %v2788_v63, %v2783_v3  ;;  %v2784_v47 = vmul.f32 %v3582_v2, %v2768_v42 }
0x277f   :  { %v2790_v49 = vmul.f32 %v2788_v63, %v2784_v47  ;;  %v2795_v34 = vadd.f32 %v2794_v1, %v2789_v50 }
0x2781   :  { %v2796_v28 = vadd.f32 %v2794_v1, %v2790_v49 }
0x2783   :  { %v2797_v19 = vpack.c.bf16 %v2796_v28, %v2795_v34 }
0x2785   :  { %3355 = vmatmul.mubr.msk.bf16.vlgmr.msra.gmra.mrb[44].mxu1 %vm110_vm1, %v2797_v19 }
0x2786   :  { %3602 = shalt.err (!%p3599_p4)
}
0x2787   :  { %s3603_s27 = scalar_lea.hbm %s4463_s15, 32 }
0x2788   :  { %p3604_p5 = scmp.ne.s32.totalorder %s4463_s15, %s3603_s27  ;;  %p3607_p6 = scmp.lt.u32.totalorder %s3603_s27, %s4463_s15 }
0x278a   :  { %p3609_p7 = pnand %p3607_p6, %p3604_p5 }
0x278c   :  { %3612 = shalt.err (!%p3609_p7)
}
0x278d   :  { %2893 = dma.vmem_to_hbm [thread:$0]  %s2891_s3, 32, %s4463_s15, [#allocation3]   ;;  %v3003_v57 = vld [vmem:[%s4461_s13] ss:$0 sm:$0xff]  ;;  %vm2865_vm15 = vcmp.lt.s32.totalorder %v3880_v59, 3 }
0x2858   :  { %v2858_v32 = vpop.f32.mrb[44].mxu1 }
0x2859   :  { %v2859_v62 = vadd.f32 %v3003_v57, %v2858_v32  ;;  %v3356_v36 = vpop.f32.mrb[45].mxu1 }
0x285a   :  { %v2861_v33 = vpop.f32.mrb[46].mxu1 }
0x285b   :  { %v3007_v60 = vmul.f32 -1.442695, %v2859_v62  ;;  %v2862_v43 = vadd.f32 %v3003_v57, %v2861_v33  ;;  %v3357_v58 = vpop.f32.mrb[47].mxu1 }
0x285d   :  { %3583 = vpow2.f32 %v3007_v60  ;;  %v3008_v55 = vmul.f32 -1.442695, %v2862_v43 }
0x285f   :  { %3585 = vpow2.f32 %v3008_v55 }
0x2867   :  { %v3584_v12 = vpop.eup %3583 }
0x2868   :  { %v2872_v13 = vadd.f32 1.0, %v3584_v12 }
0x2869   :  { %v3586_v30 = vpop.eup %3585 }
0x286a   :  { %3587 = vrcp.f32 %v2872_v13  ;;  %v2873_v7 = vadd.f32 1.0, %v3586_v30 }
0x286c   :  { %3589 = vrcp.f32 %v2873_v7 }
0x2874   :  { %v3588_v20 = vpop.eup %3587 }
0x2875   :  { %v2878_v35 = vsel %vm2865_vm15, %v2859_v62, %v3588_v20 }
0x2876   :  { %v3590_v39 = vpop.eup %3589  ;;  %2880 = vst [vmem:[%s4462_s14] sm:$0xff] %v2878_v35 }
0x2877   :  { %v2879_v61 = vsel %vm2865_vm15, %v2862_v43, %v3590_v39 }
0x2878   :  { %2881 = vst [vmem:[%s4462_s14 + $0x8] sm:$0xff] %v2879_v61 }
0x2879   :  { %3613 = dma.done.wait [#allocation3], 32  }
0x287a   :  { %3614 = vsyncadd [#allocation3], 4294967264 }
0x287b   :  { %2899 = vsyncpa [#allocation3], 1 }

</bundles_post_ra>
